<compile_context>
chip_gen: v6e
topology: v6e:2x2x1
jax: 0.10.0
libtpu: 0.0.40
codegen_flags: <defaults>
</compile_context>

<pallas_src>
import functools

import jax
import jax.numpy as jnp
import numpy as np
from jax.experimental import pallas as pl
from jax.experimental.pallas import tpu as pltpu


_TILE_N_CAP = 1024          # rows per grid step (raiseable on v6e with more VMEM)
_SUBLANE = 8                # f32 sublane granularity
_MASK_PENALTY = 1.0e30      # finite, dominates any realistic score; 0*x stays 0
_VMEM_LIMIT_BYTES = 32 * 1024 * 1024  # explicit: don't rely on v5e's 16 MiB default


def _vq_kernel(n_rows, tile_n, node_aug_ref, emb_aug_ref, emb_ref,
               quant_ref, err_ref):
    """One row-tile: nearest-codebook lookup restricted by atom class.

    node_aug_ref : (T, D+5) f32  [node, 1, class-one-hot(4)]
    emb_aug_ref  : (K, D+5) f32  [emb, -0.5||e||^2, class validity penalties]
    emb_ref      : (K, D)   f32  raw codebook (for the bit-exact gather)
    quant_ref    : (T, D)   f32  selected codebook rows
    err_ref      : (1, 8, 128) f32  tile-level sum of squared errors (broadcast)
    """
    node_aug = node_aug_ref[...]                       # (T, D+5)
    emb_aug = emb_aug_ref[...]                         # (K, D+5)
    t = node_aug.shape[0]
    k = emb_aug.shape[0]

    # score[r, c] = x_r . e_c - 0.5*||e_c||^2 - PENALTY*[c invalid for class(r)]
    # Mask and bias are folded into the contraction -> no VPU mask passes.
    score = jax.lax.dot_general(
        node_aug, emb_aug, (((1,), (1,)), ((), ())),
        precision=jax.lax.Precision.HIGHEST,
        preferred_element_type=jnp.float32)            # (T, K) on the MXU

    # First-occurrence argmax along K (== first-occurrence argmin of distance).
    smax = jnp.max(score, axis=1, keepdims=True)       # (T, 1)
    col = jax.lax.broadcasted_iota(jnp.int32, (1, k), 1)   # (1, K), broadcast only
    cand = jnp.where(score == smax, col, k)            # (T, K) int32
    idx = jnp.min(cand, axis=1, keepdims=True)         # (T, 1)
    onehot = (cand == idx).astype(jnp.float32)         # exactly one 1 per valid row

    # Gather the selected codebook rows as a one-hot matmul; HIGHEST keeps the
    # gathered rows bit-exact f32 codebook entries (matches PyTorch embedding).
    quant_ref[...] = jax.lax.dot_general(
        onehot, emb_ref[...], (((1,), (0,)), ((), ())),
        precision=jax.lax.Precision.HIGHEST,
        preferred_element_type=jnp.float32)            # (T, D)

    # Per-row squared error, algebraically:
    #   ||x - e_sel||^2 = ||x||^2 - 2*smax,  ||x||^2 = rowsum(node_aug^2) - 2
    # (the ones column and the single hot class column each add exactly 1).
    row_sq = jnp.sum(node_aug * node_aug, axis=1, keepdims=True)    # (T, 1)
    err_row = row_sq - 2.0 - 2.0 * smax                             # (T, 1)

    # Mask rows beyond N (partial last tile holds undefined padding rows).
    row_id = (pl.program_id(0) * tile_n
              + jax.lax.broadcasted_iota(jnp.int32, (t, 1), 0))
    err_row = jnp.where(row_id < n_rows, err_row, 0.0)

    tile_err = jnp.sum(err_row, axis=0, keepdims=True)              # (1, 1)
    # One scalar per grid step, stored as a fully lane-dense (8, 128) block.
    err_ref[...] = jnp.broadcast_to(tile_err.reshape(1, 1, 1), (1, 8, 128))


def _pick_tile_n(n):
    """Sublane-aligned tile; >=2 grid steps when possible (v7x megacore)."""
    if n <= 2 * _SUBLANE:
        return n
    half = -(-n // 2)
    tile = -(-half // _SUBLANE) * _SUBLANE
    return int(min(tile, _TILE_N_CAP, n))


def vector_quantizer_forward(x, node_rep, embeddings, commitment_cost,
                             *, tile_n=None):
    """Pallas implementation of VectorQuantizer.forward -> (quantized, loss)."""
    n, d = node_rep.shape
    k = embeddings.shape[0]

    node = node_rep.astype(jnp.float32)
    emb = embeddings.astype(jnp.float32)
    atom = x[:, 0]

    # Per-row atom class one-hot (same predicates as the PyTorch module).
    is_c = atom == 5
    is_n = atom == 6
    is_o = atom == 7
    is_other = jnp.logical_not(is_c | is_n | is_o)
    cls_onehot = jnp.stack([is_c, is_n, is_o, is_other], axis=1).astype(jnp.float32)

    # Augmented encoder rows: [node, 1, class-one-hot]  -> (N, D+5).
    node_aug = jnp.concatenate(
        [node, jnp.ones((n, 1), jnp.float32), cls_onehot], axis=1)

    # Augmented codebook: [emb, -0.5*||e||^2, per-class validity penalty(4)].
    # Valid slices (as in PyTorch get_code_indices):
    #   C: [0, 377)  N: [378, 433)  O: [434, 488)  other: [489, 511).
    # (One-time O(K*D) prep; cache it if the codebook is reused across calls.)
    kk = jnp.arange(k)
    neg_half_sq = (-0.5 * jnp.sum(emb * emb, axis=1))[:, None]

    def penalty(lo, hi):
        valid = (kk >= lo) & (kk < hi)
        return jnp.where(valid, 0.0, -_MASK_PENALTY)[:, None].astype(jnp.float32)

    pen = jnp.concatenate(
        [penalty(0, 377), penalty(378, 433), penalty(434, 488), penalty(489, 511)],
        axis=1)                                                    # (K, 4)
    emb_aug = jnp.concatenate([emb, neg_half_sq, pen], axis=1)     # (K, D+5)
    d_aug = d + 5

    if tile_n is None:
        tile_n = _pick_tile_n(n)
    tile_n = int(tile_n)
    num_tiles = -(-n // tile_n)

    quant, err = pl.pallas_call(
        functools.partial(_vq_kernel, n, tile_n),
        out_shape=(
            jax.ShapeDtypeStruct((n, d), jnp.float32),
            jax.ShapeDtypeStruct((num_tiles, 8, 128), jnp.float32),
        ),
        grid=(num_tiles,),
        in_specs=[
            pl.BlockSpec((tile_n, d_aug), lambda i: (i, 0)),   # augmented nodes
            pl.BlockSpec((k, d_aug), lambda i: (0, 0)),        # aug codebook (resident)
            pl.BlockSpec((k, d), lambda i: (0, 0)),            # raw codebook (resident)
        ],
        out_specs=(
            pl.BlockSpec((tile_n, d), lambda i: (i, 0)),       # quantized rows
            pl.BlockSpec((1, 8, 128), lambda i: (i, 0, 0)),    # per-tile error scalar
        ),
        compiler_params=pltpu.CompilerParams(
            dimension_semantics=("parallel",),
            vmem_limit_bytes=_VMEM_LIMIT_BYTES),
    )(node_aug, emb_aug, emb)

    # q_latent_loss and e_latent_loss share the same forward value (detach only
    # changes gradients), so loss = (1 + beta) * mse.
    mse = jnp.sum(err[:, 0, 0]) / jnp.float32(n * d)
    loss = (1.0 + commitment_cost) * mse

    # Straight-through estimator (forward value == quant).
    quantized = node + jax.lax.stop_gradient(quant - node)
    return quantized, loss


def _reference_forward(x, node_rep, embeddings, commitment_cost):
    """Plain-numpy reference mirroring the PyTorch semantics (for checking)."""
    atom = np.asarray(x[:, 0]).astype(np.int32)
    node = np.asarray(node_rep, np.float32)
    emb = np.asarray(embeddings, np.float32)
    n = node.shape[0]
    idx = np.ones((n,), np.int64)
    ranges = {5: (0, 377, 0), 6: (378, 433, 378), 7: (434, 488, 434)}
    for a in range(n):
        lo, hi, off = ranges.get(int(atom[a]), (489, 511, 489))
        sub = emb[lo:hi]
        dist = (node[a] ** 2).sum() + (sub ** 2).sum(axis=1) - 2.0 * sub @ node[a]
        idx[a] = int(np.argmin(dist)) + off
    quant = emb[idx]
    loss = (1.0 + commitment_cost) * np.mean((quant - node) ** 2)
    return quant, loss


if __name__ == "__main__":
    key = jax.random.PRNGKey(0)
    k_atom, k_feat, k_node, k_emb, k_atom2, k_node2 = jax.random.split(key, 6)

    N = 64            # number of nodes
    D = 32            # embedding_dim
    K = 512           # num_embeddings (slices up to index 511 are used)
    BETA = 0.25       # commitment_cost

    # x: (N, 4) node features; column 0 is the atom type (mix of C/N/O/other).
    atom_types = jax.random.choice(
        k_atom, jnp.array([1, 5, 6, 7, 8], jnp.float32), shape=(N, 1))
    other_feats = jax.random.normal(k_feat, (N, 3), jnp.float32)
    x = jnp.concatenate([atom_types, other_feats], axis=1)

    node_rep = jax.random.normal(k_node, (N, D), jnp.float32)
    embeddings = jax.random.normal(k_emb, (K, D), jnp.float32)  # nn.Embedding ~ N(0,1)

    quantized, loss = vector_quantizer_forward(x, node_rep, embeddings, BETA)
    jax.block_until_ready(quantized)
    jax.block_until_ready(loss)

    ref_q, ref_loss = _reference_forward(x, node_rep, embeddings, BETA)
    assert np.allclose(np.asarray(quantized), ref_q, rtol=1e-4, atol=1e-4)
    assert np.allclose(float(loss), ref_loss, rtol=1e-4, atol=1e-4)

    # Second check: multi-tile grid (grid=3) including a partial last block
    # (N2 not a multiple of the tile) to exercise the OOB-row error masking.
    N2 = 80
    atom_types2 = jax.random.choice(
        k_atom2, jnp.array([1, 5, 6, 7, 8], jnp.float32), shape=(N2, 1))
    x2 = jnp.concatenate(
        [atom_types2, jnp.zeros((N2, 3), jnp.float32)], axis=1)
    node_rep2 = jax.random.normal(k_node2, (N2, D), jnp.float32)

    quantized2, loss2 = vector_quantizer_forward(
        x2, node_rep2, embeddings, BETA, tile_n=32)
    jax.block_until_ready(quantized2)
    jax.block_until_ready(loss2)

    ref_q2, ref_loss2 = _reference_forward(x2, node_rep2, embeddings, BETA)
    assert np.allclose(np.asarray(quantized2), ref_q2, rtol=1e-4, atol=1e-4)
    assert np.allclose(float(loss2), ref_loss2, rtol=1e-4, atol=1e-4)

    print("KERNEL_OK")
</pallas_src>

<mosaic_0001>
module attributes {stable_mosaic.version = 11 : i64} {
  func.func @_vq_kernel(%arg0: i32, %arg1: memref<32x37xf32, #tpu.memory_space<vmem>>, %arg2: memref<512x37xf32, #tpu.memory_space<vmem>>, %arg3: memref<512x32xf32, #tpu.memory_space<vmem>>, %arg4: memref<32x32xf32, #tpu.memory_space<vmem>>, %arg5: memref<1x8x128xf32, #tpu.memory_space<vmem>>) attributes {dimension_semantics = [#tpu.dimension_semantics<parallel>], iteration_bounds = array<i64: 2>, scalar_prefetch = 0 : i64, scratch_operands = 0 : i64, tpu.core_type = #tpu.core_type<tc>, window_params = [{transform_indices = @transform_0, window_bounds = array<i64: 32, 37>}, {pipeline_mode = #tpu.pipeline_mode<synchronous>, transform_indices = @transform_1, window_bounds = array<i64: 512, 37>}, {pipeline_mode = #tpu.pipeline_mode<synchronous>, transform_indices = @transform_2, window_bounds = array<i64: 512, 32>}, {transform_indices = @transform_3, window_bounds = array<i64: 32, 32>}, {transform_indices = @transform_4, window_bounds = array<i64: 1, 8, 128>}]} {
    %c0 = arith.constant 0 : index
    %c0_0 = arith.constant 0 : index
    %0 = vector.load %arg1[%c0, %c0_0] : memref<32x37xf32, #tpu.memory_space<vmem>>, vector<32x37xf32>
    %c0_1 = arith.constant 0 : index
    %c0_2 = arith.constant 0 : index
    %1 = vector.load %arg2[%c0_1, %c0_2] : memref<512x37xf32, #tpu.memory_space<vmem>>, vector<512x37xf32>
    %cst = arith.constant dense<0.000000e+00> : vector<32x512xf32>
    %2 = tpu.matmul %0, %1, %cst {dimension_numbers = #tpu.dot_dimension_numbers<[1], [1], [0], [0], [0, 0, 1, 0], [], []>, precision = #tpu.contract_precision<fp32>} : vector<32x37xf32>, vector<512x37xf32>, vector<32x512xf32> -> vector<32x512xf32>
    %cst_3 = arith.constant dense<0xFF800000> : vector<32xf32>
    %3 = vector.multi_reduction <maximumf>, %2, %cst_3 [1] : vector<32x512xf32> to vector<32xf32>
    %4 = vector.shape_cast %3 : vector<32xf32> to vector<32x1xf32>
    %5 = tpu.iota {dimensions = array<i32: 1>} : vector<1x512xi32>
    %6 = vector.broadcast %4 : vector<32x1xf32> to vector<32x512xf32>
    %7 = arith.cmpf oeq, %2, %6 : vector<32x512xf32>
    %c512_i32 = arith.constant 512 : i32
    %8 = vector.shape_cast %5 : vector<1x512xi32> to vector<1x512xi32>
    %9 = vector.broadcast %8 : vector<1x512xi32> to vector<32x512xi32>
    %10 = vector.broadcast %c512_i32 : i32 to vector<32x512xi32>
    %11 = arith.select %7, %9, %10 : vector<32x512xi1>, vector<32x512xi32>
    %cst_4 = arith.constant dense<2147483647> : vector<32xi32>
    %12 = vector.multi_reduction <minsi>, %11, %cst_4 [1] : vector<32x512xi32> to vector<32xi32>
    %13 = vector.shape_cast %12 : vector<32xi32> to vector<32x1xi32>
    %14 = vector.broadcast %13 : vector<32x1xi32> to vector<32x512xi32>
    %15 = arith.cmpi eq, %11, %14 : vector<32x512xi32>
    %16 = arith.extui %15 : vector<32x512xi1> to vector<32x512xi32>
    %17 = arith.sitofp %16 : vector<32x512xi32> to vector<32x512xf32>
    %c0_5 = arith.constant 0 : index
    %c0_6 = arith.constant 0 : index
    %18 = vector.load %arg3[%c0_5, %c0_6] : memref<512x32xf32, #tpu.memory_space<vmem>>, vector<512x32xf32>
    %cst_7 = arith.constant dense<0.000000e+00> : vector<32x32xf32>
    %19 = tpu.matmul %17, %18, %cst_7 {dimension_numbers = #tpu.dot_dimension_numbers<[1], [0], [0], [1], [0, 0, 1, 1], [], []>, precision = #tpu.contract_precision<fp32>} : vector<32x512xf32>, vector<512x32xf32>, vector<32x32xf32> -> vector<32x32xf32>
    %c0_8 = arith.constant 0 : index
    %c0_9 = arith.constant 0 : index
    %20 = vector.load %arg4[%c0_8, %c0_9] : memref<32x32xf32, #tpu.memory_space<vmem>>, vector<32x32xf32>
    tpu.vector_store %arg4[%c0_8, %c0_9], %19 {strides = array<i32>} : memref<32x32xf32, #tpu.memory_space<vmem>>, vector<32x32xf32>,
    %21 = arith.mulf %0, %0 : vector<32x37xf32>
    %cst_10 = arith.constant dense<0.000000e+00> : vector<32xf32>
    %22 = vector.multi_reduction <add>, %21, %cst_10 [1] : vector<32x37xf32> to vector<32xf32>
    %23 = vector.shape_cast %22 : vector<32xf32> to vector<32x1xf32>
    %cst_11 = arith.constant 2.000000e+00 : f32
    %24 = vector.broadcast %cst_11 : f32 to vector<32x1xf32>
    %25 = arith.subf %23, %24 : vector<32x1xf32>
    %cst_12 = arith.constant 2.000000e+00 : f32
    %26 = vector.broadcast %cst_12 : f32 to vector<32x1xf32>
    %27 = arith.mulf %26, %4 : vector<32x1xf32>
    %28 = arith.subf %25, %27 : vector<32x1xf32>
    %c32_i32 = arith.constant 32 : i32
    %29 = arith.muli %arg0, %c32_i32 : i32
    %30 = tpu.iota {dimensions = array<i32: 0>} : vector<32x1xi32>
    %31 = vector.broadcast %29 : i32 to vector<32x1xi32>
    %32 = arith.addi %31, %30 : vector<32x1xi32>
    %c64_i32 = arith.constant 64 : i32
    %33 = vector.broadcast %c64_i32 : i32 to vector<32x1xi32>
    %34 = arith.cmpi slt, %32, %33 : vector<32x1xi32>
    %cst_13 = arith.constant 0.000000e+00 : f32
    %35 = vector.broadcast %cst_13 : f32 to vector<32x1xf32>
    %36 = arith.select %34, %28, %35 : vector<32x1xi1>, vector<32x1xf32>
    %cst_14 = arith.constant dense<0.000000e+00> : vector<1xf32>
    %37 = vector.multi_reduction <add>, %36, %cst_14 [0] : vector<32x1xf32> to vector<1xf32>
    %38 = vector.shape_cast %37 : vector<1xf32> to vector<1x1xf32>
    %39 = vector.shape_cast %38 : vector<1x1xf32> to vector<1x1x1xf32>
    %40 = vector.shape_cast %39 : vector<1x1x1xf32> to vector<1x1x1xf32>
    %41 = vector.broadcast %40 : vector<1x1x1xf32> to vector<1x8x128xf32>
    %c0_15 = arith.constant 0 : index
    %c0_16 = arith.constant 0 : index
    %c0_17 = arith.constant 0 : index
    %42 = vector.load %arg5[%c0_15, %c0_16, %c0_17] : memref<1x8x128xf32, #tpu.memory_space<vmem>>, vector<1x8x128xf32>
    tpu.vector_store %arg5[%c0_15, %c0_16, %c0_17], %41 {strides = array<i32>} : memref<1x8x128xf32, #tpu.memory_space<vmem>>, vector<1x8x128xf32>,
    return
  }
  func.func @transform_0(%arg0: i32) -> (i32, i32) {
    %c0_i32 = arith.constant 0 : i32
    %c0_i32_0 = arith.constant 0 : i32
    return %arg0, %c0_i32 : i32, i32
  }
  func.func @transform_1(%arg0: i32) -> (i32, i32) {
    %c0_i32 = arith.constant 0 : i32
    %c0_i32_0 = arith.constant 0 : i32
    %c0_i32_1 = arith.constant 0 : i32
    return %c0_i32, %c0_i32_0 : i32, i32
  }
  func.func @transform_2(%arg0: i32) -> (i32, i32) {
    %c0_i32 = arith.constant 0 : i32
    %c0_i32_0 = arith.constant 0 : i32
    %c0_i32_1 = arith.constant 0 : i32
    return %c0_i32, %c0_i32_0 : i32, i32
  }
  func.func @transform_3(%arg0: i32) -> (i32, i32) {
    %c0_i32 = arith.constant 0 : i32
    %c0_i32_0 = arith.constant 0 : i32
    return %arg0, %c0_i32 : i32, i32
  }
  func.func @transform_4(%arg0: i32) -> (i32, i32, i32) {
    %c0_i32 = arith.constant 0 : i32
    %c0_i32_0 = arith.constant 0 : i32
    %c0_i32_1 = arith.constant 0 : i32
    return %arg0, %c0_i32, %c0_i32_0 : i32, i32, i32
  }
}

</mosaic_0001>

<bundles_post_ra>
// kernel: tpu_custom_call.1
= control target key start
LH: loop header
LB: loop body
LE: loop exit
PB: predicated region body
PF: predicated region fallthrough
CT: control target
= control target key end

     0   :  { %10 = vsyncpa [#allocation3], 0  ;;  %s9865_s0 = inlined_call_operand.vmem [shape: f32[64,37], index: 0, kind: input, shape index: {}]   ;;  %s9866_s1 = inlined_call_operand.vmem [shape: f32[512,37], index: 1, kind: input, shape index: {}]   ;;  %s9867_s2 = inlined_call_operand.vmem [shape: f32[512,32], index: 2, kind: input, shape index: {}]   ;;  %s9868_s3 = inlined_call_operand.vmem [shape: f32[64,32], index: 3, kind: output, shape index: {0}]   ;;  %s9869_s4 = inlined_call_operand.hbm [shape: f32[2,8,128], index: 4, kind: output, shape index: {1}]  }
   0x1   :  { %12 = vsyncpa [#allocation3 + $0x1], 0  ;;  %s6192_s15 = smov 0   ;;  %s6194_s16 = smov 0  }
   0x2   :  { %s6196_s17 = smov 0   ;;  %s6198_s18 = smov 0  }
   0x3 LB: > { %s6213_s19 = sadd.s32 4294967295, %s6162_s18   ;;  %s4967_s20 = sadd.s32 4294967294, %s6162_s18   ;;  %s6162_s18 = sphi %s6198_s18, %s10886_s18   ;;  %s6158_s17 = sphi %s6196_s17, %s10885_s17   ;;  %s6154_s16 = sphi %s6194_s16, %s10884_s16   ;;  %s6150_s15 = sphi %s6192_s15, %s10883_s15  }
   0x4   : > { %s6217_s21 = sadd.s32 1, %s6162_s18   ;;  %s119_s22 = sadd.s32 1, %s6158_s17 }
   0x5   : > { %s116_s23 = ssub.s32 %s6162_s18, %s6217_s21  ;;  %p129_p0 = scmp.ne.s32.totalorder %s6158_s17, %s6154_s16 }
   0x6   : > { %p117_p1 = scmp.eq.s32.totalorder %s116_s23, 0  ;;  %p130_p2 = scmp.eq.s32.totalorder %s6213_s19, 1 }
   0x7   : > { %p135_p3 = scmp.ne.s32.totalorder %s6154_s16, %s6150_s15  ;;  %p136_p4 = scmp.eq.s32.totalorder %s4967_s20, 1 }
   0x8   : > { %s6228_s24 = scalar_select %p117_p1, %s6158_s17, %s119_s22  }
   0x9   : > { %p6230_p5 = por %p130_p2, %p129_p0  ;;  %p6234_p6 = por %p136_p4, %p135_p3 }
   0xa   : > { %p4970_p7 = scmp.ge.s32.totalorder %s6162_s18, 1  ;;  %p169_p8 = scmp.lt.s32.totalorder %s6162_s18, 3 }
   0xc   : > { %p170_p9 = pnand %p4970_p7, %p169_p8 }
   0xe   : > { %173 = sbr.rel (%p170_p9) target bundleno = 1471 (0x5bf), region = 32 }
  0x13   : > { %v247_v0 = vld [vmem:[%s9866_s1 + $0xf8] sm:$0xff]  ;;  %vm280_vm0 = vcmask 302080   ;;  %v246_v2 = vld [vmem:[%s9866_s1 + $0xf0] sm:$0xff]  ;;  %v245_v7 = vld [vmem:[%s9866_s1 + $0xe8] sm:$0xff]  ;;  %s4972_s9 = sshll.u32 %s6213_s19, 2  ;;  %s197_s7 = sand.u32 1, %s6154_s16  }
  0x14   : > { %v231_v1 = vld [vmem:[%s9866_s1 + $0x78] sm:$0xff]  ;;  %v387_v3 = vsel %vm280_vm0, %v247_v0, 0  ;;  %v384_v5 = vsel %vm280_vm0, %v246_v2, 0  ;;  %v230_v6 = vld [vmem:[%s9866_s1 + $0x70] sm:$0xff]  ;;  %v229_v8 = vld [vmem:[%s9866_s1 + $0x68] sm:$0xff]  ;;  %v381_v16 = vsel %vm280_vm0, %v245_v7, 0 }
  0x15   : > { %v339_v4 = vsel %vm280_vm0, %v231_v1, 0  ;;  %v6261_v9 = vand.u32 4294901760, %v387_v3  ;;  %v6265_v11 = vand.u32 4294901760, %v384_v5  ;;  %v336_v12 = vsel %vm280_vm0, %v230_v6, 0  ;;  %v244_v13 = vld [vmem:[%s9866_s1 + $0xe0] sm:$0xff]  ;;  %v243_v19 = vld [vmem:[%s9866_s1 + $0xd8] sm:$0xff] }
  0x16   : > { %v6263_v10 = vand.u32 4294901760, %v339_v4  ;;  %v228_v14 = vld [vmem:[%s9866_s1 + $0x60] sm:$0xff]  ;;  %v6274_v15 = vand.u32 4294901760, %v336_v12  ;;  %v333_v17 = vsel %vm280_vm0, %v229_v8, 0  ;;  %v378_v18 = vsel %vm280_vm0, %v244_v13, 0  ;;  %v227_v27 = vld [vmem:[%s9866_s1 + $0x58] sm:$0xff] }
  0x17   : > { %5049 = vmatprep.subr.mxu0 %v6261_v9  ;;  %v6283_v20 = vand.u32 4294901760, %v381_v16  ;;  %v6286_v21 = vsub.f32 %v387_v3, %v6261_v9  ;;  %v6288_v22 = vand.u32 4294901760, %v333_v17  ;;  %v6295_v24 = vsub.f32 %v384_v5, %v6265_v11  ;;  %v242_v36 = vld [vmem:[%s9866_s1 + $0xd0] sm:$0xff]  ;;  %v241_v50 = vld [vmem:[%s9866_s1 + $0xc8] sm:$0xff]  ;;  %v240_v60 = vld [vmem:[%s9866_s1 + $0xc0] sm:$0xff]  ;;  %p6489_p10 = scmp.lt.s32.totalorder %s4972_s9, 7 }
  0x18   : > { %v6291_v23 = vsub.f32 %v339_v4, %v6263_v10  ;;  %5050 = vmatpush3.xpose.msra.mxu0 %v6263_v10  ;;  %v330_v25 = vsel %vm280_vm0, %v228_v14, 0  ;;  %v6299_v26 = vsub.f32 %v336_v12, %v6274_v15  ;;  %v6307_v30 = vand.u32 4294901760, %v378_v18  ;;  %v226_v45 = vld [vmem:[%s9866_s1 + $0x50] sm:$0xff]  ;;  %v225_v59 = vld [vmem:[%s9866_s1 + $0x48] sm:$0xff]  ;;  %v224_v5 = vld [vmem:[%s9866_s1 + $0x40] sm:$0xff]  ;;  %s8606_s8 = sshll.u32 %s197_s7, 3 }
  0x19   : > { %5051 = vmatprep.subr.mxu0 %v6265_v11  ;;  %v9888_v28 = vand.u32 4294901760, %v6286_v21  ;;  %v375_v31 = vsel %vm280_vm0, %v243_v19, 0  ;;  %v9883_v32 = vand.u32 4294901760, %v6295_v24  ;;  %v6311_v33 = vand.u32 4294901760, %v330_v25  ;;  %s10888_s9 = smov (!%p6489_p10, %s4972_s9), 7  ;;  %s199_s11 = scalar_lea.vmem [#allocation2], %s8606_s8 }
  0x1a   : > { %v9885_v29 = vand.u32 4294901760, %v6291_v23  ;;  %v9882_v34 = vand.u32 4294901760, %v6299_v26  ;;  %v6315_v35 = vsub.f32 %v381_v16, %v6283_v20  ;;  %v327_v39 = vsel %vm280_vm0, %v227_v27, 0  ;;  %s4973_s28 = sshll.u32 %s10888_s9, 3  ;;  %s5046_s22 = sshll.u32 %s6213_s19, 7 }
  0x1b   : > { %v742_v37 = vsub.f32 %v6286_v21, %v9888_v28  ;;  %v6328_v40 = vsub.f32 %v333_v17, %v6288_v22  ;;  %v749_v41 = vsub.f32 %v6295_v24, %v9883_v32  ;;  %v6337_v43 = vand.u32 4294901760, %v375_v31  ;;  %s6578_s10 = scalar_lea.vmem %s9865_s0, %s4973_s28  ;;  %s4883_s23 = sshll.u32 %s199_s11, 4  ;;  %s4884_s23 = int_to_ptr.vmem [resolvable:$true] %s4883_s23 }
  0x1c   : > { %v630_v38 = vsub.f32 %v6291_v23, %v9885_v29  ;;  %5052 = vmatpush3.xpose.msra.mxu0 %v6274_v15  ;;  %v637_v42 = vsub.f32 %v6299_v26, %v9882_v34  ;;  %v9881_v44 = vand.u32 4294901760, %v6315_v35  ;;  %v372_v49 = vsel %vm280_vm0, %v242_v36, 0  ;;  %v218_v29 = vld [vmem:[%s9866_s1 + $0x10] sm:$0xff]  ;;  %s4881_s30 = scalar_lea.hbm %s9869_s4, %s5046_s22  ;;  %s4866_s5 = scalar_lea.sflag [#allocation3], %s197_s7 }
  0x1d   : > { %5053 = vmatprep.subr.mxu0 %v6283_v20  ;;  %v743_v46 = vand.u32 4294901760, %v742_v37  ;;  %v9879_v48 = vand.u32 4294901760, %v6328_v40  ;;  %v750_v51 = vand.u32 4294901760, %v749_v41  ;;  %v6352_v54 = vand.u32 4294901760, %v327_v39  ;;  %s6102_s6 = scalar_lea.vmem %s4884_s23, 128 }
  0x1e   : > { %v631_v47 = vand.u32 4294901760, %v630_v38  ;;  %v638_v52 = vand.u32 4294901760, %v637_v42  ;;  %v756_v53 = vsub.f32 %v6315_v35, %v9881_v44  ;;  %v6358_v56 = vsub.f32 %v378_v18, %v6307_v30  ;;  %v239_v18 = vld [vmem:[%s9866_s1 + $0xb8] sm:$0xff]  ;;  %p6103_p11 = scmp.ne.s32.totalorder %s4884_s23, %s6102_s6 }
  0x1f   : > { %5089 = vmatprep.subr.mxu1 %v743_v46  ;;  %v644_v55 = vsub.f32 %v6328_v40, %v9879_v48  ;;  %v324_v57 = vsel %vm280_vm0, %v226_v45, 0  ;;  %v6362_v58 = vsub.f32 %v330_v25, %v6311_v33  ;;  %v6371_v62 = vand.u32 4294901760, %v372_v49  ;;  %v223_v45 = vld [vmem:[%s9866_s1 + $0x38] sm:$0xff]  ;;  %v238_v46 = vld [vmem:[%s9866_s1 + $0xb0] sm:$0xff] }
  0x20   : > { %5054 = vmatpush3.xpose.msra.mxu0 %v6288_v22  ;;  %5090 = vmatpush3.xpose.msra.mxu1 %v631_v47  ;;  %v757_v61 = vand.u32 4294901760, %v756_v53  ;;  %v369_v63 = vsel %vm280_vm0, %v241_v50, 0  ;;  %v6375_v0 = vsub.f32 %v375_v31, %v6337_v43  ;;  %v9878_v2 = vand.u32 4294901760, %v6358_v56  ;;  %p6104_p12 = pnand %p6103_p11, %p6230_p5 }
  0x21   : > { %5055 = vmatprep.subr.mxu0 %v6307_v30  ;;  %5091 = vmatprep.subr.mxu1 %v750_v51  ;;  %v645_v1 = vand.u32 4294901760, %v644_v55  ;;  %v6379_v3 = vand.u32 4294901760, %v324_v57  ;;  %v9877_v4 = vand.u32 4294901760, %v6362_v58  ;;  %v321_v7 = vsel %vm280_vm0, %v225_v59, 0  ;;  %v222_v59 = vld [vmem:[%s9866_s1 + $0x30] sm:$0xff] }
  0x22   : > { %v9874_v6 = vand.u32 4294901760, %v6375_v0  ;;  %v6388_v8 = vsub.f32 %v327_v39, %v6352_v54  ;;  %v366_v12 = vsel %vm280_vm0, %v240_v60, 0  ;;  %v763_v13 = vsub.f32 %v6358_v56, %v9878_v2  ;;  %p6105_p13 = pneg %p6104_p12 }
  0x23   : > { %v651_v14 = vsub.f32 %v6362_v58, %v9877_v4  ;;  %v6397_v16 = vand.u32 4294901760, %v369_v63  ;;  %v6399_v17 = vand.u32 4294901760, %v321_v7  ;;  %v6410_v27 = vsub.f32 %v372_v49, %v6371_v62  ;;  %v235_v4 = vld [vmem:[%s9866_s1 + $0x98] sm:$0xff] }
  0x24   : > { %5056 = vmatpush3.xpose.msra.mxu0 %v6311_v33  ;;  %5092 = vmatpush3.xpose.msra.mxu1 %v638_v52  ;;  %v770_v19 = vsub.f32 %v6375_v0, %v9874_v6  ;;  %v9873_v25 = vand.u32 4294901760, %v6388_v8  ;;  %v318_v31 = vsel %vm280_vm0, %v224_v5, 0  ;;  %v764_v36 = vand.u32 4294901760, %v763_v13  ;;  %v237_v5 = vld [vmem:[%s9866_s1 + $0xa8] sm:$0xff] }
  0x25   : > { %10264 = vst [vmem:[#allocation5_spill] sm:$0xff] %v6399_v17  ;;  %5057 = vmatprep.subr.mxu0 %v6337_v43  ;;  %5093 = vmatprep.subr.mxu1 %v757_v61  ;;  %v6414_v37 = vand.u32 4294901760, %v366_v12  ;;  %v6417_v38 = vsub.f32 %v324_v57, %v6379_v3  ;;  %v652_v39 = vand.u32 4294901760, %v651_v14  ;;  %v9872_v41 = vand.u32 4294901760, %v6410_v27 }
  0x26   : > { %v363_v42 = vsel %vm280_vm0, %v239_v18, 0  ;;  %v658_v47 = vsub.f32 %v6388_v8, %v9873_v25  ;;  %v6430_v49 = vand.u32 4294901760, %v318_v31  ;;  %v6434_v51 = vsub.f32 %v369_v63, %v6397_v16 }
  0x27   : > { %10265 = vst [vmem:[#allocation6_spill] sm:$0xff] %v6414_v37  ;;  %v9870_v50 = vand.u32 4294901760, %v6417_v38  ;;  %v771_v52 = vand.u32 4294901760, %v770_v19  ;;  %v777_v53 = vsub.f32 %v6410_v27, %v9872_v41  ;;  %v6440_v55 = vand.u32 4294901760, %v363_v42 }
  0x28   : > { %10266 = vst [vmem:[#allocation7_spill] sm:$0xff] %v6430_v49  ;;  %5058 = vmatpush3.xpose.msra.mxu0 %v6352_v54  ;;  %5094 = vmatpush3.xpose.msra.mxu1 %v645_v1  ;;  %v6443_v57 = vsub.f32 %v321_v7, %v6399_v17  ;;  %v9871_v60 = vand.u32 4294901760, %v6434_v51  ;;  %v315_v61 = vsel %vm280_vm0, %v223_v45, 0  ;;  %v360_v63 = vsel %vm280_vm0, %v238_v46, 0  ;;  %v221_v46 = vld [vmem:[%s9866_s1 + $0x28] sm:$0xff] }
  0x29   : > { %10267 = vst [vmem:[#allocation8_spill] sm:$0xff] %v6440_v55  ;;  %5059 = vmatprep.subr.mxu0 %v6371_v62  ;;  %5095 = vmatprep.subr.mxu1 %v764_v36  ;;  %v6453_v1 = vsub.f32 %v366_v12, %v6414_v37  ;;  %v659_v7 = vand.u32 4294901760, %v658_v47  ;;  %v665_v13 = vsub.f32 %v6417_v38, %v9870_v50  ;;  %v312_v18 = vsel %vm280_vm0, %v222_v59, 0 }
  0x2a   : > { %v9875_v14 = vand.u32 4294901760, %v6443_v57  ;;  %v778_v12 = vand.u32 4294901760, %v777_v53  ;;  %v6465_v19 = vand.u32 4294901760, %v315_v61  ;;  %v6467_v36 = vand.u32 4294901760, %v360_v63 }
  0x2b   : > { %v6470_v45 = vsub.f32 %v318_v31, %v6430_v49  ;;  %v784_v47 = vsub.f32 %v6434_v51, %v9871_v60  ;;  %v357_v53 = vsel %vm280_vm0, %v237_v5, 0  ;;  %v6482_v59 = vsub.f32 %v363_v42, %v6440_v55  ;;  %v236_v31 = vld [vmem:[%s9866_s1 + $0xa0] sm:$0xff] }
  0x2c   : > { %5060 = vmatpush3.xpose.msra.mxu0 %v6379_v3  ;;  %5096 = vmatpush3.xpose.msra.mxu1 %v652_v39  ;;  %10268 = vst [vmem:[#allocation9_spill] sm:$0xff] %v6465_v19  ;;  %10269 = vst [vmem:[#allocation10_spill] sm:$0xff] %v6467_v36  ;;  %v9876_v39 = vand.u32 4294901760, %v6453_v1  ;;  %v666_v50 = vand.u32 4294901760, %v665_v13  ;;  %v672_v5 = vsub.f32 %v6443_v57, %v9875_v14  ;;  %v309_v60 = vsel %vm280_vm0, %v221_v46, 0 }
  0x2d   : > { %5061 = vmatprep.subr.mxu0 %v6397_v16  ;;  %5097 = vmatprep.subr.mxu1 %v771_v52  ;;  %v6493_v52 = vand.u32 4294901760, %v312_v18  ;;  %v9880_v42 = vand.u32 4294901760, %v6470_v45  ;;  %v6501_v41 = vand.u32 4294901760, %v357_v53  ;;  %v6504_v25 = vsub.f32 %v315_v61, %v6465_v19  ;;  %v220_v61 = vld [vmem:[%s9866_s1 + $0x20] sm:$0xff] }
  0x2e   : > { %v354_v13 = vsel %vm280_vm0, %v236_v31, 0  ;;  %v6508_v6 = vsub.f32 %v360_v63, %v6467_v36  ;;  %v785_v14 = vand.u32 4294901760, %v784_v47  ;;  %v791_v46 = vsub.f32 %v6453_v1, %v9876_v39 }
  0x2f   : > { %10271 = vst [vmem:[#allocation11_spill] sm:$0xff] %v6493_v52  ;;  %10272 = vst [vmem:[#allocation12_spill] sm:$0xff] %v6501_v41  ;;  %v6524_v63 = vand.u32 4294901760, %v309_v60  ;;  %v673_v47 = vand.u32 4294901760, %v672_v5  ;;  %v679_v31 = vsub.f32 %v6470_v45, %v9880_v42  ;;  %v6532_v39 = vand.u32 4294901760, %v354_v13 }
  0x30   : > { %5062 = vmatpush3.xpose.msra.mxu0 %v6399_v17  ;;  %5098 = vmatpush3.xpose.msra.mxu1 %v659_v7  ;;  %10273 = vst [vmem:[#allocation13_spill] sm:$0xff] %v6508_v6  ;;  %v9884_v7 = vand.u32 4294901760, %v6482_v59  ;;  %v9887_v2 = vand.u32 4294901760, %v6504_v25  ;;  %v9886_v48 = vand.u32 4294901760, %v6508_v6  ;;  %v6542_v5 = vsub.f32 %v357_v53, %v6501_v41  ;;  %v215_v17 = vld [vmem:[%s6578_s10 + $0x18] sm:$0xff] }
  0x31   : > { %5063 = vmatprep.subr.mxu0 %v6414_v37  ;;  %5099 = vmatprep.subr.mxu1 %v778_v12  ;;  %10274 = vst [vmem:[#allocation14_spill] sm:$0xff] %v6524_v63  ;;  %v6527_v12 = vsub.f32 %v312_v18, %v6493_v52  ;;  %10276 = vst [vmem:[#allocation16_spill] sm:$0xff] %v6532_v39  ;;  %v306_v18 = vsel %vm280_vm0, %v220_v61, 0  ;;  %v792_v42 = vand.u32 4294901760, %v791_v46  ;;  %v351_v34 = vsel %vm280_vm0, %v235_v4, 0  ;;  %v219_v61 = vld [vmem:[%s9866_s1 + $0x18] sm:$0xff] }
  0x32   : > { %10277 = vst [vmem:[#allocation17_spill] sm:$0xff] %v6542_v5  ;;  %v798_v44 = vsub.f32 %v6482_v59, %v9884_v7  ;;  %v6555_v53 = vsub.f32 %v309_v60, %v6524_v63  ;;  %v6557_v32 = vand.u32 4294901760, %v306_v18  ;;  %v6563_v46 = vsub.f32 %v354_v13, %v6532_v39  ;;  %v213_v37 = vld [vmem:[%s6578_s10 + $0x8] sm:$0xff] }
  0x33   : > { %10275 = vst [vmem:[#allocation15_spill] sm:$0xff] %v6527_v12  ;;  %v680_v4 = vand.u32 4294901760, %v679_v31  ;;  %v686_v7 = vsub.f32 %v6504_v25, %v9887_v2  ;;  %v805_v60 = vsub.f32 %v6508_v6, %v9886_v48  ;;  %v303_v31 = vsel %vm280_vm0, %v219_v61, 0  ;;  %v214_v6 = vld [vmem:[%s6578_s10 + $0x10] sm:$0xff] }
  0x34   : > { %5064 = vmatpush3.xpose.msra.mxu0 %v6430_v49  ;;  %5100 = vmatpush3.xpose.msra.mxu1 %v666_v50  ;;  %v9891_v50 = vand.u32 4294901760, %v6527_v12  ;;  %10278 = vst [vmem:[#allocation18_spill] sm:$0xff] %v6555_v53  ;;  %10279 = vst [vmem:[#allocation19_spill] sm:$0xff] %v6557_v32  ;;  %v799_v13 = vand.u32 4294901760, %v798_v44  ;;  %v233_v44 = vld [vmem:[%s9866_s1 + $0x88] sm:$0xff]  ;;  %v6597_v61 = vsub.f32 %v306_v18, %v6557_v32 }
  0x35   : > { %5065 = vmatprep.subr.mxu0 %v6440_v55  ;;  %5101 = vmatprep.subr.mxu1 %v785_v14  ;;  %v234_v14 = vld [vmem:[%s9866_s1 + $0x90] sm:$0xff]  ;;  %10280 = vst [vmem:[#allocation20_spill] sm:$0xff] %v6563_v46  ;;  %v806_v2 = vand.u32 4294901760, %v805_v60  ;;  %v6604_v55 = vand.u32 4294901760, %v303_v31  ;;  %v217_v49 = vld [vmem:[%s9866_s1 + $0x8] sm:$0xff] }
  0x36   : > { %v693_v48 = vsub.f32 %v6527_v12, %v9891_v50  ;;  %v348_v28 = vsel %vm280_vm0, %v234_v14, 0  ;;  %10282 = vst [vmem:[#allocation22_spill] sm:$0xff] %v6597_v61  ;;  %v687_v50 = vand.u32 4294901760, %v686_v7  ;;  %v10283_v14 = vand.u32 4294901760, %v6542_v5 }
  0x37   : > { %10284 = vst [vmem:[#allocation23_spill] sm:$0xff] %v6604_v55  ;;  %v6610_v18 = vand.u32 4294901760, %v348_v28  ;;  %v345_v7 = vsel %vm280_vm0, %v233_v44, 0 }
  0x38   : > { %5066 = vmatpush3.xpose.msra.mxu0 %v6465_v19  ;;  %5102 = vmatpush3.xpose.msra.mxu1 %v673_v47  ;;  %v6581_v47 = vand.u32 4294901760, %v351_v34  ;;  %v812_v19 = vsub.f32 %v6542_v5, %v10283_v14  ;;  %v694_v60 = vand.u32 4294901760, %v693_v48  ;;  %v10287_v14 = vand.u32 4294901760, %v6555_v53 }
  0x39   : > { %5067 = vmatprep.subr.mxu0 %v6467_v36  ;;  %5103 = vmatprep.subr.mxu1 %v792_v42  ;;  %v212_v36 = vld [vmem:[%s6578_s10] sm:$0xff]  ;;  %10285 = vst [vmem:[#allocation24_spill] sm:$0xff] %v6610_v18  ;;  %v300_v42 = vsel %vm280_vm0, %v218_v29, 0  ;;  %v10288_v5 = vand.u32 4294901760, %v6563_v46  ;;  %v6644_v44 = vsub.f32 %v348_v28, %v6610_v18 }
  0x3a   : > { %10281 = vst [vmem:[#allocation21_spill] sm:$0xff] %v6581_v47  ;;  %v813_v48 = vand.u32 4294901760, %v812_v19  ;;  %v216_v19 = vld [vmem:[%s9866_s1] sm:$0xff] }
  0x3b   : > { %v819_v29 = vsub.f32 %v6563_v46, %v10288_v5  ;;  %10292 = vst [vmem:[#allocation29_spill] sm:$0xff] %v6644_v44  ;;  %v10293_v5 = vand.u32 4294901760, %v6597_v61  ;;  %v294_v46 = vsel %vm280_vm0, %v216_v19, 0 }
  0x3c   : > { %5068 = vmatpush3.xpose.msra.mxu0 %v6493_v52  ;;  %5104 = vmatpush3.xpose.msra.mxu1 %v680_v4  ;;  %v6615_v4 = vsub.f32 %v351_v34, %v6581_v47  ;;  %v700_v52 = vsub.f32 %v6555_v53, %v10287_v14  ;;  %v297_v34 = vsel %vm280_vm0, %v217_v49, 0  ;;  %v6632_v14 = vand.u32 4294901760, %v300_v42 }
  0x3d   : > { %5069 = vmatprep.subr.mxu0 %v6501_v41  ;;  %5105 = vmatprep.subr.mxu1 %v799_v13  ;;  %v232_v41 = vld [vmem:[%s9866_s1 + $0x80] sm:$0xff]  ;;  %v282_v13 = vsel %vm280_vm0, %v212_v36, 0  ;;  %v6634_v53 = vand.u32 4294901760, %v345_v7  ;;  %v6637_v36 = vsub.f32 %v303_v31, %v6604_v55 }
  0x3e   : > { %10286 = vst [vmem:[#allocation25_spill] sm:$0xff] %v6615_v4  ;;  %v6629_v12 = vand.u32 4294901760, %v282_v13  ;;  %10289 = vst [vmem:[#allocation26_spill] sm:$0xff] %v6632_v14  ;;  %v342_v49 = vsel %vm280_vm0, %v232_v41, 0  ;;  %v701_v31 = vand.u32 4294901760, %v700_v52  ;;  %v707_v41 = vsub.f32 %v6597_v61, %v10293_v5 }
  0x3f   : > { %10290 = vst [vmem:[#allocation27_spill] sm:$0xff] %v6634_v53  ;;  %10291 = vst [vmem:[#allocation28_spill] sm:$0xff] %v6637_v36  ;;  %v6664_v52 = vand.u32 4294901760, %v342_v49  ;;  %v10294_v5 = vand.u32 4294901760, %v6615_v4 }
  0x40   : > { %5070 = vmatpush3.xpose.msra.mxu0 %v6524_v63  ;;  %5106 = vmatpush3.xpose.msra.mxu1 %v687_v50  ;;  %v6650_v50 = vsub.f32 %v282_v13, %v6629_v12  ;;  %v6652_v63 = vand.u32 4294901760, %v297_v34 }
  0x41   : > { %5071 = vmatprep.subr.mxu0 %v6532_v39  ;;  %5107 = vmatprep.subr.mxu1 %v806_v2  ;;  %v820_v2 = vand.u32 4294901760, %v819_v29  ;;  %v285_v39 = vsel %vm280_vm0, %v213_v37, 0  ;;  %v6668_v29 = vsub.f32 %v300_v42, %v6632_v14  ;;  %v826_v37 = vsub.f32 %v6615_v4, %v10294_v5 }
  0x42   : > { %5121 = vmatprep.mubr.f32.mxu1 %v6629_v12  ;;  %v6659_v28 = vand.u32 4294901760, %v6650_v50  ;;  %v6681_v19 = vand.u32 4294901760, %v285_v39  ;;  %v708_v42 = vand.u32 4294901760, %v707_v41 }
  0x43   : > { %v827_v41 = vand.u32 4294901760, %v826_v37  ;;  %v10302_v37 = vand.u32 4294901760, %v6668_v29 }
  0x44   : > { %5072 = vmatpush3.xpose.msra.mxu0 %v6557_v32  ;;  %5108 = vmatpush3.xpose.msra.mxu1 %v694_v60  ;;  %v585_v13 = vsub.f32 %v6650_v50, %v6659_v28  ;;  %v6679_v32 = vsub.f32 %v345_v7, %v6634_v53  ;;  %10295 = vst [vmem:[#allocation30_spill] sm:$0xff] %v6681_v19  ;;  %v6690_v60 = vand.u32 4294901760, %v294_v46 }
  0x45   : > { %5073 = vmatprep.subr.mxu0 %v6581_v47  ;;  %5109 = vmatprep.subr.mxu1 %v813_v48  ;;  %v288_v47 = vsel %vm280_vm0, %v214_v6, 0  ;;  %v10297_v48 = vand.u32 4294901760, %v6637_v36  ;;  %v6694_v7 = vsub.f32 %v297_v34, %v6652_v63  ;;  %v10299_v6 = vand.u32 4294901760, %v6644_v44 }
  0x46   : > { %v6683_v61 = vand.u32 4294901760, %v585_v13  ;;  %v6707_v4 = vsub.f32 %v285_v39, %v6681_v19  ;;  %v6709_v34 = vand.u32 4294901760, %v288_v47  ;;  %v6718_v13 = vsub.f32 %v294_v46, %v6690_v60 }
  0x47   : > { %v714_v5 = vsub.f32 %v6637_v36, %v10297_v48  ;;  %10298 = vst [vmem:[#allocation32_spill] sm:$0xff] %v6694_v7  ;;  %v6703_v48 = vsub.f32 %v342_v49, %v6664_v52 }
  0x48   : > { %10296 = vst [vmem:[#allocation31_spill] sm:$0xff] %v6683_v61  ;;  %5074 = vmatpush3.xpose.msra.mxu0 %v6604_v55  ;;  %5110 = vmatpush3.xpose.msra.mxu1 %v701_v31  ;;  %v833_v31 = vsub.f32 %v6644_v44, %v10299_v6  ;;  %10300 = vst [vmem:[#allocation33_spill] sm:$0xff] %v6707_v4  ;;  %v721_v6 = vsub.f32 %v6668_v29, %v10302_v37  ;;  %v10304_v55 = vand.u32 4294901760, %v6679_v32 }
  0x49   : > { %5075 = vmatprep.subr.mxu0 %v6610_v18  ;;  %5111 = vmatprep.subr.mxu1 %v820_v2  ;;  %10301 = vst [vmem:[#allocation34_spill] sm:$0xff] %v6709_v34  ;;  %v291_v18 = vsel %vm280_vm0, %v215_v17, 0  ;;  %v715_v2 = vand.u32 4294901760, %v714_v5  ;;  %10303 = vst [vmem:[#allocation35_spill] sm:$0xff] %v6718_v13  ;;  %v6726_v5 = vand.u32 4294901760, %v6707_v4  ;;  %v6729_v37 = vsub.f32 %v288_v47, %v6709_v34 }
  0x4a   : > { %5081 = vmatprep.mubr.f32.mxu0 %v6683_v61  ;;  %v834_v39 = vand.u32 4294901760, %v833_v31  ;;  %v840_v17 = vsub.f32 %v6679_v32, %v10304_v55  ;;  %v6731_v49 = vand.u32 4294901760, %v291_v18  ;;  %v722_v46 = vand.u32 4294901760, %v721_v6 }
  0x4b   : > { %10305 = vst [vmem:[#allocation36_spill] sm:$0xff] %v6726_v5  ;;  %10306 = vst [vmem:[#allocation37_spill] sm:$0xff] %v6729_v37  ;;  %v9938_v55 = vand.u32 4294901760, %v6718_v13 }
  0x4c   : > { %5076 = vmatpush3.xpose.msra.mxu0 %v6632_v14  ;;  %5112 = vmatpush3.xpose.msra.mxu1 %v708_v42  ;;  %10307 = vst [vmem:[#allocation38_spill] sm:$0xff] %v6731_v49  ;;  %v841_v42 = vand.u32 4294901760, %v840_v17  ;;  %v596_v14 = vsub.f32 %v6707_v4, %v6726_v5  ;;  %v6748_v6 = vsub.f32 %v291_v18, %v6731_v49 }
  0x4d   : > { %5077 = vmatprep.subr.mxu0 %v6634_v53  ;;  %5113 = vmatprep.subr.mxu1 %v827_v41  ;;  %v10308_v41 = vand.u32 4294901760, %v6694_v7  ;;  %v10309_v53 = vand.u32 4294901760, %v6703_v48 }
  0x4e   : > { %10311 = vst [vmem:[#allocation40_spill] sm:$0xff] %v6748_v6  ;;  %v6755_v17 = vand.u32 4294901760, %v596_v14  ;;  %v6760_v18 = vand.u32 4294901760, %v6748_v6 }
  0x4f   : > { %v728_v31 = vsub.f32 %v6694_v7, %v10308_v41  ;;  %v847_v47 = vsub.f32 %v6703_v48, %v10309_v53 }
  0x50   : > { %5078 = vmatpush3.xpose.msra.mxu0 %v6652_v63  ;;  %5114 = vmatpush3.xpose.msra.mxu1 %v715_v2  ;;  %v6745_v2 = vand.u32 4294901760, %v6729_v37  ;;  %10312 = vst [vmem:[#allocation41_spill] sm:$0xff] %v6755_v17  ;;  %10313 = vst [vmem:[#allocation42_spill] sm:$0xff] %v6760_v18  ;;  %v618_v14 = vsub.f32 %v6748_v6, %v6760_v18 }
  0x51   : > { %5079 = vmatprep.subr.mxu0 %v6664_v52  ;;  %5115 = vmatprep.subr.mxu1 %v834_v39  ;;  %v729_v41 = vand.u32 4294901760, %v728_v31  ;;  %v735_v39 = vsub.f32 %v6718_v13, %v9938_v55  ;;  %v848_v53 = vand.u32 4294901760, %v847_v47  ;;  %v10317_v47 = vld [vmem:[#allocation13_spill] sm:$0xff]  ;;  %v10323_v55 = vld [vmem:[#allocation18_spill] sm:$0xff] }
  0x52   : > { %10310 = vst [vmem:[#allocation39_spill] sm:$0xff] %v6745_v2  ;;  %v607_v5 = vsub.f32 %v6729_v37, %v6745_v2  ;;  %v6775_v31 = vand.u32 4294901760, %v618_v14  ;;  %v10322_v14 = vld [vmem:[#allocation8_spill] sm:$0xff] }
  0x54   : > { %5080 = vmatpush3.xpose.msra.mxu0 %v6690_v60  ;;  %5116 = vmatpush3.xpose.msra.mxu1 %v722_v46  ;;  %v736_v46 = vand.u32 4294901760, %v735_v39  ;;  %10315 = vst [vmem:[#allocation44_spill] sm:$0xff] %v6775_v31  ;;  %v10319_v39 = vld [vmem:[#allocation15_spill] sm:$0xff] }
  0x55   : > { %5117 = vmatprep.subr.mxu1 %v841_v42  ;;  %5129 = vmatprep.subr.mxu0 %v6286_v21  ;;  %v6766_v42 = vand.u32 4294901760, %v607_v5  ;;  %v10316_v5 = vld [vmem:[#allocation5_spill] sm:$0xff] }
  0x57   : > { %5082 = vmatmul.mubr.f32.vlgmr.msra.gmra.mxu0 %v6683_v61  ;;  %10314 = vst [vmem:[#allocation43_spill] sm:$0xff] %v6766_v42  ;;  %v10327_v61 = vld [vmem:[#allocation22_spill] sm:$0xff] }
  0x58   : > { %5118 = vmatpush3.xpose.msra.mxu1 %v729_v41  ;;  %5130 = vmatpush3.xpose.msra.mxu0 %v6291_v23  ;;  %v10318_v41 = vld [vmem:[#allocation6_spill] sm:$0xff] }
  0x59   : > { %5119 = vmatprep.subr.mxu1 %v848_v53  ;;  %5131 = vmatprep.subr.mxu0 %v6295_v24  ;;  %v10320_v53 = vld [vmem:[#allocation7_spill] sm:$0xff] }
  0x5a   : > { %5083 = vmatprep.mubr.f32.mxu0 %v6755_v17 }
  0x5b   : > { %5084 = vmatmul.mubr.f32.gmra.mxu0 %v6755_v17  ;;  %v10326_v17 = vld [vmem:[#allocation10_spill] sm:$0xff] }
  0x5c   : > { %5120 = vmatpush3.xpose.msra.mxu1 %v736_v46  ;;  %5132 = vmatpush3.xpose.msra.mxu0 %v6299_v26  ;;  %v10321_v46 = vld [vmem:[#allocation17_spill] sm:$0xff] }
  0x5d   : > { %5133 = vmatprep.subr.mxu0 %v6315_v35  ;;  %5169 = vmatprep.subr.mxu1 %v6261_v9 }
  0x5e   : > { %5085 = vmatprep.mubr.f32.mxu0 %v6766_v42 }
  0x5f   : > { %5122 = vmatmul.mubr.f32.vlgmr.msra.gmra.mxu1 %v6629_v12  ;;  %5086 = vmatmul.mubr.f32.gmra.mxu0 %v6766_v42  ;;  %v10325_v42 = vld [vmem:[#allocation20_spill] sm:$0xff] }
  0x60   : > { %5134 = vmatpush3.xpose.msra.mxu0 %v6328_v40  ;;  %5170 = vmatpush3.xpose.msra.mxu1 %v6263_v10 }
  0x61   : > { %5135 = vmatprep.subr.mxu0 %v6358_v56  ;;  %5171 = vmatprep.subr.mxu1 %v6265_v11 }
  0x62   : > { %5123 = vmatprep.mubr.f32.mxu1 %v6681_v19  ;;  %5087 = vmatprep.mubr.f32.mxu0 %v6775_v31 }
  0x63   : > { %5124 = vmatmul.mubr.f32.gmra.mxu1 %v6681_v19  ;;  %5088 = vmatmul.mubr.f32.gmra.mxu0 %v6775_v31  ;;  %v10324_v31 = vld [vmem:[#allocation9_spill] sm:$0xff]  ;;  %v10330_v19 = vld [vmem:[#allocation12_spill] sm:$0xff] }
  0x64   : > { %5136 = vmatpush3.xpose.msra.mxu0 %v6362_v58  ;;  %5172 = vmatpush3.xpose.msra.mxu1 %v6274_v15 }
  0x65   : > { %5137 = vmatprep.subr.mxu0 %v6375_v0  ;;  %5173 = vmatprep.subr.mxu1 %v6283_v20 }
  0x66   : > { %5125 = vmatprep.mubr.f32.mxu1 %v6709_v34  ;;  %5161 = vmatprep.mubr.f32.mxu0 %v6650_v50 }
  0x67   : > { %5126 = vmatmul.mubr.f32.gmra.mxu1 %v6709_v34  ;;  %v10329_v34 = vld [vmem:[#allocation25_spill] sm:$0xff] }
  0x68   : > { %5138 = vmatpush3.xpose.msra.mxu0 %v6388_v8  ;;  %5174 = vmatpush3.xpose.msra.mxu1 %v6288_v22 }
  0x69   : > { %5139 = vmatprep.subr.mxu0 %v6410_v27  ;;  %5175 = vmatprep.subr.mxu1 %v6307_v30 }
  0x6a   : > { %5127 = vmatprep.mubr.f32.mxu1 %v6731_v49 }
  0x6b   : > { %5128 = vmatmul.mubr.f32.gmra.mxu1 %v6731_v49  ;;  %v10328_v49 = vld [vmem:[#allocation11_spill] sm:$0xff] }
  0x6c   : > { %5140 = vmatpush3.xpose.msra.mxu0 %v6417_v38  ;;  %5176 = vmatpush3.xpose.msra.mxu1 %v6311_v33 }
  0x6d   : > { %5141 = vmatprep.subr.mxu0 %v6434_v51  ;;  %5177 = vmatprep.subr.mxu1 %v6337_v43 }
  0x6e   : > { %5201 = vmatprep.mubr.f32.mxu1 %v6659_v28 }
  0x70   : > { %5142 = vmatpush3.xpose.msra.mxu0 %v6443_v57  ;;  %5178 = vmatpush3.xpose.msra.mxu1 %v6352_v54 }
  0x71   : > { %5143 = vmatprep.subr.mxu0 %v6453_v1  ;;  %5179 = vmatprep.subr.mxu1 %v6371_v62 }
  0x74   : > { %5144 = vmatpush3.xpose.msra.mxu0 %v6470_v45  ;;  %5180 = vmatpush3.xpose.msra.mxu1 %v6379_v3 }
  0x75   : > { %5145 = vmatprep.subr.mxu0 %v6482_v59  ;;  %5181 = vmatprep.subr.mxu1 %v6397_v16 }
  0x78   : > { %5146 = vmatpush3.xpose.msra.mxu0 %v6504_v25  ;;  %5182 = vmatpush3.xpose.msra.mxu1 %v10316_v5 }
  0x79   : > { %5147 = vmatprep.subr.mxu0 %v10317_v47  ;;  %5183 = vmatprep.subr.mxu1 %v10318_v41 }
  0x7c   : > { %5148 = vmatpush3.xpose.msra.mxu0 %v10319_v39  ;;  %5184 = vmatpush3.xpose.msra.mxu1 %v10320_v53 }
  0x7d   : > { %5149 = vmatprep.subr.mxu0 %v10321_v46  ;;  %5185 = vmatprep.subr.mxu1 %v10322_v14  ;;  %v10331_v46 = vld [vmem:[#allocation14_spill] sm:$0xff] }
  0x80   : > { %5150 = vmatpush3.xpose.msra.mxu0 %v10323_v55  ;;  %5186 = vmatpush3.xpose.msra.mxu1 %v10324_v31  ;;  %v10332_v55 = vld [vmem:[#allocation16_spill] sm:$0xff] }
  0x81   : > { %5151 = vmatprep.subr.mxu0 %v10325_v42  ;;  %5187 = vmatprep.subr.mxu1 %v10326_v17  ;;  %v10333_v42 = vld [vmem:[#allocation19_spill] sm:$0xff] }
  0x84   : > { %5152 = vmatpush3.xpose.msra.mxu0 %v10327_v61  ;;  %5188 = vmatpush3.xpose.msra.mxu1 %v10328_v49  ;;  %v10334_v61 = vld [vmem:[#allocation21_spill] sm:$0xff] }
  0x85   : > { %5153 = vmatprep.subr.mxu0 %v10329_v34  ;;  %5189 = vmatprep.subr.mxu1 %v10330_v19  ;;  %v10335_v34 = vld [vmem:[#allocation23_spill] sm:$0xff] }
  0x88   : > { %5154 = vmatpush3.xpose.msra.mxu0 %v6637_v36  ;;  %5190 = vmatpush3.xpose.msra.mxu1 %v10331_v46  ;;  %v10336_v36 = vld [vmem:[#allocation24_spill] sm:$0xff] }
  0x89   : > { %5155 = vmatprep.subr.mxu0 %v6644_v44  ;;  %5191 = vmatprep.subr.mxu1 %v10332_v55  ;;  %v10337_v44 = vld [vmem:[#allocation26_spill] sm:$0xff]  ;;  %v10338_v55 = vld [vmem:[#allocation27_spill] sm:$0xff] }
  0x8c   : > { %5156 = vmatpush3.xpose.msra.mxu0 %v6668_v29  ;;  %5192 = vmatpush3.xpose.msra.mxu1 %v10333_v42  ;;  %v10339_v42 = vand.u32 4294901760, %v6286_v21  ;;  %v10342_v21 = vand.u32 4294901760, %v6299_v26  ;;  %v10346_v26 = vand.u32 4294901760, %v6358_v56  ;;  %v10359_v56 = vand.u32 4294901760, %v10319_v39 }
  0x8d   : > { %5157 = vmatprep.subr.mxu0 %v6679_v32  ;;  %5193 = vmatprep.subr.mxu1 %v10334_v61  ;;  %v10375_v39 = vand.u32 4294901760, %v6668_v29  ;;  %v261_v29 = vld [vmem:[%s9866_s1 + $0x168] sm:$0xff] }
  0x90   : > { %5158 = vmatpush3.xpose.msra.mxu0 %v6694_v7  ;;  %5194 = vmatpush3.xpose.msra.mxu1 %v10335_v34  ;;  %v10340_v7 = vand.u32 4294901760, %v6291_v23  ;;  %v10344_v23 = vand.u32 4294901760, %v6328_v40  ;;  %v10355_v40 = vand.u32 4294901760, %v6470_v45  ;;  %v263_v45 = vld [vmem:[%s9866_s1 + $0x178] sm:$0xff] }
  0x91   : > { %5159 = vmatprep.subr.mxu0 %v6703_v48  ;;  %5195 = vmatprep.subr.mxu1 %v10336_v36 }
  0x94   : > { %5160 = vmatpush3.xpose.msra.mxu0 %v6718_v13  ;;  %5196 = vmatpush3.xpose.msra.mxu1 %v10337_v44  ;;  %v10341_v13 = vand.u32 4294901760, %v6295_v24  ;;  %v10345_v24 = vld [vmem:[#allocation36_spill] sm:$0xff] }
  0x95   : > { %5197 = vmatprep.subr.mxu1 %v10338_v55  ;;  %5209 = vmatprep.subr.mxu0 %v10339_v42  ;;  %v10343_v42 = vand.u32 4294901760, %v6315_v35  ;;  %v10352_v35 = vand.u32 4294901760, %v6434_v51  ;;  %v10368_v51 = vld [vmem:[#allocation25_spill] sm:$0xff] }
  0x97   : > { %5162 = vmatmul.mubr.f32.vlgmr.msra.gmra.mxu0 %v6650_v50 }
  0x98   : > { %5198 = vmatpush3.xpose.msra.mxu1 %v6652_v63  ;;  %5210 = vmatpush3.xpose.msra.mxu0 %v10340_v7 }
  0x99   : > { %5163 = vmatprep.mubr.f32.mxu0 %v6707_v4  ;;  %5199 = vmatprep.subr.mxu1 %v6664_v52 }
  0x9a   : > { %5211 = vmatprep.subr.mxu0 %v10341_v13  ;;  %v278_v13 = vld [vmem:[%s9866_s1 + $0x1f0] sm:$0xff] }
  0x9b   : > { %5164 = vmatmul.mubr.f32.gmra.mxu0 %v6707_v4 }
  0x9c   : > { %5200 = vmatpush3.xpose.msra.mxu1 %v6690_v60  ;;  %5212 = vmatpush3.xpose.msra.mxu0 %v10342_v21  ;;  %v277_v21 = vld [vmem:[%s9866_s1 + $0x1e8] sm:$0xff] }
  0x9d   : > { %5165 = vmatprep.mubr.f32.mxu0 %v6729_v37  ;;  %5213 = vmatprep.subr.mxu0 %v10343_v42  ;;  %v10377_v42 = vand.u32 4294901760, %v6679_v32 }
  0x9e   : > { %5249 = vmatprep.subr.mxu1 %v6261_v9  ;;  %v10347_v9 = vand.u32 4294901760, %v6362_v58  ;;  %v10360_v58 = vld [vmem:[#allocation17_spill] sm:$0xff] }
  0x9f   : > { %5166 = vmatmul.mubr.f32.gmra.mxu0 %v6729_v37  ;;  %5202 = vmatmul.mubr.f32.vlgmr.msra.gmra.mxu1 %v6659_v28 }
  0xa0   : > { %5214 = vmatpush3.xpose.msra.mxu0 %v10344_v23  ;;  %5250 = vmatpush3.xpose.msra.mxu1 %v6263_v10  ;;  %v10348_v10 = vand.u32 4294901760, %v6375_v0  ;;  %v10362_v0 = vld [vmem:[#allocation18_spill] sm:$0xff] }
  0xa1   : > { %5167 = vmatprep.mubr.f32.mxu0 %v6748_v6  ;;  %5203 = vmatprep.mubr.f32.mxu1 %v10345_v24 }
  0xa2   : > { %5215 = vmatprep.subr.mxu0 %v10346_v26  ;;  %5251 = vmatprep.subr.mxu1 %v6265_v11  ;;  %v10349_v11 = vand.u32 4294901760, %v6388_v8  ;;  %v10364_v8 = vld [vmem:[#allocation20_spill] sm:$0xff] }
  0xa3   : > { %5168 = vmatmul.mubr.f32.gmra.mxu0 %v6748_v6  ;;  %5204 = vmatmul.mubr.f32.gmra.mxu1 %v10345_v24 }
  0xa4   : > { %5216 = vmatpush3.xpose.msra.mxu0 %v10347_v9  ;;  %5252 = vmatpush3.xpose.msra.mxu1 %v6274_v15  ;;  %v10350_v15 = vand.u32 4294901760, %v6410_v27  ;;  %v10366_v27 = vld [vmem:[#allocation22_spill] sm:$0xff] }
  0xa5   : > { %5205 = vmatprep.mubr.f32.mxu1 %v6745_v2  ;;  %5217 = vmatprep.subr.mxu0 %v10348_v10  ;;  %v477_v10 = vsel %vm280_vm0, %v277_v21, 0 }
  0xa6   : > { %5253 = vmatprep.subr.mxu1 %v6283_v20  ;;  %5241 = vmatprep.mubr.f32.mxu0 %v6629_v12  ;;  %v10351_v20 = vand.u32 4294901760, %v6417_v38  ;;  %v10367_v38 = vand.u32 4294901760, %v10366_v27 }
  0xa7   : > { %5206 = vmatmul.mubr.f32.gmra.mxu1 %v6745_v2 }
  0xa8   : > { %5218 = vmatpush3.xpose.msra.mxu0 %v10349_v11  ;;  %5254 = vmatpush3.xpose.msra.mxu1 %v6288_v22  ;;  %v10353_v22 = vand.u32 4294901760, %v6443_v57  ;;  %v10369_v57 = vand.u32 4294901760, %v10368_v51  ;;  %v10378_v11 = vld [vmem:[#allocation32_spill] sm:$0xff] }
  0xa9   : > { %5207 = vmatprep.mubr.f32.mxu1 %v6760_v18  ;;  %5219 = vmatprep.subr.mxu0 %v10350_v15  ;;  %v10379_v15 = vand.u32 4294901760, %v10378_v11 }
  0xaa   : > { %5255 = vmatprep.subr.mxu1 %v6307_v30  ;;  %v10354_v30 = vand.u32 4294901760, %v6453_v1 }
  0xab   : > { %5208 = vmatmul.mubr.f32.gmra.mxu1 %v6760_v18 }
  0xac   : > { %5220 = vmatpush3.xpose.msra.mxu0 %v10351_v20  ;;  %5256 = vmatpush3.xpose.msra.mxu1 %v6311_v33  ;;  %v10356_v33 = vand.u32 4294901760, %v6482_v59  ;;  %v10370_v59 = vld [vmem:[#allocation28_spill] sm:$0xff]  ;;  %v276_v20 = vld [vmem:[%s9866_s1 + $0x1e0] sm:$0xff] }
  0xad   : > { %5221 = vmatprep.subr.mxu0 %v10352_v35  ;;  %5257 = vmatprep.subr.mxu1 %v6337_v43  ;;  %v10357_v43 = vand.u32 4294901760, %v6504_v25  ;;  %v279_v25 = vld [vmem:[%s9866_s1 + $0x1f8] sm:$0xff]  ;;  %v10371_v7 = vand.u32 4294901760, %v10370_v59  ;;  %v10380_v35 = vand.u32 4294901760, %v6703_v48  ;;  %v474_v48 = vsel %vm280_vm0, %v276_v20, 0 }
  0xae   : > { %5281 = vmatprep.mubr.f32.mxu1 %v6629_v12  ;;  %v483_v1 = vsel %vm280_vm0, %v279_v25, 0  ;;  %v259_v25 = vld [vmem:[%s9866_s1 + $0x158] sm:$0xff] }
  0xaf   : > { %v423_v59 = vsel %vm280_vm0, %v259_v25, 0 }
  0xb0   : > { %5222 = vmatpush3.xpose.msra.mxu0 %v10353_v22  ;;  %5258 = vmatpush3.xpose.msra.mxu1 %v6352_v54  ;;  %v10358_v54 = vand.u32 4294901760, %v10317_v47  ;;  %v262_v47 = vld [vmem:[%s9866_s1 + $0x170] sm:$0xff] }
  0xb1   : > { %5223 = vmatprep.subr.mxu0 %v10354_v30  ;;  %5259 = vmatprep.subr.mxu1 %v6371_v62  ;;  %v10361_v62 = vand.u32 4294901760, %v10360_v58  ;;  %v6997_v30 = vand.u32 4294901760, %v477_v10 }
  0xb4   : > { %5224 = vmatpush3.xpose.msra.mxu0 %v10355_v40  ;;  %5260 = vmatpush3.xpose.msra.mxu1 %v6379_v3  ;;  %v10363_v3 = vand.u32 4294901760, %v10362_v0 }
  0xb5   : > { %5225 = vmatprep.subr.mxu0 %v10356_v33  ;;  %5261 = vmatprep.subr.mxu1 %v6397_v16  ;;  %v10365_v16 = vand.u32 4294901760, %v10364_v8 }
  0xb8   : > { %5226 = vmatpush3.xpose.msra.mxu0 %v10357_v43  ;;  %5262 = vmatpush3.xpose.msra.mxu1 %v10316_v5  ;;  %v435_v5 = vsel %vm280_vm0, %v263_v45, 0 }
  0xb9   : > { %5227 = vmatprep.subr.mxu0 %v10358_v54  ;;  %5263 = vmatprep.subr.mxu1 %v10318_v41  ;;  %v480_v41 = vsel %vm280_vm0, %v278_v13, 0  ;;  %v10381_v54 = vld [vmem:[#allocation35_spill] sm:$0xff] }
  0xba   : > { %v6975_v26 = vand.u32 4294901760, %v480_v41 }
  0xbc   : > { %5228 = vmatpush3.xpose.msra.mxu0 %v10359_v56  ;;  %5264 = vmatpush3.xpose.msra.mxu1 %v10320_v53  ;;  %v10376_v53 = vld [vmem:[#allocation19_spill] sm:$0xff]  ;;  %v7000_v40 = vsub.f32 %v480_v41, %v6975_v26  ;;  %v10382_v56 = vand.u32 4294901760, %v10381_v54  ;;  %v273_v41 = vld [vmem:[%s9866_s1 + $0x1c8] sm:$0xff] }
  0xbd   : > { %5229 = vmatprep.subr.mxu0 %v10361_v62  ;;  %5265 = vmatprep.subr.mxu1 %v10322_v14  ;;  %v432_v14 = vsel %vm280_vm0, %v262_v47, 0  ;;  %v465_v20 = vsel %vm280_vm0, %v273_v41, 0  ;;  %v271_v41 = vld [vmem:[%s9866_s1 + $0x1b8] sm:$0xff] }
  0xbe   : > { %v6977_v9 = vand.u32 4294901760, %v432_v14  ;;  %v9965_v8 = vand.u32 4294901760, %v7000_v40  ;;  %v7116_v25 = vand.u32 4294901760, %v465_v20 }
  0xc0   : > { %5230 = vmatpush3.xpose.msra.mxu0 %v10363_v3  ;;  %5266 = vmatpush3.xpose.msra.mxu1 %v10324_v31  ;;  %v10374_v31 = vld [vmem:[#allocation16_spill] sm:$0xff]  ;;  %v7003_v33 = vsub.f32 %v432_v14, %v6977_v9  ;;  %v7021_v3 = vand.u32 4294901760, %v474_v48  ;;  %10386 = vst [vmem:[#allocation5_spill] sm:$0xff] %v7116_v25 }
  0xc1   : > { %5231 = vmatprep.subr.mxu0 %v10365_v16  ;;  %5267 = vmatprep.subr.mxu1 %v10326_v17 }
  0xc2   : > { %v9962_v51 = vand.u32 4294901760, %v7003_v33 }
  0xc4   : > { %5232 = vmatpush3.xpose.msra.mxu0 %v10367_v38  ;;  %5268 = vmatpush3.xpose.msra.mxu1 %v10328_v49  ;;  %v10372_v49 = vld [vmem:[#allocation29_spill] sm:$0xff] }
  0xc5   : > { %5233 = vmatprep.subr.mxu0 %v10369_v57  ;;  %5269 = vmatprep.subr.mxu1 %v10330_v19  ;;  %v10373_v17 = vand.u32 4294901760, %v10372_v49  ;;  %v6950_v19 = vand.u32 4294901760, %v483_v1  ;;  %v1751_v49 = vsub.f32 %v7000_v40, %v9965_v8 }
  0xc7   : > { %v6970_v23 = vsub.f32 %v483_v1, %v6950_v19  ;;  %v10383_v1 = vld [vmem:[#allocation30_spill] sm:$0xff]  ;;  %v1752_v11 = vand.u32 4294901760, %v1751_v49 }
  0xc8   : > { %5234 = vmatpush3.xpose.msra.mxu0 %v10371_v7  ;;  %5270 = vmatpush3.xpose.msra.mxu1 %v10331_v46  ;;  %v6960_v46 = vand.u32 4294901760, %v435_v5 }
  0xc9   : > { %5235 = vmatprep.subr.mxu0 %v10373_v17  ;;  %5271 = vmatprep.subr.mxu1 %v10374_v31  ;;  %v9967_v22 = vand.u32 4294901760, %v6970_v23 }
  0xca   : > { %v6984_v32 = vsub.f32 %v435_v5, %v6960_v46  ;;  %v1639_v5 = vsub.f32 %v7003_v33, %v9962_v51 }
  0xcb   : > { %v1744_v0 = vsub.f32 %v6970_v23, %v9967_v22 }
  0xcc   : > { %5236 = vmatpush3.xpose.msra.mxu0 %v10375_v39  ;;  %5272 = vmatpush3.xpose.msra.mxu1 %v10376_v53  ;;  %v9966_v58 = vand.u32 4294901760, %v6984_v32  ;;  %v7076_v53 = vand.u32 4294901760, %v423_v59 }
  0xcd   : > { %5237 = vmatprep.subr.mxu0 %v10377_v42  ;;  %5273 = vmatprep.subr.mxu1 %v10334_v61  ;;  %v429_v61 = vsel %vm280_vm0, %v261_v29, 0  ;;  %v1745_v13 = vand.u32 4294901760, %v1744_v0  ;;  %v10384_v42 = vld [vmem:[#allocation34_spill] sm:$0xff] }
  0xce   : > { %v7005_v43 = vand.u32 4294901760, %v429_v61  ;;  %v1632_v57 = vsub.f32 %v6984_v32, %v9966_v58  ;;  %v7107_v54 = vsub.f32 %v423_v59, %v7076_v53 }
  0xd0   : > { %5238 = vmatpush3.xpose.msra.mxu0 %v10379_v15  ;;  %5274 = vmatpush3.xpose.msra.mxu1 %v10335_v34  ;;  %v260_v34 = vld [vmem:[%s9866_s1 + $0x160] sm:$0xff]  ;;  %v7036_v27 = vsub.f32 %v429_v61, %v7005_v43  ;;  %v1633_v39 = vand.u32 4294901760, %v1632_v57 }
  0xd1   : > { %5239 = vmatprep.subr.mxu0 %v10380_v35  ;;  %5275 = vmatprep.subr.mxu1 %v10336_v36  ;;  %v275_v36 = vld [vmem:[%s9866_s1 + $0x1d8] sm:$0xff]  ;;  %v426_v62 = vsel %vm280_vm0, %v260_v34, 0  ;;  %v1640_v35 = vand.u32 4294901760, %v1639_v5  ;;  %v256_v57 = vld [vmem:[%s9866_s1 + $0x140] sm:$0xff] }
  0xd2   : > { %v471_v16 = vsel %vm280_vm0, %v275_v36, 0  ;;  %v7038_v38 = vand.u32 4294901760, %v426_v62  ;;  %v9959_v47 = vand.u32 4294901760, %v7036_v27 }
  0xd3   : > { %v7048_v45 = vand.u32 4294901760, %v471_v16 }
  0xd4   : > { %5240 = vmatpush3.xpose.msra.mxu0 %v10382_v56  ;;  %5276 = vmatpush3.xpose.msra.mxu1 %v10337_v44  ;;  %v7026_v44 = vsub.f32 %v477_v10, %v6997_v30  ;;  %v7065_v31 = vsub.f32 %v426_v62, %v7038_v38  ;;  %v272_v10 = vld [vmem:[%s9866_s1 + $0x1c0] sm:$0xff]  ;;  %v1646_v34 = vsub.f32 %v7036_v27, %v9959_v47 }
  0xd5   : > { %5277 = vmatprep.subr.mxu1 %v10338_v55  ;;  %5289 = vmatprep.subr.mxu0 %v6950_v19  ;;  %v274_v55 = vld [vmem:[%s9866_s1 + $0x1d0] sm:$0xff]  ;;  %v7084_v29 = vsub.f32 %v471_v16, %v7048_v45  ;;  %v462_v62 = vsel %vm280_vm0, %v272_v10, 0  ;;  %v10385_v16 = vld [vmem:[#allocation38_spill] sm:$0xff]  ;;  %v414_v10 = vsel %vm280_vm0, %v256_v57, 0  ;;  %v10389_v57 = vld [vmem:[#allocation31_spill] sm:$0xff] }
  0xd6   : > { %v468_v7 = vsel %vm280_vm0, %v274_v55, 0  ;;  %v9961_v17 = vand.u32 4294901760, %v7026_v44  ;;  %v9957_v36 = vand.u32 4294901760, %v7065_v31  ;;  %v7133_v5 = vand.u32 4294901760, %v462_v62 }
  0xd7   : > { %5242 = vmatmul.mubr.f32.vlgmr.msra.gmra.mxu0 %v6629_v12  ;;  %v7078_v14 = vand.u32 4294901760, %v468_v7  ;;  %v9960_v55 = vand.u32 4294901760, %v7084_v29  ;;  %v7162_v47 = vand.u32 4294901760, %v414_v10 }
  0xd8   : > { %5278 = vmatpush3.xpose.msra.mxu1 %v6652_v63  ;;  %5290 = vmatpush3.xpose.msra.mxu0 %v6960_v46  ;;  %v258_v63 = vld [vmem:[%s9866_s1 + $0x150] sm:$0xff]  ;;  %v1758_v15 = vsub.f32 %v7026_v44, %v9961_v17  ;;  %10388 = vst [vmem:[#allocation6_spill] sm:$0xff] %v7133_v5 }
  0xd9   : > { %5243 = vmatprep.mubr.f32.mxu0 %v10383_v1  ;;  %5279 = vmatprep.subr.mxu1 %v6664_v52  ;;  %v7061_v52 = vsub.f32 %v474_v48, %v7021_v3  ;;  %v420_v21 = vsel %vm280_vm0, %v258_v63, 0  ;;  %v7112_v0 = vsub.f32 %v468_v7, %v7078_v14  ;;  %v1647_v63 = vand.u32 4294901760, %v1646_v34  ;;  %10390 = vst [vmem:[#allocation15_spill] sm:$0xff] %v7162_v47 }
  0xda   : > { %5291 = vmatprep.subr.mxu0 %v6975_v26  ;;  %v7102_v48 = vand.u32 4294901760, %v420_v21  ;;  %v1759_v59 = vand.u32 4294901760, %v1758_v15  ;;  %v7151_v15 = vsub.f32 %v465_v20, %v7116_v25  ;;  %v459_v34 = vsel %vm280_vm0, %v271_v41, 0 }
  0xdb   : > { %5244 = vmatmul.mubr.f32.gmra.mxu0 %v10383_v1  ;;  %v9958_v61 = vand.u32 4294901760, %v7061_v52  ;;  %v7180_v51 = vand.u32 4294901760, %v459_v34 }
  0xdc   : > { %5280 = vmatpush3.xpose.msra.mxu1 %v6690_v60  ;;  %5292 = vmatpush3.xpose.msra.mxu0 %v6977_v9  ;;  %v257_v60 = vld [vmem:[%s9866_s1 + $0x148] sm:$0xff] }
  0xdd   : > { %5245 = vmatprep.mubr.f32.mxu0 %v10384_v42  ;;  %5293 = vmatprep.subr.mxu0 %v6997_v30  ;;  %v417_v56 = vsel %vm280_vm0, %v257_v60, 0  ;;  %v1765_v7 = vsub.f32 %v7061_v52, %v9958_v61  ;;  %v9963_v60 = vand.u32 4294901760, %v7107_v54  ;;  %10391 = vst [vmem:[#allocation7_spill] sm:$0xff] %v7180_v51  ;;  %v7211_v8 = vsub.f32 %v459_v34, %v7180_v51 }
  0xde   : > { %5329 = vmatprep.subr.mxu1 %v1745_v13  ;;  %v7129_v13 = vsub.f32 %v420_v21, %v7102_v48  ;;  %v7131_v49 = vand.u32 4294901760, %v417_v56  ;;  %v9964_v21 = vand.u32 4294901760, %v7112_v0 }
  0xdf   : > { %5246 = vmatmul.mubr.f32.gmra.mxu0 %v10384_v42  ;;  %5282 = vmatmul.mubr.f32.vlgmr.msra.gmra.mxu1 %v6629_v12  ;;  %10394 = vst [vmem:[#allocation10_spill] sm:$0xff] %v7211_v8 }
  0xe0   : > { %5294 = vmatpush3.xpose.msra.mxu0 %v7005_v43  ;;  %5330 = vmatpush3.xpose.msra.mxu1 %v1633_v39  ;;  %10387 = vst [vmem:[#allocation13_spill] sm:$0xff] %v7131_v49  ;;  %v1653_v39 = vsub.f32 %v7065_v31, %v9957_v36  ;;  %v255_v36 = vld [vmem:[%s9866_s1 + $0x138] sm:$0xff]  ;;  %v7160_v61 = vsub.f32 %v417_v56, %v7131_v49  ;;  %v9968_v20 = vand.u32 4294901760, %v7129_v13 }
  0xe1   : > { %5247 = vmatprep.mubr.f32.mxu0 %v10385_v16  ;;  %5283 = vmatprep.mubr.f32.mxu1 %v10383_v1  ;;  %v1660_v56 = vsub.f32 %v7107_v54, %v9963_v60  ;;  %v254_v60 = vld [vmem:[%s9866_s1 + $0x130] sm:$0xff] }
  0xe2   : > { %5295 = vmatprep.subr.mxu0 %v7021_v3  ;;  %5331 = vmatprep.subr.mxu1 %v1752_v11  ;;  %v1772_v11 = vsub.f32 %v7084_v29, %v9960_v55  ;;  %v1654_v41 = vand.u32 4294901760, %v1653_v39  ;;  %v1779_v55 = vsub.f32 %v7112_v0, %v9964_v21  ;;  %v7190_v21 = vsub.f32 %v414_v10, %v7162_v47 }
  0xe3   : > { %5248 = vmatmul.mubr.f32.gmra.mxu0 %v10385_v16  ;;  %5284 = vmatmul.mubr.f32.gmra.mxu1 %v10383_v1 }
  0xe4   : > { %5296 = vmatpush3.xpose.msra.mxu0 %v7038_v38  ;;  %5332 = vmatpush3.xpose.msra.mxu1 %v1640_v35  ;;  %v1766_v35 = vand.u32 4294901760, %v1765_v7  ;;  %v7169_v7 = vsub.f32 %v462_v62, %v7133_v5  ;;  %v1773_v17 = vand.u32 4294901760, %v1772_v11  ;;  %v9969_v62 = vand.u32 4294901760, %v7151_v15 }
  0xe5   : > { %5285 = vmatprep.mubr.f32.mxu1 %v10384_v42  ;;  %5297 = vmatprep.subr.mxu0 %v7048_v45  ;;  %v1667_v11 = vsub.f32 %v7129_v13, %v9968_v20  ;;  %v1780_v58 = vand.u32 4294901760, %v1779_v55  ;;  %v253_v55 = vld [vmem:[%s9866_s1 + $0x128] sm:$0xff] }
  0xe6   : > { %5333 = vmatprep.subr.mxu1 %v1759_v59  ;;  %5321 = vmatprep.mubr.f32.mxu0 %v10389_v57  ;;  %v270_v59 = vld [vmem:[%s9866_s1 + $0x1b0] sm:$0xff]  ;;  %v1786_v10 = vsub.f32 %v7151_v15, %v9969_v62  ;;  %v10395_v62 = vand.u32 4294901760, %v7160_v61  ;;  %v10396_v34 = vand.u32 4294901760, %v7169_v7 }
  0xe7   : > { %5286 = vmatmul.mubr.f32.gmra.mxu1 %v10384_v42  ;;  %v456_v39 = vsel %vm280_vm0, %v270_v59, 0  ;;  %v1661_v59 = vand.u32 4294901760, %v1660_v56  ;;  %v1668_v56 = vand.u32 4294901760, %v1667_v11  ;;  %v405_v11 = vsel %vm280_vm0, %v253_v55, 0 }
  0xe8   : > { %5298 = vmatpush3.xpose.msra.mxu0 %v7076_v53  ;;  %5334 = vmatpush3.xpose.msra.mxu1 %v1647_v63  ;;  %v411_v63 = vsel %vm280_vm0, %v255_v36, 0  ;;  %v7207_v20 = vand.u32 4294901760, %v456_v39  ;;  %v408_v36 = vsel %vm280_vm0, %v254_v60, 0  ;;  %v1674_v60 = vsub.f32 %v7160_v61, %v10395_v62 }
  0xe9   : > { %5287 = vmatprep.mubr.f32.mxu1 %v10385_v16  ;;  %5299 = vmatprep.subr.mxu0 %v7078_v14  ;;  %v7201_v22 = vand.u32 4294901760, %v411_v63  ;;  %v1793_v18 = vsub.f32 %v7169_v7, %v10396_v34  ;;  %v1787_v62 = vand.u32 4294901760, %v1786_v10  ;;  %v7252_v10 = vand.u32 4294901760, %v405_v11 }
  0xea   : > { %5335 = vmatprep.subr.mxu1 %v1766_v35  ;;  %v269_v35 = vld [vmem:[%s9866_s1 + $0x1a8] sm:$0xff]  ;;  %10393 = vst [vmem:[#allocation9_spill] sm:$0xff] %v7207_v20  ;;  %v7241_v2 = vsub.f32 %v456_v39, %v7207_v20  ;;  %v1675_v55 = vand.u32 4294901760, %v1674_v60  ;;  %v10404_v60 = vand.u32 4294901760, %v7211_v8 }
  0xeb   : > { %5288 = vmatmul.mubr.f32.gmra.mxu1 %v10385_v16  ;;  %10392 = vst [vmem:[#allocation8_spill] sm:$0xff] %v7201_v22  ;;  %v7230_v24 = vsub.f32 %v411_v63, %v7201_v22  ;;  %v252_v63 = vld [vmem:[%s9866_s1 + $0x120] sm:$0xff]  ;;  %10401 = vst [vmem:[#allocation21_spill] sm:$0xff] %v7252_v10  ;;  %v1794_v39 = vand.u32 4294901760, %v1793_v18 }
  0xec   : > { %5300 = vmatpush3.xpose.msra.mxu0 %v7102_v48  ;;  %5336 = vmatpush3.xpose.msra.mxu1 %v1654_v41  ;;  %v268_v41 = vld [vmem:[%s9866_s1 + $0x1a0] sm:$0xff]  ;;  %10399 = vst [vmem:[#allocation14_spill] sm:$0xff] %v7241_v2 }
  0xed   : > { %5301 = vmatprep.subr.mxu0 %v7116_v25  ;;  %5337 = vmatprep.subr.mxu1 %v1773_v17  ;;  %v453_v17 = vsel %vm280_vm0, %v269_v35, 0  ;;  %v7232_v35 = vand.u32 4294901760, %v408_v36  ;;  %v450_v6 = vsel %vm280_vm0, %v268_v41, 0  ;;  %v10400_v41 = vand.u32 4294901760, %v7190_v21 }
  0xee   : > { %5361 = vmatprep.mubr.f32.mxu1 %v6629_v12  ;;  %v7237_v37 = vand.u32 4294901760, %v453_v17  ;;  %v7254_v4 = vand.u32 4294901760, %v450_v6 }
  0xef   : > { %10397 = vst [vmem:[#allocation11_spill] sm:$0xff] %v7232_v35  ;;  %v7258_v34 = vsub.f32 %v408_v36, %v7232_v35  ;;  %v251_v36 = vld [vmem:[%s9866_s1 + $0x118] sm:$0xff] }
  0xf0   : > { %5302 = vmatpush3.xpose.msra.mxu0 %v7131_v49  ;;  %5338 = vmatpush3.xpose.msra.mxu1 %v1661_v59  ;;  %10398 = vst [vmem:[#allocation12_spill] sm:$0xff] %v7237_v37  ;;  %v267_v59 = vld [vmem:[%s9866_s1 + $0x198] sm:$0xff]  ;;  %10402 = vst [vmem:[#allocation23_spill] sm:$0xff] %v7254_v4  ;;  %v402_v49 = vsel %vm280_vm0, %v252_v63, 0  ;;  %v7269_v18 = vsub.f32 %v453_v17, %v7237_v37 }
  0xf1   : > { %5303 = vmatprep.subr.mxu0 %v7133_v5  ;;  %5339 = vmatprep.subr.mxu1 %v1780_v58  ;;  %v1681_v58 = vsub.f32 %v7190_v21, %v10400_v41  ;;  %10403 = vst [vmem:[#allocation24_spill] sm:$0xff] %v7258_v34  ;;  %v9995_v5 = vand.u32 4294901760, %v7230_v24  ;;  %v1800_v41 = vsub.f32 %v7211_v8, %v10404_v60  ;;  %v7277_v63 = vand.u32 4294901760, %v402_v49 }
  0xf2   : > { %10405 = vst [vmem:[#allocation26_spill] sm:$0xff] %v7269_v18  ;;  %v7283_v60 = vsub.f32 %v450_v6, %v7254_v4  ;;  %v10410_v8 = vand.u32 4294901760, %v7241_v2 }
  0xf3   : > { %10407 = vst [vmem:[#allocation17_spill] sm:$0xff] %v7277_v63  ;;  %v1682_v17 = vand.u32 4294901760, %v1681_v58 }
  0xf4   : > { %5304 = vmatpush3.xpose.msra.mxu0 %v7162_v47  ;;  %5340 = vmatpush3.xpose.msra.mxu1 %v1668_v56  ;;  %v447_v47 = vsel %vm280_vm0, %v267_v59, 0  ;;  %v7275_v56 = vsub.f32 %v405_v11, %v7252_v10  ;;  %10408 = vst [vmem:[#allocation18_spill] sm:$0xff] %v7283_v60  ;;  %v1688_v59 = vsub.f32 %v7230_v24, %v9995_v5  ;;  %v250_v5 = vld [vmem:[%s9866_s1 + $0x110] sm:$0xff] }
  0xf5   : > { %5305 = vmatprep.subr.mxu0 %v7180_v51  ;;  %5341 = vmatprep.subr.mxu1 %v1787_v62  ;;  %v266_v62 = vld [vmem:[%s9866_s1 + $0x190] sm:$0xff]  ;;  %v7290_v25 = vand.u32 4294901760, %v447_v47  ;;  %v1801_v51 = vand.u32 4294901760, %v1800_v41  ;;  %v1807_v6 = vsub.f32 %v7241_v2, %v10410_v8  ;;  %v7303_v11 = vsub.f32 %v402_v49, %v7277_v63  ;;  %v265_v8 = vld [vmem:[%s9866_s1 + $0x188] sm:$0xff] }
  0xf6   : > { %10406 = vst [vmem:[#allocation27_spill] sm:$0xff] %v7275_v56  ;;  %v444_v58 = vsel %vm280_vm0, %v266_v62, 0  ;;  %v10412_v62 = vand.u32 4294901760, %v7258_v34 }
  0xf7   : > { %10409 = vst [vmem:[#allocation20_spill] sm:$0xff] %v7290_v25  ;;  %10411 = vst [vmem:[#allocation22_spill] sm:$0xff] %v7303_v11  ;;  %v7317_v49 = vsub.f32 %v447_v47, %v7290_v25  ;;  %v1808_v41 = vand.u32 4294901760, %v1807_v6  ;;  %v10416_v47 = vand.u32 4294901760, %v7275_v56 }
  0xf8   : > { %5306 = vmatpush3.xpose.msra.mxu0 %v7201_v22  ;;  %5342 = vmatpush3.xpose.msra.mxu1 %v1675_v55  ;;  %v399_v55 = vsel %vm280_vm0, %v251_v36, 0  ;;  %v1689_v36 = vand.u32 4294901760, %v1688_v59  ;;  %v1695_v22 = vsub.f32 %v7258_v34, %v10412_v62  ;;  %v441_v59 = vsel %vm280_vm0, %v265_v8, 0  ;;  %v249_v62 = vld [vmem:[%s9866_s1 + $0x108] sm:$0xff] }
  0xf9   : > { %5307 = vmatprep.subr.mxu0 %v7207_v20  ;;  %5343 = vmatprep.subr.mxu1 %v1794_v39  ;;  %v7314_v20 = vand.u32 4294901760, %v399_v55  ;;  %10414 = vst [vmem:[#allocation28_spill] sm:$0xff] %v7317_v49  ;;  %v10415_v39 = vand.u32 4294901760, %v7269_v18 }
  0xfa   : > { %v1696_v8 = vand.u32 4294901760, %v1695_v22 }
  0xfb   : > { %10413 = vst [vmem:[#allocation25_spill] sm:$0xff] %v7314_v20  ;;  %v1814_v2 = vsub.f32 %v7269_v18, %v10415_v39  ;;  %v7342_v18 = vsub.f32 %v399_v55, %v7314_v20  ;;  %v7348_v39 = vand.u32 4294901760, %v441_v59  ;;  %v248_v55 = vld [vmem:[%s9866_s1 + $0x100] sm:$0xff] }
  0xfc   : > { %5308 = vmatpush3.xpose.msra.mxu0 %v7232_v35  ;;  %5344 = vmatpush3.xpose.msra.mxu1 %v1682_v17  ;;  %v7323_v35 = vand.u32 4294901760, %v444_v58  ;;  %v396_v17 = vsel %vm280_vm0, %v250_v5, 0  ;;  %v264_v5 = vld [vmem:[%s9866_s1 + $0x180] sm:$0xff] }
  0xfd   : > { %5309 = vmatprep.subr.mxu0 %v7237_v37  ;;  %5345 = vmatprep.subr.mxu1 %v1801_v51  ;;  %v1702_v37 = vsub.f32 %v7275_v56, %v10416_v47  ;;  %v10417_v51 = vand.u32 4294901760, %v7283_v60  ;;  %v7344_v34 = vand.u32 4294901760, %v396_v17  ;;  %v438_v22 = vsel %vm280_vm0, %v264_v5, 0 }
  0xfe   : > { %v7352_v56 = vsub.f32 %v444_v58, %v7323_v35  ;;  %v10418_v47 = vand.u32 4294901760, %v7303_v11  ;;  %v10419_v58 = vand.u32 4294901760, %v7317_v49 }
  0xff   : > { %v1821_v6 = vsub.f32 %v7283_v60, %v10417_v51  ;;  %v1815_v51 = vand.u32 4294901760, %v1814_v2  ;;  %v393_v60 = vsel %vm280_vm0, %v249_v62, 0  ;;  %v7363_v2 = vsub.f32 %v396_v17, %v7344_v34 }
 0x100   : > { %5310 = vmatpush3.xpose.msra.mxu0 %v7252_v10  ;;  %5346 = vmatpush3.xpose.msra.mxu1 %v1689_v36  ;;  %v1703_v36 = vand.u32 4294901760, %v1702_v37  ;;  %v1828_v62 = vsub.f32 %v7317_v49, %v10419_v58  ;;  %v7368_v5 = vand.u32 4294901760, %v393_v60  ;;  %v7372_v37 = vand.u32 4294901760, %v438_v22 }
 0x101   : > { %5311 = vmatprep.subr.mxu0 %v7254_v4  ;;  %5347 = vmatprep.subr.mxu1 %v1808_v41  ;;  %v1822_v10 = vand.u32 4294901760, %v1821_v6  ;;  %v1709_v41 = vsub.f32 %v7303_v11, %v10418_v47  ;;  %v10018_v4 = vand.u32 4294901760, %v7342_v18  ;;  %v7377_v17 = vsub.f32 %v441_v59, %v7348_v39 }
 0x102   : > { %v7381_v58 = vsub.f32 %v393_v60, %v7368_v5  ;;  %v10021_v6 = vand.u32 4294901760, %v7363_v2  ;;  %v1829_v59 = vand.u32 4294901760, %v1828_v62  ;;  %v7395_v60 = vsub.f32 %v438_v22, %v7372_v37 }
 0x103   : > { %v1710_v47 = vand.u32 4294901760, %v1709_v41 }
 0x104   : > { %5312 = vmatpush3.xpose.msra.mxu0 %v7277_v63  ;;  %5348 = vmatpush3.xpose.msra.mxu1 %v1696_v8  ;;  %v390_v8 = vsel %vm280_vm0, %v248_v55, 0  ;;  %10420 = vst [vmem:[#allocation29_spill] sm:$0xff] %v7381_v58  ;;  %v10421_v55 = vand.u32 4294901760, %v7352_v56  ;;  %v10025_v62 = vand.u32 4294901760, %v7381_v58 }
 0x105   : > { %5313 = vmatprep.subr.mxu0 %v7290_v25  ;;  %5349 = vmatprep.subr.mxu1 %v1815_v51  ;;  %v1716_v51 = vsub.f32 %v7342_v18, %v10018_v4  ;;  %v7386_v25 = vand.u32 4294901760, %v390_v8 }
 0x106   : > { %v1835_v41 = vsub.f32 %v7352_v56, %v10421_v55 }
 0x107   : > { %v1717_v4 = vand.u32 4294901760, %v1716_v51  ;;  %v1730_v51 = vsub.f32 %v7381_v58, %v10025_v62 }
 0x108   : > { %5314 = vmatpush3.xpose.msra.mxu0 %v7314_v20  ;;  %5350 = vmatpush3.xpose.msra.mxu1 %v1703_v36  ;;  %v10022_v36 = vand.u32 4294901760, %v7377_v17  ;;  %v7399_v20 = vsub.f32 %v390_v8, %v7386_v25  ;;  %v1836_v55 = vand.u32 4294901760, %v1835_v41 }
 0x109   : > { %5315 = vmatprep.subr.mxu0 %v7323_v35  ;;  %5351 = vmatprep.subr.mxu1 %v1822_v10  ;;  %v1723_v10 = vsub.f32 %v7363_v2, %v10021_v6 }
 0x10a   : > { %10422 = vst [vmem:[#allocation16_spill] sm:$0xff] %v7399_v20  ;;  %v1842_v22 = vsub.f32 %v7377_v17, %v10022_v36  ;;  %v10024_v6 = vand.u32 4294901760, %v7399_v20  ;;  %v1731_v36 = vand.u32 4294901760, %v1730_v51  ;;  %v10423_v51 = vld [vmem:[#allocation41_spill] sm:$0xff] }
 0x10b   : > { %v1724_v8 = vand.u32 4294901760, %v1723_v10 }
 0x10c   : > { %5316 = vmatpush3.xpose.msra.mxu0 %v7344_v34  ;;  %5352 = vmatpush3.xpose.msra.mxu1 %v1710_v47  ;;  %v10023_v47 = vand.u32 4294901760, %v7395_v60 }
 0x10d   : > { %5317 = vmatprep.subr.mxu0 %v7348_v39  ;;  %5353 = vmatprep.subr.mxu1 %v1829_v59  ;;  %v1843_v59 = vand.u32 4294901760, %v1842_v22 }
 0x10e   : > { %v1849_v41 = vsub.f32 %v7395_v60, %v10023_v47 }
 0x110   : > { %5318 = vmatpush3.xpose.msra.mxu0 %v7368_v5  ;;  %5354 = vmatpush3.xpose.msra.mxu1 %v1717_v4  ;;  %v1737_v4 = vsub.f32 %v7399_v20, %v10024_v6  ;;  %v1850_v10 = vand.u32 4294901760, %v1849_v41 }
 0x111   : > { %5319 = vmatprep.subr.mxu0 %v7372_v37  ;;  %5355 = vmatprep.subr.mxu1 %v1836_v55 }
 0x112   : > { %v1738_v22 = vand.u32 4294901760, %v1737_v4 }
 0x114   : > { %5320 = vmatpush3.xpose.msra.mxu0 %v7386_v25  ;;  %5356 = vmatpush3.xpose.msra.mxu1 %v1724_v8 }
 0x115   : > { %5357 = vmatprep.subr.mxu1 %v1843_v59  ;;  %5369 = vmatprep.subr.mxu0 %v6970_v23 }
 0x117   : > { %5322 = vmatmul.mubr.f32.vlgmr.msra.gmra.mxu0 %v10389_v57  ;;  %v588_v55 = vpop.f32.mrf.mxu0 }
 0x118   : > { %5358 = vmatpush3.xpose.msra.mxu1 %v1731_v36  ;;  %5370 = vmatpush3.xpose.msra.mxu0 %v6984_v32  ;;  %v10424_v36 = vld [vmem:[#allocation43_spill] sm:$0xff] }
 0x119   : > { %5359 = vmatprep.subr.mxu1 %v1850_v10  ;;  %5371 = vmatprep.subr.mxu0 %v7000_v40  ;;  %v590_v8 = vpop.f32.mrf.mxu0 }
 0x11a   : > { %5323 = vmatprep.mubr.f32.mxu0 %v10423_v51 }
 0x11b   : > { %v599_v47 = vpop.f32.mrf.mxu0  ;;  %5324 = vmatmul.mubr.f32.gmra.mxu0 %v10423_v51  ;;  %v10427_v51 = vld [vmem:[#allocation44_spill] sm:$0xff] }
 0x11c   : > { %5360 = vmatpush3.xpose.msra.mxu1 %v1738_v22  ;;  %5372 = vmatpush3.xpose.msra.mxu0 %v7003_v33 }
 0x11d   : > { %5373 = vmatprep.subr.mxu0 %v7026_v44  ;;  %5409 = vmatprep.subr.mxu1 %v6950_v19  ;;  %v601_v57 = vpop.f32.mrf.mxu0 }
 0x11e   : > { %5325 = vmatprep.mubr.f32.mxu0 %v10424_v36 }
 0x11f   : > { %v853_v59 = vpop.f32.mrf.mxu1  ;;  %5362 = vmatmul.mubr.f32.vlgmr.msra.gmra.mxu1 %v6629_v12  ;;  %5326 = vmatmul.mubr.f32.gmra.mxu0 %v10424_v36  ;;  %v610_v10 = vpop.f32.mrf.mxu0 }
 0x120   : > { %v7435_v41 = vadd.f32 %v853_v59, %v588_v55  ;;  %5374 = vmatpush3.xpose.msra.mxu0 %v7036_v27  ;;  %5410 = vmatpush3.xpose.msra.mxu1 %v6960_v46 }
 0x121   : > { %v855_v4 = vpop.f32.mrf.mxu1  ;;  %5375 = vmatprep.subr.mxu0 %v7061_v52  ;;  %5411 = vmatprep.subr.mxu1 %v6975_v26 }
 0x122   : > { %10425 = vst [vmem:[#allocation19_spill] sm:$0xff] %v7435_v41  ;;  %v7441_v22 = vadd.f32 %v855_v4, %v590_v8  ;;  %5363 = vmatprep.mubr.f32.mxu1 %v10383_v1  ;;  %5327 = vmatprep.mubr.f32.mxu0 %v10427_v51  ;;  %v612_v8 = vpop.f32.mrf.mxu0  ;;  %v10445_v41 = vld [vmem:[#allocation18_spill] sm:$0xff] }
 0x123   : > { %v860_v6 = vpop.f32.mrf.mxu1  ;;  %5364 = vmatmul.mubr.f32.gmra.mxu1 %v10383_v1  ;;  %5328 = vmatmul.mubr.f32.gmra.mxu0 %v10427_v51  ;;  %v10449_v1 = vld [vmem:[#allocation21_spill] sm:$0xff] }
 0x124   : > { %10426 = vst [vmem:[#allocation32_spill] sm:$0xff] %v7441_v22  ;;  %5376 = vmatpush3.xpose.msra.mxu0 %v7065_v31  ;;  %5412 = vmatpush3.xpose.msra.mxu1 %v6977_v9  ;;  %v7449_v55 = vadd.f32 %v860_v6, %v599_v47  ;;  %v621_v47 = vpop.f32.mrf.mxu0  ;;  %v10446_v22 = vld [vmem:[#allocation9_spill] sm:$0xff] }
 0x125   : > { %5377 = vmatprep.subr.mxu0 %v7084_v29  ;;  %5413 = vmatprep.subr.mxu1 %v6997_v30  ;;  %v862_v36 = vpop.f32.mrf.mxu1 }
 0x126   : > { %10428 = vst [vmem:[#allocation35_spill] sm:$0xff] %v7449_v55  ;;  %v7453_v59 = vadd.f32 %v862_v36, %v601_v57  ;;  %5365 = vmatprep.mubr.f32.mxu1 %v10384_v42  ;;  %5401 = vmatprep.mubr.f32.mxu0 %v6650_v50  ;;  %v10444_v55 = vld [vmem:[#allocation8_spill] sm:$0xff] }
 0x127   : > { %v867_v4 = vpop.f32.mrf.mxu1  ;;  %5366 = vmatmul.mubr.f32.gmra.mxu1 %v10384_v42  ;;  %v10448_v42 = vld [vmem:[#allocation12_spill] sm:$0xff] }
 0x128   : > { %10429 = vst [vmem:[#allocation31_spill] sm:$0xff] %v7453_v59  ;;  %5378 = vmatpush3.xpose.msra.mxu0 %v7107_v54  ;;  %5414 = vmatpush3.xpose.msra.mxu1 %v7005_v43  ;;  %v7460_v6 = vadd.f32 %v867_v4, %v610_v10  ;;  %v623_v10 = vpop.f32.mrf.mxu0  ;;  %v10443_v59 = vld [vmem:[#allocation27_spill] sm:$0xff] }
 0x129   : > { %5379 = vmatprep.subr.mxu0 %v7112_v0  ;;  %5415 = vmatprep.subr.mxu1 %v7021_v3  ;;  %v869_v57 = vpop.f32.mrf.mxu1 }
 0x12a   : > { %10430 = vst [vmem:[#allocation41_spill] sm:$0xff] %v7460_v6  ;;  %v7464_v51 = vadd.f32 %v869_v57, %v612_v8  ;;  %5367 = vmatprep.mubr.f32.mxu1 %v10385_v16  ;;  %v10434_v8 = vld [vmem:[#allocation10_spill] sm:$0xff]  ;;  %v10436_v57 = vld [vmem:[#allocation13_spill] sm:$0xff] }
 0x12b   : > { %v874_v36 = vpop.f32.mrf.mxu1  ;;  %5368 = vmatmul.mubr.f32.gmra.mxu1 %v10385_v16  ;;  %v10447_v16 = vld [vmem:[#allocation11_spill] sm:$0xff] }
 0x12c   : > { %10431 = vst [vmem:[#allocation43_spill] sm:$0xff] %v7464_v51  ;;  %5380 = vmatpush3.xpose.msra.mxu0 %v7129_v13  ;;  %5416 = vmatpush3.xpose.msra.mxu1 %v7038_v38  ;;  %v7470_v62 = vadd.f32 %v874_v36, %v621_v47  ;;  %v10435_v47 = vld [vmem:[#allocation5_spill] sm:$0xff]  ;;  %v10437_v36 = vld [vmem:[#allocation14_spill] sm:$0xff]  ;;  %v10442_v51 = vld [vmem:[#allocation7_spill] sm:$0xff] }
 0x12d   : > { %5381 = vmatprep.subr.mxu0 %v7151_v15  ;;  %5417 = vmatprep.subr.mxu1 %v7048_v45  ;;  %v876_v4 = vpop.f32.mrf.mxu1 }
 0x12e   : > { %10432 = vst [vmem:[#allocation44_spill] sm:$0xff] %v7470_v62  ;;  %v7474_v6 = vadd.f32 %v876_v4, %v623_v10  ;;  %5441 = vmatprep.mubr.f32.mxu1 %v6659_v28  ;;  %v10438_v10 = vld [vmem:[#allocation6_spill] sm:$0xff]  ;;  %v10439_v4 = vld [vmem:[#allocation24_spill] sm:$0xff] }
 0x12f   : > { %v10441_v62 = vld [vmem:[#allocation26_spill] sm:$0xff] }
 0x130   : > { %10433 = vst [vmem:[#allocation45_spill] sm:$0xff] %v7474_v6  ;;  %5382 = vmatpush3.xpose.msra.mxu0 %v7160_v61  ;;  %5418 = vmatpush3.xpose.msra.mxu1 %v7076_v53  ;;  %v10440_v6 = vld [vmem:[#allocation15_spill] sm:$0xff] }
 0x131   : > { %5383 = vmatprep.subr.mxu0 %v7169_v7  ;;  %5419 = vmatprep.subr.mxu1 %v7078_v14 }
 0x134   : > { %5384 = vmatpush3.xpose.msra.mxu0 %v7190_v21  ;;  %5420 = vmatpush3.xpose.msra.mxu1 %v7102_v48 }
 0x135   : > { %5385 = vmatprep.subr.mxu0 %v10434_v8  ;;  %5421 = vmatprep.subr.mxu1 %v10435_v47 }
 0x138   : > { %5386 = vmatpush3.xpose.msra.mxu0 %v7230_v24  ;;  %5422 = vmatpush3.xpose.msra.mxu1 %v10436_v57 }
 0x139   : > { %5387 = vmatprep.subr.mxu0 %v10437_v36  ;;  %5423 = vmatprep.subr.mxu1 %v10438_v10 }
 0x13c   : > { %5388 = vmatpush3.xpose.msra.mxu0 %v10439_v4  ;;  %5424 = vmatpush3.xpose.msra.mxu1 %v10440_v6 }
 0x13d   : > { %5389 = vmatprep.subr.mxu0 %v10441_v62  ;;  %5425 = vmatprep.subr.mxu1 %v10442_v51 }
 0x140   : > { %5390 = vmatpush3.xpose.msra.mxu0 %v10443_v59  ;;  %5426 = vmatpush3.xpose.msra.mxu1 %v10444_v55  ;;  %v10450_v59 = vld [vmem:[#allocation23_spill] sm:$0xff] }
 0x141   : > { %5391 = vmatprep.subr.mxu0 %v10445_v41  ;;  %5427 = vmatprep.subr.mxu1 %v10446_v22 }
 0x144   : > { %5392 = vmatpush3.xpose.msra.mxu0 %v7303_v11  ;;  %5428 = vmatpush3.xpose.msra.mxu1 %v10447_v16  ;;  %v10451_v11 = vld [vmem:[#allocation20_spill] sm:$0xff] }
 0x145   : > { %5393 = vmatprep.subr.mxu0 %v7317_v49  ;;  %5429 = vmatprep.subr.mxu1 %v10448_v42  ;;  %v10452_v49 = vld [vmem:[#allocation25_spill] sm:$0xff] }
 0x148   : > { %5394 = vmatpush3.xpose.msra.mxu0 %v7342_v18  ;;  %5430 = vmatpush3.xpose.msra.mxu1 %v10449_v1 }
 0x149   : > { %5395 = vmatprep.subr.mxu0 %v7352_v56  ;;  %5431 = vmatprep.subr.mxu1 %v10450_v59 }
 0x14c   : > { %5396 = vmatpush3.xpose.msra.mxu0 %v7363_v2  ;;  %5432 = vmatpush3.xpose.msra.mxu1 %v7277_v63  ;;  %v10453_v63 = vand.u32 4294901760, %v6970_v23  ;;  %v10457_v23 = vand.u32 4294901760, %v7003_v33  ;;  %v10462_v33 = vld [vmem:[#allocation36_spill] sm:$0xff] }
 0x14d   : > { %5397 = vmatprep.subr.mxu0 %v7377_v17  ;;  %5433 = vmatprep.subr.mxu1 %v10451_v11 }
 0x150   : > { %5398 = vmatpush3.xpose.msra.mxu0 %v7381_v58  ;;  %5434 = vmatpush3.xpose.msra.mxu1 %v10452_v49  ;;  %v10454_v58 = vand.u32 4294901760, %v6984_v32  ;;  %v10455_v49 = vld [vmem:[#allocation33_spill] sm:$0xff]  ;;  %v10460_v32 = vand.u32 4294901760, %v7036_v27  ;;  %v10471_v27 = vand.u32 4294901760, %v7151_v15  ;;  %v10488_v15 = vand.u32 4294901760, %v7352_v56  ;;  %v10496_v56 = vld [vmem:[#allocation16_spill] sm:$0xff] }
 0x151   : > { %5399 = vmatprep.subr.mxu0 %v7395_v60  ;;  %5435 = vmatprep.subr.mxu1 %v7323_v35 }
 0x154   : > { %5400 = vmatpush3.xpose.msra.mxu0 %v7399_v20  ;;  %5436 = vmatpush3.xpose.msra.mxu1 %v7344_v34  ;;  %v10456_v20 = vand.u32 4294901760, %v7000_v40  ;;  %v10461_v40 = vld [vmem:[#allocation40_spill] sm:$0xff] }
 0x155   : > { %5437 = vmatprep.subr.mxu1 %v7348_v39  ;;  %5449 = vmatprep.subr.mxu0 %v10453_v63  ;;  %v10459_v63 = vand.u32 4294901760, %v7026_v44  ;;  %v10468_v44 = vld [vmem:[#allocation42_spill] sm:$0xff] }
 0x157   : > { %5402 = vmatmul.mubr.f32.vlgmr.msra.gmra.mxu0 %v6650_v50  ;;  %v10458_v50 = vld [vmem:[#allocation37_spill] sm:$0xff] }
 0x158   : > { %5438 = vmatpush3.xpose.msra.mxu1 %v7368_v5  ;;  %5450 = vmatpush3.xpose.msra.mxu0 %v10454_v58  ;;  %v10494_v58 = vld [vmem:[#allocation25_spill] sm:$0xff] }
 0x159   : > { %5403 = vmatprep.mubr.f32.mxu0 %v10455_v49  ;;  %5439 = vmatprep.subr.mxu1 %v7372_v37 }
 0x15a   : > { %5451 = vmatprep.subr.mxu0 %v10456_v20  ;;  %v10463_v20 = vand.u32 4294901760, %v7061_v52  ;;  %v10474_v52 = vand.u32 4294901760, %v7190_v21  ;;  %v10487_v21 = vand.u32 4294901760, %v7342_v18 }
 0x15b   : > { %5404 = vmatmul.mubr.f32.gmra.mxu0 %v10455_v49  ;;  %v10490_v49 = vld [vmem:[#allocation17_spill] sm:$0xff] }
 0x15c   : > { %5440 = vmatpush3.xpose.msra.mxu1 %v7386_v25  ;;  %5452 = vmatpush3.xpose.msra.mxu0 %v10457_v23 }
 0x15d   : > { %5405 = vmatprep.mubr.f32.mxu0 %v10458_v50  ;;  %5453 = vmatprep.subr.mxu0 %v10459_v63 }
 0x15e   : > { %5489 = vmatprep.subr.mxu1 %v6950_v19  ;;  %v10465_v19 = vld [vmem:[#allocation39_spill] sm:$0xff] }
 0x15f   : > { %5406 = vmatmul.mubr.f32.gmra.mxu0 %v10458_v50  ;;  %5442 = vmatmul.mubr.f32.vlgmr.msra.gmra.mxu1 %v6659_v28  ;;  %v10464_v28 = vand.u32 4294901760, %v7065_v31  ;;  %v10477_v31 = vand.u32 4294901760, %v10437_v36 }
 0x160   : > { %5454 = vmatpush3.xpose.msra.mxu0 %v10460_v32  ;;  %5490 = vmatpush3.xpose.msra.mxu1 %v6960_v46  ;;  %v10466_v46 = vand.u32 4294901760, %v7084_v29  ;;  %v10480_v29 = vld [vmem:[#allocation27_spill] sm:$0xff] }
 0x161   : > { %5407 = vmatprep.mubr.f32.mxu0 %v10461_v40  ;;  %5443 = vmatprep.mubr.f32.mxu1 %v10462_v33 }
 0x162   : > { %5455 = vmatprep.subr.mxu0 %v10463_v20  ;;  %5491 = vmatprep.subr.mxu1 %v6975_v26  ;;  %v10467_v26 = vand.u32 4294901760, %v7107_v54 }
 0x163   : > { %5408 = vmatmul.mubr.f32.gmra.mxu0 %v10461_v40  ;;  %5444 = vmatmul.mubr.f32.gmra.mxu1 %v10462_v33 }
 0x164   : > { %5456 = vmatpush3.xpose.msra.mxu0 %v10464_v28  ;;  %5492 = vmatpush3.xpose.msra.mxu1 %v6977_v9  ;;  %v10469_v9 = vand.u32 4294901760, %v7112_v0  ;;  %v10485_v0 = vld [vmem:[#allocation28_spill] sm:$0xff] }
 0x165   : > { %5445 = vmatprep.mubr.f32.mxu1 %v10465_v19  ;;  %5457 = vmatprep.subr.mxu0 %v10466_v46 }
 0x166   : > { %5493 = vmatprep.subr.mxu1 %v6997_v30  ;;  %5481 = vmatprep.mubr.f32.mxu0 %v6629_v12  ;;  %v10470_v30 = vand.u32 4294901760, %v7129_v13  ;;  %v10486_v13 = vand.u32 4294901760, %v10485_v0 }
 0x167   : > { %5446 = vmatmul.mubr.f32.gmra.mxu1 %v10465_v19 }
 0x168   : > { %5458 = vmatpush3.xpose.msra.mxu0 %v10467_v26  ;;  %5494 = vmatpush3.xpose.msra.mxu1 %v7005_v43  ;;  %v10472_v43 = vand.u32 4294901760, %v7160_v61  ;;  %v10482_v61 = vand.u32 4294901760, %v10445_v41 }
 0x169   : > { %5447 = vmatprep.mubr.f32.mxu1 %v10468_v44  ;;  %5459 = vmatprep.subr.mxu0 %v10469_v9 }
 0x16a   : > { %5495 = vmatprep.subr.mxu1 %v7021_v3  ;;  %v10473_v3 = vand.u32 4294901760, %v7169_v7  ;;  %v10489_v7 = vand.u32 4294901760, %v7363_v2  ;;  %v10497_v2 = vand.u32 4294901760, %v10496_v56 }
 0x16b   : > { %5448 = vmatmul.mubr.f32.gmra.mxu1 %v10468_v44 }
 0x16c   : > { %5460 = vmatpush3.xpose.msra.mxu0 %v10470_v30  ;;  %5496 = vmatpush3.xpose.msra.mxu1 %v7038_v38  ;;  %v10475_v38 = vand.u32 4294901760, %v10434_v8 }
 0x16d   : > { %5461 = vmatprep.subr.mxu0 %v10471_v27  ;;  %5497 = vmatprep.subr.mxu1 %v7048_v45  ;;  %v10476_v45 = vand.u32 4294901760, %v7230_v24  ;;  %v10481_v24 = vand.u32 4294901760, %v10480_v29 }
 0x16e   : > { %5521 = vmatprep.mubr.f32.mxu1 %v6629_v12 }
 0x170   : > { %5462 = vmatpush3.xpose.msra.mxu0 %v10472_v43  ;;  %5498 = vmatpush3.xpose.msra.mxu1 %v7076_v53  ;;  %v10478_v53 = vand.u32 4294901760, %v10439_v4 }
 0x171   : > { %5463 = vmatprep.subr.mxu0 %v10473_v3  ;;  %5499 = vmatprep.subr.mxu1 %v7078_v14  ;;  %v10479_v14 = vand.u32 4294901760, %v10441_v62 }
 0x174   : > { %5464 = vmatpush3.xpose.msra.mxu0 %v10474_v52  ;;  %5500 = vmatpush3.xpose.msra.mxu1 %v7102_v48  ;;  %v10483_v48 = vld [vmem:[#allocation22_spill] sm:$0xff] }
 0x175   : > { %5465 = vmatprep.subr.mxu0 %v10475_v38  ;;  %5501 = vmatprep.subr.mxu1 %v10435_v47  ;;  %v10484_v54 = vand.u32 4294901760, %v10483_v48 }
 0x178   : > { %5466 = vmatpush3.xpose.msra.mxu0 %v10476_v45  ;;  %5502 = vmatpush3.xpose.msra.mxu1 %v10436_v57 }
 0x179   : > { %5467 = vmatprep.subr.mxu0 %v10477_v31  ;;  %5503 = vmatprep.subr.mxu1 %v10438_v10 }
 0x17c   : > { %5468 = vmatpush3.xpose.msra.mxu0 %v10478_v53  ;;  %5504 = vmatpush3.xpose.msra.mxu1 %v10440_v6 }
 0x17d   : > { %5469 = vmatprep.subr.mxu0 %v10479_v14  ;;  %5505 = vmatprep.subr.mxu1 %v10442_v51 }
 0x180   : > { %5470 = vmatpush3.xpose.msra.mxu0 %v10481_v24  ;;  %5506 = vmatpush3.xpose.msra.mxu1 %v10444_v55 }
 0x181   : > { %5471 = vmatprep.subr.mxu0 %v10482_v61  ;;  %5507 = vmatprep.subr.mxu1 %v10446_v22 }
 0x184   : > { %5472 = vmatpush3.xpose.msra.mxu0 %v10484_v54  ;;  %5508 = vmatpush3.xpose.msra.mxu1 %v10447_v16  ;;  %v10491_v16 = vand.u32 4294901760, %v7377_v17 }
 0x185   : > { %5473 = vmatprep.subr.mxu0 %v10486_v13  ;;  %5509 = vmatprep.subr.mxu1 %v10448_v42  ;;  %v10492_v42 = vld [vmem:[#allocation29_spill] sm:$0xff] }
 0x186   : > { %v10493_v18 = vand.u32 4294901760, %v10492_v42 }
 0x188   : > { %5474 = vmatpush3.xpose.msra.mxu0 %v10487_v21  ;;  %5510 = vmatpush3.xpose.msra.mxu1 %v10449_v1  ;;  %v10495_v1 = vand.u32 4294901760, %v7395_v60 }
 0x189   : > { %5475 = vmatprep.subr.mxu0 %v10488_v15  ;;  %5511 = vmatprep.subr.mxu1 %v10450_v59 }
 0x18c   : > { %5476 = vmatpush3.xpose.msra.mxu0 %v10489_v7  ;;  %5512 = vmatpush3.xpose.msra.mxu1 %v10490_v49 }
 0x18d   : > { %5477 = vmatprep.subr.mxu0 %v10491_v16  ;;  %5513 = vmatprep.subr.mxu1 %v10451_v11  ;;  %v10498_v11 = vld [vmem:[#allocation30_spill] sm:$0xff] }
 0x190   : > { %5478 = vmatpush3.xpose.msra.mxu0 %v10493_v18  ;;  %5514 = vmatpush3.xpose.msra.mxu1 %v10494_v58 }
 0x191   : > { %5479 = vmatprep.subr.mxu0 %v10495_v1  ;;  %5515 = vmatprep.subr.mxu1 %v7323_v35  ;;  %v10499_v35 = vld [vmem:[#allocation34_spill] sm:$0xff] }
 0x194   : > { %5480 = vmatpush3.xpose.msra.mxu0 %v10497_v2  ;;  %5516 = vmatpush3.xpose.msra.mxu1 %v7344_v34  ;;  %v10500_v34 = vld [vmem:[#allocation38_spill] sm:$0xff]  ;;  %v10514_v2 = vld [vmem:[#allocation32_spill] sm:$0xff] }
 0x195   : > { %5517 = vmatprep.subr.mxu1 %v7348_v39 }
 0x197   : > { %5482 = vmatmul.mubr.f32.vlgmr.msra.gmra.mxu0 %v6629_v12 }
 0x198   : > { %5518 = vmatpush3.xpose.msra.mxu1 %v7368_v5  ;;  %5483 = vmatprep.mubr.f32.mxu0 %v10498_v11  ;;  %v7647_v5 = vpop.f32.mrf.mxu1 }
 0x199   : > { %5519 = vmatprep.subr.mxu1 %v7372_v37 }
 0x19a   : > { %v1143_v17 = vpop.f32.mrf.mxu1 }
 0x19b   : > { %5484 = vmatmul.mubr.f32.gmra.mxu0 %v10498_v11 }
 0x19c   : > { %5520 = vmatpush3.xpose.msra.mxu1 %v7386_v25  ;;  %5485 = vmatprep.mubr.f32.mxu0 %v10499_v35  ;;  %v7645_v25 = vpop.f32.mrf.mxu0  ;;  %v7651_v62 = vpop.f32.mrf.mxu1 }
 0x19e   : > { %v1013_v39 = vpop.f32.mrf.mxu0  ;;  %v7655_v22 = vpop.f32.mrf.mxu1 }
 0x19f   : > { %5486 = vmatmul.mubr.f32.gmra.mxu0 %v10499_v35  ;;  %5522 = vmatmul.mubr.f32.vlgmr.msra.gmra.mxu1 %v6629_v12 }
 0x1a0   : > { %5487 = vmatprep.mubr.f32.mxu0 %v10500_v34  ;;  %5523 = vmatprep.mubr.f32.mxu1 %v10498_v11  ;;  %v1019_v12 = vpop.f32.mrf.mxu0  ;;  %v7657_v59 = vpop.f32.mrf.mxu1 }
 0x1a2   : > { %v7649_v37 = vpop.f32.mrf.mxu0  ;;  %v7661_v51 = vpop.f32.mrf.mxu1 }
 0x1a3   : > { %5488 = vmatmul.mubr.f32.gmra.mxu0 %v10500_v34  ;;  %5524 = vmatmul.mubr.f32.gmra.mxu1 %v10498_v11  ;;  %v1014_v11 = vadd.f32 %v1013_v39, %v10514_v2  ;;  %v10521_v39 = vld [vmem:[#allocation43_spill] sm:$0xff] }
 0x1a4   : > { %5525 = vmatprep.mubr.f32.mxu1 %v10499_v35  ;;  %v1027_v60 = vpop.f32.mrf.mxu0  ;;  %v7665_v47 = vpop.f32.mrf.mxu1 }
 0x1a6   : > { %v7653_v41 = vpop.f32.mrf.mxu0  ;;  %v7667_v36 = vpop.f32.mrf.mxu1 }
 0x1a7   : > { %5526 = vmatmul.mubr.f32.gmra.mxu1 %v10499_v35  ;;  %v1030_v2 = vadd.f32 %v7653_v41, %v10521_v39 }
 0x1a8   : > { %5527 = vmatprep.mubr.f32.mxu1 %v10500_v34  ;;  %v1035_v55 = vpop.f32.mrf.mxu0  ;;  %v7671_v4 = vpop.f32.mrf.mxu1 }
 0x1aa   : > { %v7659_v6 = vpop.f32.mrf.mxu0  ;;  %v7675_v50 = vpop.f32.mrf.mxu1 }
 0x1ab   : > { %5528 = vmatmul.mubr.f32.gmra.mxu1 %v10500_v34 }
 0x1ac   : > { %v7663_v8 = vpop.f32.mrf.mxu0  ;;  %v7679_v32 = vpop.f32.mrf.mxu1 }
 0x1ae   : > { %v1338_v57 = vpop.f32.mrf.mxu0  ;;  %v7683_v33 = vpop.f32.mrf.mxu1 }
 0x1b0   : > { %v7669_v10 = vpop.f32.mrf.mxu0  ;;  %v7687_v28 = vpop.f32.mrf.mxu1 }
 0x1b1   : > { %10502 = vst [vmem:[#allocation5_spill] sm:$0xff] %v7687_v28 }
 0x1b2   : > { %v7673_v23 = vpop.f32.mrf.mxu0  ;;  %v7691_v46 = vpop.f32.mrf.mxu1 }
 0x1b3   : > { %10504 = vst [vmem:[#allocation14_spill] sm:$0xff] %v7691_v46 }
 0x1b4   : > { %v7677_v63 = vpop.f32.mrf.mxu0  ;;  %v7693_v44 = vpop.f32.mrf.mxu1 }
 0x1b5   : > { %10505 = vst [vmem:[#allocation6_spill] sm:$0xff] %v7693_v44  ;;  %v10517_v44 = vld [vmem:[#allocation19_spill] sm:$0xff] }
 0x1b6   : > { %v7681_v40 = vpop.f32.mrf.mxu0  ;;  %v7695_v27 = vpop.f32.mrf.mxu1 }
 0x1b7   : > { %10506 = vst [vmem:[#allocation24_spill] sm:$0xff] %v7695_v27  ;;  %v1012_v27 = vadd.f32 %v7645_v25, %v10517_v44 }
 0x1b8   : > { %v7685_v20 = vpop.f32.mrf.mxu0 }
 0x1b9   : > { %10501 = vst [vmem:[#allocation10_spill] sm:$0xff] %v7685_v20  ;;  %v10518_v20 = vld [vmem:[#allocation35_spill] sm:$0xff] }
 0x1ba   : > { %v7689_v19 = vpop.f32.mrf.mxu0 }
 0x1bb   : > { %10503 = vst [vmem:[#allocation13_spill] sm:$0xff] %v7689_v19  ;;  %v10519_v19 = vld [vmem:[#allocation31_spill] sm:$0xff] }
 0x1d7   : > { %v1590_v26 = vpop.f32.mrf.mxu0 }
 0x1d9   : > { %v1592_v9 = vpop.f32.mrf.mxu0 }
 0x1db   : > { %v1601_v30 = vpop.f32.mrf.mxu0 }
 0x1dd   : > { %v1603_v3 = vpop.f32.mrf.mxu0 }
 0x1df   : > { %v1855_v43 = vpop.f32.mrf.mxu1  ;;  %v7697_v38 = vpop.f32.mrf.mxu0 }
 0x1e1   : > { %v1857_v52 = vpop.f32.mrf.mxu1  ;;  %v7699_v31 = vpop.f32.mrf.mxu0 }
 0x1e3   : > { %v1862_v45 = vpop.f32.mrf.mxu1  ;;  %v7701_v14 = vpop.f32.mrf.mxu0 }
 0x1e4   : > { %10507 = vst [vmem:[#allocation15_spill] sm:$0xff] %v7701_v14  ;;  %v1856_v14 = vadd.f32 %v1855_v43, %v1590_v26  ;;  %v1162_v26 = vadd.f32 %v7661_v51, %v1030_v2  ;;  %v10530_v2 = vld [vmem:[#allocation5_spill] sm:$0xff] }
 0x1e5   : > { %v1864_v53 = vpop.f32.mrf.mxu1  ;;  %v7703_v24 = vpop.f32.mrf.mxu0 }
 0x1e6   : > { %10508 = vst [vmem:[#allocation26_spill] sm:$0xff] %v7703_v24  ;;  %v1144_v24 = vadd.f32 %v1143_v17, %v1014_v11  ;;  %v10523_v17 = vld [vmem:[#allocation45_spill] sm:$0xff] }
 0x1e7   : > { %v1869_v29 = vpop.f32.mrf.mxu1 }
 0x1e8   : > { %v1339_v25 = vadd.f32 %v1338_v57, %v1144_v24 }
 0x1e9   : > { %v7705_v61 = vpop.f32.mrf.mxu1 }
 0x1eb   : > { %v7707_v54 = vpop.f32.mrf.mxu1 }
 0x1ec   : > { %10509 = vst [vmem:[#allocation7_spill] sm:$0xff] %v7707_v54  ;;  %v10520_v54 = vld [vmem:[#allocation41_spill] sm:$0xff] }
 0x1ed   : > { %v7709_v13 = vpop.f32.mrf.mxu1 }
 0x1ee   : > { %10510 = vst [vmem:[#allocation8_spill] sm:$0xff] %v7709_v13  ;;  %v1020_v13 = vadd.f32 %v1019_v12, %v10518_v20  ;;  %v1038_v20 = vadd.f32 %v7659_v6, %v10523_v17 }
 0x1f0   : > { %v1151_v46 = vadd.f32 %v7651_v62, %v1020_v13  ;;  %v1171_v6 = vadd.f32 %v7667_v36, %v1038_v20 }
 0x1f5   : > { %v10532_v17 = vld [vmem:[#allocation8_spill] sm:$0xff] }
 0x217   : > { %v2013_v48 = vpop.f32.mrf.mxu0 }
 0x219   : > { %v2015_v0 = vpop.f32.mrf.mxu0 }
 0x21b   : > { %v2021_v21 = vpop.f32.mrf.mxu0 }
 0x21d   : > { %v2023_v7 = vpop.f32.mrf.mxu0 }
 0x21f   : > { %v2143_v15 = vpop.f32.mrf.mxu1  ;;  %v2029_v16 = vpop.f32.mrf.mxu0 }
 0x221   : > { %v2145_v49 = vpop.f32.mrf.mxu1  ;;  %v7711_v18 = vpop.f32.mrf.mxu0 }
 0x222   : > { %10511 = vst [vmem:[#allocation18_spill] sm:$0xff] %v7711_v18  ;;  %v1022_v18 = vadd.f32 %v7649_v37, %v10519_v19  ;;  %v2014_v19 = vadd.f32 %v2013_v48, %v1856_v14 }
 0x223   : > { %v2152_v42 = vpop.f32.mrf.mxu1  ;;  %v7713_v1 = vpop.f32.mrf.mxu0 }
 0x224   : > { %10512 = vst [vmem:[#allocation9_spill] sm:$0xff] %v7713_v1  ;;  %v1028_v1 = vadd.f32 %v1027_v60, %v10520_v54  ;;  %v1153_v37 = vadd.f32 %v7655_v22, %v1022_v18  ;;  %v1858_v60 = vadd.f32 %v1857_v52, %v1592_v9  ;;  %v2144_v24 = vadd.f32 %v2143_v15, %v2014_v19 }
 0x225   : > { %v2154_v58 = vpop.f32.mrf.mxu1  ;;  %v7718_v35 = vpop.f32.mrf.mxu0  ;;  %v1344_v22 = vadd.f32 %v7669_v10, %v1151_v46  ;;  %v1865_v52 = vadd.f32 %v1864_v53, %v1603_v3  ;;  %v1870_v10 = vadd.f32 %v1869_v29, %v7697_v38  ;;  %v1353_v3 = vadd.f32 %v7681_v40, %v1162_v26 }
 0x226   : > { %10515 = vst [vmem:[#allocation12_spill] sm:$0xff] %v7718_v35  ;;  %v10522_v35 = vld [vmem:[#allocation44_spill] sm:$0xff]  ;;  %v2016_v43 = vadd.f32 %v2015_v0, %v1858_v60  ;;  %v1346_v9 = vadd.f32 %v7673_v23, %v1153_v37 }
 0x227   : > { %v7715_v56 = vpop.f32.mrf.mxu1  ;;  %v2030_v53 = vadd.f32 %v2029_v16, %v1870_v10 }
 0x228   : > { %10513 = vst [vmem:[#allocation11_spill] sm:$0xff] %v7715_v56  ;;  %v1142_v56 = vadd.f32 %v7647_v5, %v1012_v27  ;;  %v1160_v5 = vadd.f32 %v7657_v59, %v1028_v1  ;;  %v1863_v27 = vadd.f32 %v1862_v45, %v1601_v30  ;;  %v2146_v14 = vadd.f32 %v2145_v49, %v2016_v43  ;;  %v10524_v49 = vld [vmem:[#allocation14_spill] sm:$0xff] }
 0x229   : > { %v7720_v34 = vpop.f32.mrf.mxu1  ;;  %v7755_v36 = vadd.f32 %v7683_v33, %v1346_v9  ;;  %v7772_v40 = vadd.f32 %v10524_v49, %v1353_v3  ;;  %v10527_v1 = vld [vmem:[#allocation18_spill] sm:$0xff]  ;;  %v10536_v9 = vld [vmem:[#allocation24_spill] sm:$0xff]  ;;  %v10041_v49 = vlaneseq }
 0x22a   : > { %10516 = vst [vmem:[#allocation21_spill] sm:$0xff] %v7720_v34  ;;  %v1036_v34 = vadd.f32 %v1035_v55, %v10522_v35  ;;  %v1337_v41 = vadd.f32 %v7663_v8, %v1142_v56  ;;  %v7742_v55 = vadd.f32 %v7675_v50, %v1339_v25  ;;  %v2022_v50 = vadd.f32 %v2021_v21, %v1863_v27 }
 0x22b   : > { %v7733_v44 = vpop.f32.mrf.mxu1  ;;  %v10533_v37 = vld [vmem:[#allocation9_spill] sm:$0xff] }
 0x22c   : > { %v1169_v57 = vadd.f32 %v7665_v47, %v1036_v34  ;;  %v7749_v59 = vadd.f32 %v7671_v4, %v1337_v41  ;;  %v1351_v47 = vadd.f32 %v7677_v63, %v1160_v5  ;;  %v2024_v4 = vadd.f32 %v2023_v7, %v1865_v52  ;;  %v10529_v34 = vld [vmem:[#allocation13_spill] sm:$0xff] }
 0x22d   : > { %v2172_v51 = vpop.f32.mrf.mxu1  ;;  %v2153_v45 = vadd.f32 %v2152_v42, %v2022_v50  ;;  %v1872_v63 = vadd.f32 %v7705_v61, %v7699_v31  ;;  %v10526_v42 = vld [vmem:[#allocation7_spill] sm:$0xff]  ;;  %v1360_v39 = vadd.f32 %v10529_v34, %v1171_v6  ;;  %v10537_v52 = vld [vmem:[#allocation12_spill] sm:$0xff] }
 0x22e   : > { %v2489_v30 = vmax.f32 %v7749_v59, %v7742_v55  ;;  %v2155_v21 = vadd.f32 %v2154_v58, %v2024_v4  ;;  %v7783_v25 = vadd.f32 %v10530_v2, %v1351_v47 }
 0x22f   : > { %v2032_v31 = vadd.f32 %v10527_v1, %v1872_v63  ;;  %v10528_v16 = vld [vmem:[#allocation11_spill] sm:$0xff] }
 0x230   : > { %v2162_v56 = vadd.f32 %v10528_v16, %v2030_v53  ;;  %v2499_v6 = vmax.f32 %v7783_v25, %v7772_v40 }
 0x231   : > { %v10534_v26 = vld [vmem:[#allocation21_spill] sm:$0xff] }
 0x232   : > { %v2164_v41 = vadd.f32 %v10534_v26, %v2032_v31 }
 0x257   : > { %v2338_v28 = vpop.f32.mrf.mxu0 }
 0x258   : > { %v2339_v48 = vadd.f32 %v2338_v28, %v2144_v24  ;;  %v7762_v28 = vadd.f32 %v7679_v32, %v1344_v22  ;;  %v10525_v32 = vld [vmem:[#allocation15_spill] sm:$0xff]  ;;  %v10535_v24 = vld [vmem:[#allocation10_spill] sm:$0xff] }
 0x259   : > { %v2340_v12 = vpop.f32.mrf.mxu0  ;;  %v1877_v18 = vadd.f32 %v10526_v42, %v10525_v32  ;;  %v1358_v22 = vadd.f32 %v10535_v24, %v1169_v57  ;;  %v2510_v32 = vand.u32 127, %v10041_v49 }
 0x25a   : > { %v2341_v54 = vadd.f32 %v2340_v12, %v2146_v14  ;;  %v2494_v7 = vmax.f32 %v7762_v28, %v7755_v36  ;;  %v10531_v12 = vld [vmem:[#allocation26_spill] sm:$0xff] }
 0x25b   : > { %v2345_v62 = vpop.f32.mrf.mxu0  ;;  %v1879_v20 = vadd.f32 %v10532_v17, %v10531_v12  ;;  %v2038_v60 = vadd.f32 %v10533_v37, %v1877_v18  ;;  %v2511_v42 = vadd.s32 128, %v2510_v32  ;;  %v2512_v1 = vadd.s32 256, %v2510_v32 }
 0x25c   : > { %v2346_v38 = vadd.f32 %v2345_v62, %v2153_v45  ;;  %v7818_v31 = vadd.s32 384, %v2510_v32 }
 0x25d   : > { %v2347_v8 = vpop.f32.mrf.mxu0  ;;  %v2040_v50 = vadd.f32 %v10537_v52, %v1879_v20 }
 0x25e   : > { %v2348_v58 = vadd.f32 %v2347_v8, %v2155_v21  ;;  %v7794_v8 = vadd.f32 %v10536_v9, %v1360_v39 }
 0x25f   : > { %v2352_v23 = vpop.f32.mrf.mxu0  ;;  %v2463_v46 = vpop.f32.mrf.mxu1  ;;  %v2173_v45 = vadd.f32 %v2172_v51, %v2040_v50 }
 0x260   : > { %v7758_v0 = vadd.f32 %v2463_v46, %v2339_v48  ;;  %v2353_v62 = vadd.f32 %v2352_v23, %v2162_v56  ;;  %v2171_v48 = vadd.f32 %v7733_v44, %v2038_v60  ;;  %v10538_v23 = vld [vmem:[#allocation6_spill] sm:$0xff] }
 0x261   : > { %v2354_v33 = vpop.f32.mrf.mxu0  ;;  %v2465_v13 = vpop.f32.mrf.mxu1  ;;  %v7801_v46 = vadd.f32 %v10538_v23, %v1358_v22  ;;  %v2704_v23 = vld [vmem:[%s9867_s2 + $0xf0] sm:$0xff] }
 0x262   : > { %v7766_v29 = vadd.f32 %v2465_v13, %v2341_v54  ;;  %v2490_v15 = vmax.f32 %v2489_v30, %v7758_v0  ;;  %v2355_v47 = vadd.f32 %v2354_v33, %v2164_v41 }
 0x263   : > { %v2470_v61 = vpop.f32.mrf.mxu1  ;;  %v2359_v19 = vpop.f32.mrf.mxu0  ;;  %v2504_v44 = vmax.f32 %v7801_v46, %v7794_v8 }
 0x264   : > { %v7778_v11 = vadd.f32 %v2470_v61, %v2346_v38  ;;  %v2491_v35 = vmax.f32 %v2490_v15, %v7766_v29  ;;  %v2360_v54 = vadd.f32 %v2359_v19, %v2171_v48 }
 0x265   : > { %v2472_v5 = vpop.f32.mrf.mxu1  ;;  %v2361_v4 = vpop.f32.mrf.mxu0 }
 0x266   : > { %v2495_v27 = vmax.f32 %v2494_v7, %v7778_v11  ;;  %v2473_v43 = vadd.f32 %v2472_v5, %v2348_v58  ;;  %2492 = vmax.xlane.f32.xlu0 %v2491_v35  ;;  %v2362_v33 = vadd.f32 %v2361_v4, %v2173_v45  ;;  %v2688_v45 = vld [vmem:[%s9867_s2 + $0x70] sm:$0xff] }
 0x267   : > { %v2477_v14 = vpop.f32.mrf.mxu1 }
 0x268   : > { %v7798_v30 = vadd.f32 %v2477_v14, %v2353_v62  ;;  %v2496_v10 = vmax.f32 %v2495_v27, %v2473_v43 }
 0x269   : > { %v2479_v57 = vpop.f32.mrf.mxu1 }
 0x26a   : > { %v7803_v3 = vadd.f32 %v2479_v57, %v2355_v47  ;;  %2497 = vmax.xlane.f32.xlu0 %v2496_v10  ;;  %v2500_v63 = vmax.f32 %v2499_v6, %v7798_v30  ;;  %v2689_v10 = vld [vmem:[%s9867_s2 + $0x78] sm:$0xff]  ;;  %v7962_v57 = vand.u32 4294901760, %v2704_v23 }
 0x26b   : > { %v2484_v53 = vpop.f32.mrf.mxu1  ;;  %v7960_v4 = vand.u32 4294901760, %v2689_v10 }
 0x26c   : > { %v7808_v13 = vadd.f32 %v2484_v53, %v2360_v54  ;;  %v2501_v21 = vmax.f32 %v2500_v63, %v7803_v3  ;;  %v2703_v54 = vld [vmem:[%s9867_s2 + $0xe8] sm:$0xff]  ;;  %v7973_v63 = vand.u32 4294901760, %v2688_v45 }
 0x26d   : > { %v2486_v38 = vpop.f32.mrf.mxu1  ;;  %v7975_v53 = vand.u32 4294901760, %v2703_v54 }
 0x26e   : > { %v2505_v15 = vmax.f32 %v2504_v44, %v7808_v13  ;;  %v7812_v7 = vadd.f32 %v2486_v38, %v2362_v33  ;;  %2502 = vmax.xlane.f32.xlu1 %v2501_v21  ;;  %v2702_v33 = vld [vmem:[%s9867_s2 + $0xe0] sm:$0xff]  ;;  %v7989_v38 = vsub.f32 %v2689_v10, %v7960_v4 }
 0x270   : > { %v2506_v51 = vmax.f32 %v2505_v15, %v7812_v7  ;;  %v7992_v15 = vsub.f32 %v2704_v23, %v7962_v57 }
 0x272   : > { %2507 = vmax.xlane.f32.xlu1 %v2506_v51  ;;  %v7998_v51 = vsub.f32 %v2688_v45, %v7973_v63  ;;  %v2701_v45 = vld [vmem:[%s9867_s2 + $0xd8] sm:$0xff] }
 0x2ef   : > { %v7816_v18 = vpop.xlane.xlu0 %2492 }
 0x2f0   : > { %vm2514_vm1 = vcmp.eq.f32.partialorder %v7749_v59, %v7816_v18  ;;  %vm2515_vm2 = vcmp.eq.f32.partialorder %v7742_v55, %v7816_v18  ;;  %vm2516_vm3 = vcmp.eq.f32.partialorder %v7758_v0, %v7816_v18  ;;  %vm2517_vm4 = vcmp.eq.f32.partialorder %v7766_v29, %v7816_v18 }
 0x2f1   : > { %v7828_v61 = vsel %vm2514_vm1, %v2510_v32, 512  ;;  %v7830_v16 = vsel %vm2515_vm2, %v2511_v42, 512  ;;  %v7836_v58 = vsel %vm2516_vm3, %v2512_v1, 512  ;;  %v7839_v59 = vsel %vm2517_vm4, %v7818_v31, 512 }
 0x2f2   : > { %10539 = vst [vmem:[#allocation23_spill] sm:$0xff] %v7828_v61  ;;  %10540 = vst [vmem:[#allocation20_spill] sm:$0xff] %v7830_v16  ;;  %vm2546_vm5 = vcmp.lt.s32.totalorder %v7828_v61, %v7830_v16 }
 0x2f3   : > { %v7834_v56 = vpop.xlane.xlu0 %2497  ;;  %10541 = vst [vmem:[#allocation33_spill] sm:$0xff] %v7836_v58  ;;  %10542 = vst [vmem:[#allocation37_spill] sm:$0xff] %v7839_v59  ;;  %v2547_v55 = vsel %vm2546_vm5, %v7828_v61, %v7830_v16 }
 0x2f4   : > { %vm2518_vm6 = vcmp.eq.f32.partialorder %v7762_v28, %v7834_v56  ;;  %vm2519_vm7 = vcmp.eq.f32.partialorder %v7755_v36, %v7834_v56  ;;  %vm2548_vm8 = vcmp.lt.s32.totalorder %v2547_v55, %v7836_v58  ;;  %vm2520_vm9 = vcmp.eq.f32.partialorder %v7778_v11, %v7834_v56 }
 0x2f5   : > { %v7850_v0 = vsel %vm2518_vm6, %v2510_v32, 512  ;;  %v7852_v29 = vsel %vm2519_vm7, %v2511_v42, 512  ;;  %v2549_v35 = vsel %vm2548_vm8, %v2547_v55, %v7836_v58  ;;  %vm2521_vm10 = vcmp.eq.f32.partialorder %v2473_v43, %v7834_v56 }
 0x2f6   : > { %10543 = vst [vmem:[#allocation40_spill] sm:$0xff] %v7850_v0  ;;  %10544 = vst [vmem:[#allocation36_spill] sm:$0xff] %v7852_v29  ;;  %vm2550_vm11 = vcmp.lt.s32.totalorder %v2549_v35, %v7839_v59  ;;  %vm2566_vm12 = vcmp.lt.s32.totalorder %v7850_v0, %v7852_v29  ;;  %v7864_v34 = vsel %vm2520_vm9, %v2512_v1, 512  ;;  %v7867_v11 = vsel %vm2521_vm10, %v7818_v31, 512 }
 0x2f7   : > { %v7859_v28 = vpop.xlane.xlu1 %2502  ;;  %v7862_v36 = vsel %vm2550_vm11, %v2549_v35, %v7839_v59  ;;  %10545 = vst [vmem:[#allocation39_spill] sm:$0xff] %v7864_v34  ;;  %10546 = vst [vmem:[#allocation42_spill] sm:$0xff] %v7867_v11  ;;  %v2567_v39 = vsel %vm2566_vm12, %v7850_v0, %v7852_v29  ;;  %v10038_v55 = vand.u32 4294901760, %v7989_v38  ;;  %v10037_v35 = vand.u32 4294901760, %v7992_v15 }
 0x2f8   : > { %vm2522_vm13 = vcmp.eq.f32.partialorder %v7783_v25, %v7859_v28  ;;  %vm2523_vm14 = vcmp.eq.f32.partialorder %v7772_v40, %v7859_v28  ;;  %v2553_v2 = vshra.s32 %v7862_v36, 16  ;;  %vm2568_vm15 = vcmp.lt.s32.totalorder %v2567_v39, %v7864_v34 }
 0x2f9   : > { %v7877_v12 = vsel %vm2522_vm13, %v2510_v32, 512  ;;  %v7879_v17 = vsel %vm2523_vm14, %v2511_v42, 512  ;;  %v2569_v20 = vsel %vm2568_vm15, %v2567_v39, %v7864_v34  ;;  %vm2524_vm1 = vcmp.eq.f32.partialorder %v7798_v30, %v7859_v28  ;;  %v2705_v30 = vld [vmem:[%s9867_s2 + $0xf8] sm:$0xff] }
 0x2fa   : > { %10547 = vst [vmem:[#allocation27_spill] sm:$0xff] %v7877_v12  ;;  %10548 = vst [vmem:[#allocation22_spill] sm:$0xff] %v7879_v17  ;;  %v7884_v37 = vcvt.s32.f32 %v2553_v2  ;;  %vm2570_vm2 = vcmp.lt.s32.totalorder %v2569_v20, %v7867_v11  ;;  %vm2525_vm3 = vcmp.eq.f32.partialorder %v7803_v3, %v7859_v28  ;;  %v7894_v60 = vsel %vm2524_vm1, %v2512_v1, 512  ;;  %v2687_v3 = vld [vmem:[%s9867_s2 + $0x68] sm:$0xff] }
 0x2fb   : > { %v7887_v25 = vpop.xlane.xlu1 %2507  ;;  %v7890_v40 = vsel %vm2570_vm2, %v2569_v20, %v7867_v11  ;;  %10549 = vst [vmem:[#allocation28_spill] sm:$0xff] %v7894_v60  ;;  %vm2586_vm4 = vcmp.lt.s32.totalorder %v7877_v12, %v7879_v17  ;;  %v7916_v27 = vsel %vm2525_vm3, %v7818_v31, 512  ;;  %v7977_v44 = vand.u32 4294901760, %v2687_v3 }
 0x2fc   : > { %vm2526_vm5 = vcmp.eq.f32.partialorder %v7801_v46, %v7887_v25  ;;  %vm2527_vm6 = vcmp.eq.f32.partialorder %v7794_v8, %v7887_v25  ;;  %2556 = vmin.xlane.f32.xlu0 %v7884_v37  ;;  %v2573_v19 = vshra.s32 %v7890_v40, 16  ;;  %v2587_v5 = vsel %vm2586_vm4, %v7877_v12, %v7879_v17  ;;  %10552 = vst [vmem:[#allocation25_spill] sm:$0xff] %v7916_v27 }
 0x2fd   : > { %v7906_v26 = vsel %vm2526_vm5, %v2510_v32, 512  ;;  %v7908_v41 = vsel %vm2527_vm6, %v2511_v42, 512  ;;  %vm2588_vm7 = vcmp.lt.s32.totalorder %v2587_v5, %v7894_v60  ;;  %vm2528_vm8 = vcmp.eq.f32.partialorder %v7808_v13, %v7887_v25  ;;  %v2686_v13 = vld [vmem:[%s9867_s2 + $0x60] sm:$0xff] }
 0x2fe   : > { %10550 = vst [vmem:[#allocation17_spill] sm:$0xff] %v7906_v26  ;;  %10551 = vst [vmem:[#allocation29_spill] sm:$0xff] %v7908_v41  ;;  %v7913_v62 = vcvt.s32.f32 %v2573_v19  ;;  %v2589_v43 = vsel %vm2588_vm7, %v2587_v5, %v7894_v60  ;;  %vm2529_vm10 = vcmp.eq.f32.partialorder %v7812_v7, %v7887_v25  ;;  %vm2606_vm11 = vcmp.lt.s32.totalorder %v7906_v26, %v7908_v41 }
 0x2ff   : > { %vm2590_vm9 = vcmp.lt.s32.totalorder %v2589_v43, %v7916_v27  ;;  %v7928_v22 = vsel %vm2528_vm8, %v2512_v1, 512  ;;  %v2607_v6 = vsel %vm2606_vm11, %v7906_v26, %v7908_v41  ;;  %v7935_v8 = vsel %vm2529_vm10, %v7818_v31, 512 }
 0x300   : > { %2576 = vmin.xlane.f32.xlu1 %v7913_v62  ;;  %v7926_v24 = vsel %vm2590_vm9, %v2589_v43, %v7916_v27  ;;  %10553 = vst [vmem:[#allocation16_spill] sm:$0xff] %v7928_v22  ;;  %vm2608_vm12 = vcmp.lt.s32.totalorder %v2607_v6, %v7928_v22  ;;  %10554 = vst [vmem:[#allocation30_spill] sm:$0xff] %v7935_v8  ;;  %v7958_v46 = vand.u32 4294901760, %v2705_v30  ;;  %v7994_v7 = vand.u32 4294901760, %v2702_v33 }
 0x301   : > { %v2593_v9 = vshra.s32 %v7926_v24, 16  ;;  %v2609_v52 = vsel %vm2608_vm12, %v2607_v6, %v7928_v22  ;;  %v8001_v32 = vsub.f32 %v2703_v54, %v7975_v53  ;;  %v8004_v42 = vsub.f32 %v2687_v3, %v7977_v44  ;;  %v2685_v54 = vld [vmem:[%s9867_s2 + $0x58] sm:$0xff]  ;;  %v2700_v3 = vld [vmem:[%s9867_s2 + $0xd0] sm:$0xff] }
 0x302   : > { %vm2610_vm13 = vcmp.lt.s32.totalorder %v2609_v52, %v7935_v8  ;;  %v7986_v21 = vsub.f32 %v2705_v30, %v7958_v46  ;;  %5529 = vmatprep.subr.mxu0 %v7958_v46  ;;  %v8006_v1 = vand.u32 4294901760, %v2686_v13  ;;  %v8013_v39 = vsub.f32 %v2702_v33, %v7994_v7 }
 0x303   : > { %v7938_v50 = vcvt.s32.f32 %v2593_v9  ;;  %v7942_v14 = vsel %vm2610_vm13, %v2609_v52, %v7935_v8  ;;  %10556 = vst [vmem:[#allocation38_spill] sm:$0xff] %v8004_v42  ;;  %5530 = vmatpush3.msra.mxu0 %v7960_v4  ;;  %v10036_v2 = vand.u32 4294901760, %v7998_v51  ;;  %v10034_v20 = vand.u32 4294901760, %v8001_v32 }
 0x304   : > { %v2613_v48 = vshra.s32 %v7942_v14, 16  ;;  %10555 = vst [vmem:[#allocation34_spill] sm:$0xff] %v7986_v21  ;;  %v10040_v31 = vand.u32 4294901760, %v7986_v21  ;;  %10557 = vst [vmem:[#allocation32_spill] sm:$0xff] %v8013_v39  ;;  %5531 = vmatprep.subr.mxu0 %v7962_v57  ;;  %v10035_v19 = vand.u32 4294901760, %v8004_v42  ;;  %v8020_v5 = vsub.f32 %v2686_v13, %v8006_v1 }
 0x305   : > { %2596 = vmin.xlane.f32.xlu0 %v7938_v50  ;;  %5532 = vmatpush3.msra.mxu0 %v7973_v63  ;;  %v2899_v6 = vsub.f32 %v7989_v38, %v10038_v55  ;;  %v3018_v9 = vsub.f32 %v7992_v15, %v10037_v35  ;;  %v10039_v52 = vand.u32 4294901760, %v8013_v39  ;;  %v3025_v30 = vsub.f32 %v8001_v32, %v10034_v20  ;;  %v2699_v35 = vld [vmem:[%s9867_s2 + $0xc8] sm:$0xff] }
 0x306   : > { %v7946_v47 = vcvt.s32.f32 %v2613_v48  ;;  %10558 = vst [vmem:[#allocation19_spill] sm:$0xff] %v8020_v5  ;;  %v3011_v43 = vsub.f32 %v7986_v21, %v10040_v31  ;;  %5533 = vmatprep.subr.mxu0 %v7975_v53  ;;  %v2906_v48 = vsub.f32 %v7998_v51, %v10036_v2  ;;  %v2913_v10 = vsub.f32 %v8004_v42, %v10035_v19  ;;  %v2684_v2 = vld [vmem:[%s9867_s2 + $0x50] sm:$0xff]  ;;  %v2683_v55 = vld [vmem:[%s9867_s2 + $0x48] sm:$0xff]  ;;  %v2698_v31 = vld [vmem:[%s9867_s2 + $0xc0] sm:$0xff] }
 0x307   : > { %v10048_v23 = vand.u32 4294901760, %v8020_v5  ;;  %5534 = vmatpush3.msra.mxu0 %v7977_v44  ;;  %v2900_v13 = vand.u32 4294901760, %v2899_v6  ;;  %v3019_v20 = vand.u32 4294901760, %v3018_v9  ;;  %v3032_v19 = vsub.f32 %v8013_v39, %v10039_v52 }
 0x308   : > { %2616 = vmin.xlane.f32.xlu1 %v7946_v47  ;;  %v3012_v33 = vand.u32 4294901760, %v3011_v43  ;;  %5535 = vmatprep.subr.mxu0 %v7994_v7  ;;  %v2907_v43 = vand.u32 4294901760, %v2906_v48  ;;  %v3026_v6 = vand.u32 4294901760, %v3025_v30  ;;  %v2914_v9 = vand.u32 4294901760, %v2913_v10  ;;  %v2682_v48 = vld [vmem:[%s9867_s2 + $0x40] sm:$0xff] }
 0x309   : > { %v2920_v52 = vsub.f32 %v8020_v5, %v10048_v23  ;;  %5536 = vmatpush3.msra.mxu0 %v8006_v1  ;;  %v3033_v49 = vand.u32 4294901760, %v3032_v19  ;;  %v8074_v22 = vand.u32 4294901760, %v2701_v45  ;;  %v8076_v8 = vand.u32 4294901760, %v2685_v54 }
 0x30a   : > { %5573 = vmatprep.subr.mxu1 %v3012_v33  ;;  %v8078_v60 = vand.u32 4294901760, %v2700_v3  ;;  %v8083_v10 = vand.u32 4294901760, %v2684_v2  ;;  %v8085_v23 = vand.u32 4294901760, %v2699_v35  ;;  %v8087_v27 = vand.u32 4294901760, %v2683_v55 }
 0x30b   : > { %10559 = vst [vmem:[#allocation35_spill] sm:$0xff] %v8074_v22  ;;  %5574 = vmatpush3.msra.mxu1 %v2900_v13  ;;  %v2921_v30 = vand.u32 4294901760, %v2920_v52  ;;  %v8090_v19 = vsub.f32 %v2701_v45, %v8074_v22  ;;  %v8093_v33 = vsub.f32 %v2685_v54, %v8076_v8  ;;  %v8098_v11 = vand.u32 4294901760, %v2698_v31  ;;  %5537 = vmatprep.subr.mxu0 %v8074_v22 }
 0x30c   : > { %10560 = vst [vmem:[#allocation31_spill] sm:$0xff] %v8087_v27  ;;  %5575 = vmatprep.subr.mxu1 %v3019_v20  ;;  %v8096_v34 = vsub.f32 %v2700_v3, %v8078_v60  ;;  %v8102_v52 = vsub.f32 %v2684_v2, %v8083_v10  ;;  %v8105_v13 = vsub.f32 %v2699_v35, %v8085_v23  ;;  %v8110_v45 = vand.u32 4294901760, %v2682_v48 }
 0x30d   : > { %10561 = vst [vmem:[#allocation41_spill] sm:$0xff] %v8090_v19  ;;  %10562 = vst [vmem:[#allocation43_spill] sm:$0xff] %v8093_v33  ;;  %5576 = vmatpush3.msra.mxu1 %v2907_v43  ;;  %v8108_v20 = vsub.f32 %v2683_v55, %v8087_v27  ;;  %5538 = vmatpush3.msra.mxu0 %v8076_v8  ;;  %v10057_v54 = vand.u32 4294901760, %v8090_v19  ;;  %v10060_v3 = vand.u32 4294901760, %v8093_v33 }
 0x30e   : > { %10563 = vst [vmem:[#allocation44_spill] sm:$0xff] %v8096_v34  ;;  %10564 = vst [vmem:[#allocation45_spill] sm:$0xff] %v8098_v11  ;;  %5577 = vmatprep.subr.mxu1 %v3026_v6  ;;  %v10063_v43 = vand.u32 4294901760, %v8096_v34  ;;  %v8117_v2 = vsub.f32 %v2698_v31, %v8098_v11  ;;  %5539 = vmatprep.subr.mxu0 %v8078_v60  ;;  %v10064_v55 = vand.u32 4294901760, %v8102_v52 }
 0x30f   : > { %10565 = vst [vmem:[#allocation14_spill] sm:$0xff] %v8102_v52  ;;  %10566 = vst [vmem:[#allocation15_spill] sm:$0xff] %v8105_v13  ;;  %5578 = vmatpush3.msra.mxu1 %v2914_v9  ;;  %v8124_v6 = vsub.f32 %v2682_v48, %v8110_v45  ;;  %5540 = vmatpush3.msra.mxu0 %v8083_v10  ;;  %v3039_v31 = vsub.f32 %v8090_v19, %v10057_v54  ;;  %v10571_v48 = vand.u32 4294901760, %v8105_v13 }
 0x310   : > { %10567 = vst [vmem:[#allocation7_spill] sm:$0xff] %v8108_v20  ;;  %10568 = vst [vmem:[#allocation18_spill] sm:$0xff] %v8110_v45  ;;  %5579 = vmatprep.subr.mxu1 %v3033_v49  ;;  %v2927_v9 = vsub.f32 %v8093_v33, %v10060_v3  ;;  %v3046_v35 = vsub.f32 %v8096_v34, %v10063_v43  ;;  %5541 = vmatprep.subr.mxu0 %v8085_v23  ;;  %v10572_v59 = vand.u32 4294901760, %v8108_v20  ;;  %v2697_v43 = vld [vmem:[%s9867_s2 + $0xb8] sm:$0xff]  ;;  %v2679_v34 = vld [vmem:[%s9867_s2 + $0x28] sm:$0xff] }
 0x311   : > { %10569 = vst [vmem:[#allocation11_spill] sm:$0xff] %v8117_v2  ;;  %10570 = vst [vmem:[#allocation13_spill] sm:$0xff] %v8124_v6  ;;  %5580 = vmatpush3.msra.mxu1 %v2921_v30  ;;  %v2934_v49 = vsub.f32 %v8102_v52, %v10064_v55  ;;  %v3053_v54 = vsub.f32 %v8105_v13, %v10571_v48  ;;  %v2681_v30 = vld [vmem:[%s9867_s2 + $0x38] sm:$0xff]  ;;  %v2696_v55 = vld [vmem:[%s9867_s2 + $0xb0] sm:$0xff]  ;;  %5542 = vmatpush3.msra.mxu0 %v8087_v27  ;;  %v3040_v48 = vand.u32 4294901760, %v3039_v31 }
 0x312   : > { %v2941_v3 = vsub.f32 %v8108_v20, %v10572_v59  ;;  %v2928_v58 = vand.u32 4294901760, %v2927_v9  ;;  %v3047_v13 = vand.u32 4294901760, %v3046_v35  ;;  %v10573_v59 = vand.u32 4294901760, %v8117_v2  ;;  %v2680_v20 = vld [vmem:[%s9867_s2 + $0x30] sm:$0xff]  ;;  %v2695_v52 = vld [vmem:[%s9867_s2 + $0xa8] sm:$0xff]  ;;  %5543 = vmatprep.subr.mxu0 %v8098_v11 }
 0x313   : > { %v2935_v31 = vand.u32 4294901760, %v2934_v49  ;;  %v3054_v35 = vand.u32 4294901760, %v3053_v54  ;;  %v10574_v19 = vand.u32 4294901760, %v8124_v6  ;;  %5544 = vmatpush3.msra.mxu0 %v8110_v45  ;;  %5581 = vmatprep.subr.mxu1 %v3040_v48  ;;  %v8178_v39 = vand.u32 4294901760, %v2697_v43  ;;  %v2678_v54 = vld [vmem:[%s9867_s2 + $0x20] sm:$0xff] }
 0x314   : > { %v3060_v33 = vsub.f32 %v8117_v2, %v10573_v59  ;;  %v2942_v9 = vand.u32 4294901760, %v2941_v3  ;;  %v2694_v2 = vld [vmem:[%s9867_s2 + $0xa0] sm:$0xff]  ;;  %v8180_v42 = vand.u32 4294901760, %v2681_v30  ;;  %v8182_v11 = vand.u32 4294901760, %v2696_v55  ;;  %5582 = vmatpush3.msra.mxu1 %v2928_v58 }
 0x315   : > { %v2948_v59 = vsub.f32 %v8124_v6, %v10574_v19  ;;  %10575 = vst [vmem:[#allocation5_spill] sm:$0xff] %v8178_v39  ;;  %v8187_v3 = vand.u32 4294901760, %v2680_v20  ;;  %v8189_v49 = vand.u32 4294901760, %v2695_v52  ;;  %v8191_v6 = vand.u32 4294901760, %v2679_v34  ;;  %5583 = vmatprep.subr.mxu1 %v3047_v13  ;;  %5545 = vmatprep.subr.mxu0 %v8178_v39 }
 0x316   : > { %v3061_v5 = vand.u32 4294901760, %v3060_v33  ;;  %v8194_v33 = vsub.f32 %v2697_v43, %v8178_v39  ;;  %v8197_v48 = vsub.f32 %v2681_v30, %v8180_v42  ;;  %v8200_v45 = vsub.f32 %v2696_v55, %v8182_v11  ;;  %5584 = vmatpush3.msra.mxu1 %v2935_v31  ;;  %5546 = vmatpush3.msra.mxu0 %v8180_v42 }
 0x317   : > { %v2949_v19 = vand.u32 4294901760, %v2948_v59  ;;  %10576 = vst [vmem:[#allocation26_spill] sm:$0xff] %v8187_v3  ;;  %10577 = vst [vmem:[#allocation8_spill] sm:$0xff] %v8189_v49  ;;  %v8202_v27 = vand.u32 4294901760, %v2694_v2  ;;  %v8206_v58 = vsub.f32 %v2680_v20, %v8187_v3  ;;  %v8209_v59 = vsub.f32 %v2695_v52, %v8189_v49  ;;  %5585 = vmatprep.subr.mxu1 %v3054_v35 }
 0x318   : > { %10578 = vst [vmem:[#allocation9_spill] sm:$0xff] %v8194_v33  ;;  %10579 = vst [vmem:[#allocation21_spill] sm:$0xff] %v8197_v48  ;;  %v8212_v13 = vsub.f32 %v2679_v34, %v8191_v6  ;;  %v8214_v43 = vand.u32 4294901760, %v2678_v54  ;;  %v10093_v55 = vand.u32 4294901760, %v8194_v33  ;;  %v10096_v30 = vand.u32 4294901760, %v8197_v48  ;;  %5547 = vmatprep.subr.mxu0 %v8182_v11  ;;  %5586 = vmatpush3.msra.mxu1 %v2942_v9 }
 0x319   : > { %10580 = vst [vmem:[#allocation10_spill] sm:$0xff] %v8200_v45  ;;  %10581 = vst [vmem:[#allocation24_spill] sm:$0xff] %v8206_v58  ;;  %v10099_v31 = vand.u32 4294901760, %v8200_v45  ;;  %v8221_v20 = vsub.f32 %v2694_v2, %v8202_v27  ;;  %v10100_v34 = vand.u32 4294901760, %v8206_v58  ;;  %5548 = vmatpush3.msra.mxu0 %v8187_v3  ;;  %5587 = vmatprep.subr.mxu1 %v3061_v5 }
 0x31a   : > { %10582 = vst [vmem:[#allocation12_spill] sm:$0xff] %v8209_v59  ;;  %10583 = vst [vmem:[#allocation6_spill] sm:$0xff] %v8212_v13  ;;  %v8228_v35 = vsub.f32 %v2678_v54, %v8214_v43  ;;  %v3067_v2 = vsub.f32 %v8194_v33, %v10093_v55  ;;  %v2955_v9 = vsub.f32 %v8197_v48, %v10096_v30  ;;  %5549 = vmatprep.subr.mxu0 %v8189_v49 }
 0x31b   : > { %10584 = vst [vmem:[#allocation46_spill] sm:$0xff] %v8221_v20  ;;  %v3074_v52 = vsub.f32 %v8200_v45, %v10099_v31  ;;  %5588 = vmatpush3.msra.mxu1 %v2949_v19  ;;  %v2962_v5 = vsub.f32 %v8206_v58, %v10100_v34  ;;  %v10586_v54 = vand.u32 4294901760, %v8209_v59  ;;  %v10587_v33 = vand.u32 4294901760, %v8212_v13  ;;  %v2693_v31 = vld [vmem:[%s9867_s2 + $0x98] sm:$0xff]  ;;  %v2692_v34 = vld [vmem:[%s9867_s2 + $0x90] sm:$0xff]  ;;  %5550 = vmatpush3.msra.mxu0 %v8191_v6 }
 0x31c   : > { %10585 = vst [vmem:[#allocation47_spill] sm:$0xff] %v8228_v35  ;;  %v2677_v19 = vld [vmem:[%s9867_s2 + $0x18] sm:$0xff]  ;;  %v2956_v39 = vand.u32 4294901760, %v2955_v9  ;;  %5551 = vmatprep.subr.mxu0 %v8202_v27  ;;  %v10589_v58 = vand.u32 4294901760, %v8228_v35  ;;  %v8270_v3 = vand.u32 4294901760, %v2693_v31 }
 0x31d   : > { %v3081_v55 = vsub.f32 %v8209_v59, %v10586_v54  ;;  %v2969_v30 = vsub.f32 %v8212_v13, %v10587_v33  ;;  %v3068_v54 = vand.u32 4294901760, %v3067_v2  ;;  %v3075_v59 = vand.u32 4294901760, %v3074_v52  ;;  %5552 = vmatpush3.msra.mxu0 %v8214_v43 }
 0x31e   : > { %v10588_v33 = vand.u32 4294901760, %v8221_v20  ;;  %v2963_v13 = vand.u32 4294901760, %v2962_v5  ;;  %v2976_v45 = vsub.f32 %v8228_v35, %v10589_v58  ;;  %v8272_v2 = vand.u32 4294901760, %v2677_v19  ;;  %5553 = vmatprep.subr.mxu0 %v8270_v3 }
 0x31f   : > { %5589 = vmatprep.subr.mxu1 %v3068_v54  ;;  %v3082_v49 = vand.u32 4294901760, %v3081_v55  ;;  %v8274_v52 = vand.u32 4294901760, %v2692_v34  ;;  %v2970_v9 = vand.u32 4294901760, %v2969_v30  ;;  %v8277_v5 = vsub.f32 %v2693_v31, %v8270_v3 }
 0x320   : > { %v3088_v48 = vsub.f32 %v8221_v20, %v10588_v33  ;;  %5590 = vmatpush3.msra.mxu1 %v2956_v39  ;;  %v8280_v20 = vsub.f32 %v2677_v19, %v8272_v2  ;;  %v2977_v55 = vand.u32 4294901760, %v2976_v45  ;;  %5554 = vmatpush3.msra.mxu0 %v8272_v2  ;;  %v2552_v19 = vand.u32 65535, %v7862_v36 }
 0x321   : > { %5591 = vmatprep.subr.mxu1 %v3075_v59  ;;  %10590 = vst [vmem:[#allocation48_spill] sm:$0xff] %v8277_v5  ;;  %v8283_v58 = vsub.f32 %v2692_v34, %v8274_v52  ;;  %v10117_v39 = vand.u32 4294901760, %v8277_v5  ;;  %5555 = vmatprep.subr.mxu0 %v8274_v52 }
 0x322   : > { %v3089_v33 = vand.u32 4294901760, %v3088_v48  ;;  %10591 = vst [vmem:[#allocation49_spill] sm:$0xff] %v8280_v20  ;;  %5592 = vmatpush3.msra.mxu1 %v2963_v13  ;;  %v10115_v48 = vand.u32 4294901760, %v8280_v20 }
 0x323   : > { %10592 = vst [vmem:[#allocation50_spill] sm:$0xff] %v8283_v58  ;;  %5593 = vmatprep.subr.mxu1 %v3082_v49  ;;  %v10116_v59 = vand.u32 4294901760, %v8283_v58  ;;  %v3095_v30 = vsub.f32 %v8277_v5, %v10117_v39 }
 0x324   : > { %5594 = vmatpush3.msra.mxu1 %v2970_v9  ;;  %v2983_v45 = vsub.f32 %v8280_v20, %v10115_v48  ;;  %v2554_v9 = vcvt.s32.f32 %v2552_v19  ;;  %v6100_v20 = vld [vmem:[%s6578_s10 + $0x8] sm:$0xff] }
 0x325   : > { %5595 = vmatprep.subr.mxu1 %v3089_v33  ;;  %v3102_v49 = vsub.f32 %v8283_v58, %v10116_v59  ;;  %v3096_v13 = vand.u32 4294901760, %v3095_v30  ;;  %v2572_v33 = vand.u32 65535, %v7890_v40  ;;  %v2676_v40 = vld [vmem:[%s9867_s2 + $0x10] sm:$0xff]  ;;  %v4804_v5 = vmul.f32 %v6100_v20, %v6100_v20 }
 0x326   : > { %5596 = vmatpush3.msra.mxu1 %v2977_v55  ;;  %v2984_v31 = vand.u32 4294901760, %v2983_v45  ;;  %v2592_v45 = vand.u32 65535, %v7926_v24 }
 0x327   : > { %v3103_v34 = vand.u32 4294901760, %v3102_v49  ;;  %5597 = vmatprep.subr.mxu1 %v3096_v13  ;;  %v2574_v30 = vcvt.s32.f32 %v2572_v33  ;;  %v2612_v49 = vand.u32 65535, %v7942_v14  ;;  %v8315_v13 = vand.u32 4294901760, %v2676_v40  ;;  %v2675_v14 = vld [vmem:[%s9867_s2 + $0x8] sm:$0xff]  ;;  %v2690_v33 = vld [vmem:[%s9867_s2 + $0x80] sm:$0xff] }
 0x328   : > { %5598 = vmatpush3.msra.mxu1 %v2984_v31  ;;  %v2594_v31 = vcvt.s32.f32 %v2592_v45 }
 0x329   : > { %5599 = vmatprep.subr.mxu1 %v3103_v34  ;;  %10593 = vst [vmem:[#allocation51_spill] sm:$0xff] %v8315_v13  ;;  %v8331_v19 = vsub.f32 %v2676_v40, %v8315_v13  ;;  %5556 = vmatpush3.msra.mxu0 %v8315_v13  ;;  %v2614_v45 = vcvt.s32.f32 %v2612_v49  ;;  %v6099_v40 = vld [vmem:[%s6578_s10 + $0x10] sm:$0xff] }
 0x32a   : > { %v4805_v59 = vmul.f32 %v6099_v40, %v6099_v40 }
 0x32b   : > { %10594 = vst [vmem:[#allocation52_spill] sm:$0xff] %v8331_v19  ;;  %v10128_v39 = vand.u32 4294901760, %v8331_v19 }
 0x385   : > { %v8301_v54 = vpop.xlane.xlu0 %2556 }
 0x386   : > { %vm2558_vm14 = vcmp.eq.f32.partialorder %v7884_v37, %v8301_v54  ;;  %v2691_v37 = vld [vmem:[%s9867_s2 + $0x88] sm:$0xff] }
 0x387   : > { %v2559_v48 = vsel %vm2558_vm14, %v2554_v9, inf  ;;  %v8323_v34 = vand.u32 4294901760, %v2691_v37  ;;  %v8333_v9 = vand.u32 4294901760, %v2675_v14 }
 0x388   : > { %2560 = vmin.xlane.f32.xlu0 %v2559_v48 }
 0x389   : > { %v8306_v55 = vpop.xlane.xlu1 %2576  ;;  %10595 = vst [vmem:[#allocation53_spill] sm:$0xff] %v8333_v9  ;;  %5557 = vmatprep.subr.mxu0 %v8323_v34  ;;  %v8351_v58 = vsub.f32 %v2675_v14, %v8333_v9  ;;  %v2990_v14 = vsub.f32 %v8331_v19, %v10128_v39  ;;  %v6101_v39 = vld [vmem:[%s6578_s10 + $0x18] sm:$0xff] }
 0x38a   : > { %vm2578_vm15 = vcmp.eq.f32.partialorder %v7913_v62, %v8306_v55  ;;  %v6098_v62 = vld [vmem:[%s6578_s10] sm:$0xff]  ;;  %5558 = vmatpush3.msra.mxu0 %v8333_v9  ;;  %v4806_v35 = vmul.f32 %v6101_v39, %v6101_v39  ;;  %s5044_s10 = sshll.u32 %s6213_s19, 5 }
 0x38b   : > { %v2579_v36 = vsel %vm2578_vm15, %v2574_v30, inf  ;;  %v4803_v24 = vmul.f32 %v6098_v62, %v6098_v62  ;;  %v8342_v62 = vand.u32 4294901760, %v2690_v33  ;;  %v2991_v19 = vand.u32 4294901760, %v2990_v14 }
 0x38c   : > { %2580 = vmin.xlane.f32.xlu1 %v2579_v36  ;;  %v8340_v36 = vsub.f32 %v2691_v37, %v8323_v34 }
 0x38d   : > { %10597 = vst [vmem:[#allocation55_spill] sm:$0xff] %v8342_v62  ;;  %v8362_v40 = vsub.f32 %v2690_v33, %v8342_v62  ;;  %5559 = vmatprep.subr.mxu0 %v8342_v62  ;;  %5600 = vmatpush3.msra.mxu1 %v2991_v19  ;;  %v2563_v19 = vcvt.f32.s32 %v8301_v54 }
 0x38e   : > { %v8320_v48 = vpop.xlane.xlu0 %2596  ;;  %10596 = vst [vmem:[#allocation54_spill] sm:$0xff] %v8340_v36 }
 0x38f   : > { %vm2598_vm1 = vcmp.eq.f32.partialorder %v7938_v50, %v8320_v48  ;;  %v2674_v50 = vld [vmem:[%s9867_s2] sm:$0xff]  ;;  %v10138_v33 = vand.u32 4294901760, %v8362_v40 }
 0x390   : > { %v2599_v30 = vsel %vm2598_vm1, %v2594_v31, inf  ;;  %v8353_v49 = vand.u32 4294901760, %v2674_v50  ;;  %v4807_v31 = vsel %vm280_vm0, %v4803_v24, 0.0 }
 0x391   : > { %2600 = vmin.xlane.f32.xlu0 %v2599_v30  ;;  %v8356_v37 = vpop.xlane.xlu1 %2616  ;;  %v10133_v30 = vand.u32 4294901760, %v8340_v36 }
 0x392   : > { %vm2618_vm2 = vcmp.eq.f32.partialorder %v7946_v47, %v8356_v37  ;;  %5560 = vmatpush3.msra.mxu0 %v8353_v49  ;;  %v8377_v62 = vsub.f32 %v2674_v50, %v8353_v49  ;;  %v4813_v47 = vsel %vm280_vm0, %v4805_v59, 0.0  ;;  %v3116_v50 = vsub.f32 %v8362_v40, %v10138_v33 }
 0x393   : > { %v2619_v20 = vsel %vm2618_vm2, %v2614_v45, inf  ;;  %v3109_v24 = vsub.f32 %v8340_v36, %v10133_v30  ;;  %5617 = vmatprep.subr.mxu0 %v7986_v21  ;;  %v10599_v45 = vand.u32 4294901760, %v8351_v58  ;;  %v4810_v30 = vsel %vm280_vm0, %v4804_v5, 0.0 }
 0x394   : > { %10598 = vst [vmem:[#allocation56_spill] sm:$0xff] %v8377_v62  ;;  %2620 = vmin.xlane.f32.xlu1 %v2619_v20  ;;  %v10137_v21 = vand.u32 4294901760, %v8377_v62  ;;  %v3117_v59 = vand.u32 4294901760, %v3116_v50  ;;  %v4816_v5 = vsel %vm280_vm0, %v4806_v35, 0.0  ;;  %v2583_v20 = vcvt.f32.s32 %v8306_v55 }
 0x395   : > { %4808 = vadd.xlane.f32.xlu0 %v4807_v31  ;;  %v2997_v9 = vsub.f32 %v8351_v58, %v10599_v45  ;;  %v3110_v36 = vand.u32 4294901760, %v3109_v24  ;;  %v2603_v35 = vcvt.f32.s32 %v8320_v48  ;;  %v2623_v55 = vcvt.f32.s32 %v8356_v37 }
 0x396   : > { %v3004_v39 = vsub.f32 %v8377_v62, %v10137_v21 }
 0x397   : > { %v2998_v31 = vand.u32 4294901760, %v2997_v9  ;;  %5601 = vmatprep.subr.mxu1 %v3110_v36  ;;  %v2564_v36 = vshll.u32 %v2563_v19, 16  ;;  %v8425_v19 = vmul.f32 2.0, %v7834_v56  ;;  %v8442_v56 = vmul.f32 2.0, %v7859_v28 }
 0x398   : > { %4811 = vadd.xlane.f32.xlu1 %v4810_v30  ;;  %v3005_v14 = vand.u32 4294901760, %v3004_v39  ;;  %v10601_v30 = vlaneseq  ;;  %v2584_v39 = vshll.u32 %v2583_v20, 16 }
 0x399   : > { %4814 = vadd.xlane.f32.xlu0 %v4813_v47  ;;  %5602 = vmatpush3.msra.mxu1 %v2998_v31  ;;  %v8403_v31 = vmul.f32 2.0, %v7816_v18  ;;  %v10143_v18 = vmov 1.0  }
 0x39a   : > { %5603 = vmatprep.subr.mxu1 %v3117_v59  ;;  %v4833_v47 = vshrl.u32 %v10601_v30, 7  ;;  %v8405_v59 = vstv %s5044_s10  ;;  %s6166_s10 = smov [#allocation2]  }
 0x39b   : > { %5604 = vmatpush3.msra.mxu1 %v3005_v14  ;;  %s6106_s12 = sshll.u32 %s6166_s10, 4  ;;  %s6107_s12 = int_to_ptr.vmem [resolvable:$false] %s6106_s12 }
 0x39c   : > { %4817 = vadd.xlane.f32.xlu1 %v4816_v5  ;;  %5661 = vmatprep.subr.mxu1 %v7958_v46  ;;  %v10139_v5 = vmov 0.0   ;;  %v8438_v20 = vadd.s32 %v8405_v59, %v4833_v47  ;;  %v4834_v30 = vadd.s32 8, %v4833_v47  ;;  %s6108_s13 = scalar_lea.vmem %s6107_s12, 256  ;;  %p6109_p0 = scmp.lt.s32.totalorder %s4884_s23, %s6107_s12 }
 0x39d   : > { %p6110_p1 = scmp.lt.s32.totalorder %s6108_s13, %s6102_s6 }
 0x39e   : > { %vm4842_vm6 = vcmp.lt.s32.totalorder %v8438_v20, 64 }
 0x39f   : > { %p6111_p2 = por %p6110_p1, %p6109_p0 }
 0x3a1   : > { %p6112_p3 = pnand %p6111_p2, %p6105_p13 }
 0x411   : > { %v2561_v9 = vpop.xlane.xlu0 %2560 }
 0x412   : > { %v2562_v24 = vcvt.f32.s32 %v2561_v9 }
 0x414   : > { %v8398_v45 = vadd.s32 %v2564_v36, %v2562_v24  ;;  %v2604_v24 = vshll.u32 %v2603_v35, 16 }
 0x415   : > { %v2581_v50 = vpop.xlane.xlu1 %2580 }
 0x416   : > { %10600 = vst [vmem:[#allocation57_spill] sm:$0xff] %v8398_v45  ;;  %v2582_v54 = vcvt.f32.s32 %v2581_v50  ;;  %vm2627_vm0 = vcmp.eq.s32.totalorder %v7830_v16, %v8398_v45  ;;  %vm2626_vm3 = vcmp.eq.s32.totalorder %v7828_v61, %v8398_v45  ;;  %v8445_v50 = vmul.f32 2.0, %v7887_v25 }
 0x417   : > { %v4977_v48 = vsel %vm2627_vm0, 1.0, %v10139_v5  ;;  %4992 = vmatprep.mubr.msk.f32.mxu1 %vm2627_vm0, %v10143_v18  ;;  %v4976_v14 = vsel %vm2626_vm3, 1.0, %v10139_v5 }
 0x418   : > { %v8427_v37 = vadd.s32 %v2584_v39, %v2582_v54  ;;  %v8429_v9 = vsub.f32 %v4977_v48, %v4977_v48  ;;  %v8431_v36 = vsub.f32 %v4976_v14, %v4976_v14  ;;  %4993 = vmatmul.mubr.msk.f32.vlgmr.msra.gmra.mxu1 %vm2626_vm3, %v10143_v18  ;;  %v2624_v48 = vshll.u32 %v2623_v55, 16 }
 0x419   : > { %5662 = vmatpush3.msra.mxu1 %v7960_v4 }
 0x41a   : > { %10602 = vst [vmem:[#allocation58_spill] sm:$0xff] %v8427_v37  ;;  %5663 = vmatprep.subr.mxu1 %v7962_v57  ;;  %v2601_v39 = vpop.xlane.xlu0 %2600  ;;  %vm2631_vm4 = vcmp.eq.s32.totalorder %v7852_v29, %v8427_v37  ;;  %vm2630_vm5 = vcmp.eq.s32.totalorder %v7850_v0, %v8427_v37  ;;  %v10151_v35 = vand.u32 4294901760, %v8429_v9  ;;  %v10152_v54 = vand.u32 4294901760, %v8431_v36 }
 0x41b   : > { %v2602_v28 = vcvt.f32.s32 %v2601_v39  ;;  %5664 = vmatpush3.msra.mxu1 %v7973_v63  ;;  %v4981_v25 = vsel %vm2631_vm4, 1.0, %v10139_v5  ;;  %4994 = vmatprep.mubr.msk.f32.mxu1 %vm2631_vm4, %v10143_v18  ;;  %v4980_v14 = vsel %vm2630_vm5, 1.0, %v10139_v5  ;;  %v4836_v5 = vadd.s32 24, %v4833_v47 }
 0x41c   : > { %v8467_v21 = vsub.f32 %v4981_v25, %v4981_v25  ;;  %5665 = vmatprep.subr.mxu1 %v7975_v53  ;;  %v8470_v55 = vsub.f32 %v4980_v14, %v4980_v14  ;;  %4995 = vmatmul.mubr.msk.f32.gmra.mxu1 %vm2630_vm5, %v10143_v18  ;;  %v2837_v39 = vsub.f32 %v8429_v9, %v10151_v35  ;;  %v4835_v14 = vadd.s32 16, %v4833_v47 }
 0x41d   : > { %v8480_v33 = vadd.s32 %v2604_v24, %v2602_v28  ;;  %5666 = vmatpush3.msra.mxu1 %v7977_v44  ;;  %v2843_v25 = vsub.f32 %v8431_v36, %v10152_v54  ;;  %v2621_v18 = vpop.xlane.xlu1 %2620  ;;  %v4839_v29 = vadd.s32 %v8405_v59, %v4834_v30  ;;  %v10604_v47 = vmov 0.0  }
 0x41e   : > { %5667 = vmatprep.subr.mxu1 %v7994_v7  ;;  %v4809_v0 = vpop.xlane.xlu0 %4808  ;;  %v2838_v37 = vand.u32 4294901760, %v2837_v39  ;;  %v10163_v61 = vand.u32 4294901760, %v8467_v21  ;;  %v2622_v35 = vcvt.f32.s32 %v2621_v18  ;;  %v10605_v30 = vmov 1.0  }
 0x41f   : > { %10603 = vst [vmem:[#allocation59_spill] sm:$0xff] %v8480_v33  ;;  %v5040_v28 = vadd.f32 -2.0, %v4809_v0  ;;  %5668 = vmatpush3.msra.mxu1 %v8006_v1  ;;  %vm2635_vm7 = vcmp.eq.s32.totalorder %v7879_v17, %v8480_v33  ;;  %vm2634_vm8 = vcmp.eq.s32.totalorder %v7877_v12, %v8480_v33  ;;  %v2844_v18 = vand.u32 4294901760, %v2843_v25  ;;  %v10632_v12 = vld [vmem:[#allocation53_spill] sm:$0xff]  ;;  %v10633_v33 = vld [vmem:[#allocation6_spill] sm:$0xff] }
 0x420   : > { %v4985_v39 = vsel %vm2635_vm7, 1.0, %v10604_v47  ;;  %4996 = vmatprep.mubr.msk.f32.mxu1 %vm2635_vm7, %v10605_v30  ;;  %5669 = vmatprep.subr.mxu1 %v8074_v22  ;;  %v4984_v0 = vsel %vm2634_vm8, 1.0, %v10604_v47  ;;  %v2852_v54 = vsub.f32 %v8467_v21, %v10163_v61  ;;  %v8511_v24 = vadd.s32 %v2624_v48, %v2622_v35 }
 0x421   : > { %v8513_v45 = vsub.f32 %v4985_v39, %v4985_v39  ;;  %2839 = vmatprep.mubr.f32.mxu0 %v2838_v37  ;;  %v4840_v17 = vadd.s32 %v8405_v59, %v4835_v14  ;;  %v4841_v16 = vadd.s32 %v8405_v59, %v4836_v5  ;;  %v4827_v22 = vsub.f32 %v5040_v28, %v8403_v31  ;;  %v4812_v35 = vpop.xlane.xlu1 %4811 }
 0x422   : > { %10606 = vst [vmem:[#allocation60_spill] sm:$0xff] %v8511_v24  ;;  %v8518_v62 = vsub.f32 %v4984_v0, %v4984_v0  ;;  %4997 = vmatmul.mubr.msk.f32.gmra.mxu1 %vm2634_vm8, %v10605_v30  ;;  %2845 = vmatmul.mubr.f32.vlgmr.msra.gmra.mxu0 %v2844_v18  ;;  %v4815_v25 = vpop.xlane.xlu0 %4814  ;;  %vm4843_vm9 = vcmp.lt.s32.totalorder %v4839_v29, 64  ;;  %v10607_v48 = vand.u32 4294901760, %v8470_v55  ;;  %v5041_v59 = vadd.f32 -2.0, %v4812_v35 }
 0x423   : > { %5670 = vmatpush3.msra.mxu1 %v8076_v8  ;;  %5618 = vmatpush3.msra.mxu0 %v7989_v38  ;;  %v5042_v31 = vadd.f32 -2.0, %v4815_v25  ;;  %vm2639_vm10 = vcmp.eq.s32.totalorder %v7908_v41, %v8511_v24  ;;  %v2853_v5 = vand.u32 4294901760, %v2852_v54  ;;  %vm2638_vm11 = vcmp.eq.s32.totalorder %v7906_v26, %v8511_v24  ;;  %v10616_v26 = vld [vmem:[#allocation5_spill] sm:$0xff] }
 0x424   : > { %v2858_v37 = vsub.f32 %v8470_v55, %v10607_v48  ;;  %5671 = vmatprep.subr.mxu1 %v8078_v60  ;;  %5619 = vmatprep.subr.mxu0 %v7992_v15  ;;  %v4989_v14 = vsel %vm2639_vm10, 1.0, %v10604_v47  ;;  %v10162_v39 = vand.u32 4294901760, %v8513_v45  ;;  %v4828_v18 = vsub.f32 %v5041_v59, %v8425_v19  ;;  %v10628_v24 = vld [vmem:[#allocation21_spill] sm:$0xff] }
 0x425   : > { %v4829_v0 = vsub.f32 %v5042_v31, %v8442_v56  ;;  %5672 = vmatpush3.msra.mxu1 %v8083_v10  ;;  %v8543_v54 = vsub.f32 %v4989_v14, %v4989_v14  ;;  %4998 = vmatprep.mubr.msk.f32.mxu1 %vm2639_vm10, %v10605_v30  ;;  %v4988_v25 = vsel %vm2638_vm11, 1.0, %v10604_v47  ;;  %vm4844_vm12 = vcmp.lt.s32.totalorder %v4840_v17, 64  ;;  %v4818_v56 = vpop.xlane.xlu1 %4817  ;;  %v10612_v17 = vld [vmem:[#allocation32_spill] sm:$0xff] }
 0x426   : > { %v2859_v28 = vand.u32 4294901760, %v2858_v37  ;;  %5620 = vmatpush3.msra.mxu0 %v7998_v51  ;;  %5673 = vmatprep.subr.mxu1 %v8085_v23  ;;  %v8555_v19 = vsub.f32 %v4988_v25, %v4988_v25  ;;  %v2867_v35 = vsub.f32 %v8513_v45, %v10162_v39  ;;  %v10164_v48 = vand.u32 4294901760, %v8518_v62  ;;  %v10608_v39 = vld [vmem:[#allocation31_spill] sm:$0xff] }
 0x427   : > { %v4846_v37 = vsel %vm4842_vm6, %v4827_v22, 0.0  ;;  %v4847_v31 = vsel %vm4843_vm9, %v4828_v18, 0.0  ;;  %2854 = vmatprep.mubr.f32.mxu0 %v2853_v5  ;;  %4999 = vmatmul.mubr.msk.f32.gmra.mxu1 %vm2638_vm11, %v10605_v30  ;;  %v5043_v59 = vadd.f32 -2.0, %v4818_v56  ;;  %v10167_v14 = vand.u32 4294901760, %v8543_v54  ;;  %v10609_v5 = vld [vmem:[#allocation45_spill] sm:$0xff] }
 0x428   : > { %v4850_v25 = vadd.f32 %v4847_v31, %v4846_v37  ;;  %5621 = vmatprep.subr.mxu0 %v8001_v32  ;;  %5674 = vmatpush3.msra.mxu1 %v10608_v39  ;;  %vm4845_vm13 = vcmp.lt.s32.totalorder %v4841_v16, 64  ;;  %v2873_v29 = vsub.f32 %v8518_v62, %v10164_v48  ;;  %v4848_v20 = vsel %vm4844_vm12, %v4829_v0, 0.0  ;;  %v10610_v37 = vld [vmem:[#allocation38_spill] sm:$0xff] }
 0x429   : > { %2860 = vmatmul.mubr.f32.gmra.mxu0 %v2859_v28  ;;  %5675 = vmatprep.subr.mxu1 %v10609_v5  ;;  %v4830_v18 = vsub.f32 %v5043_v59, %v8445_v50  ;;  %v2868_v56 = vand.u32 4294901760, %v2867_v35  ;;  %v10611_v31 = vand.u32 4294901760, %v8429_v9  ;;  %v2882_v48 = vsub.f32 %v8543_v54, %v10167_v14  ;;  %v10613_v28 = vld [vmem:[#allocation18_spill] sm:$0xff]  ;;  %v10615_v59 = vld [vmem:[#allocation19_spill] sm:$0xff] }
 0x42a   : > { %5622 = vmatpush3.msra.mxu0 %v10610_v37  ;;  %v4851_v16 = vadd.f32 %v4850_v25, %v4848_v20  ;;  %v2874_v61 = vand.u32 4294901760, %v2873_v29  ;;  %5676 = vmatpush3.msra.mxu1 %v10613_v28  ;;  %v10614_v0 = vand.u32 4294901760, %v8555_v19  ;;  %v10617_v25 = vld [vmem:[#allocation41_spill] sm:$0xff]  ;;  %v10621_v14 = vld [vmem:[#allocation14_spill] sm:$0xff] }
 0x42b   : > { %3412 = vmatprep.mubr.f32.mxu1 %v10611_v31  ;;  %v4849_v22 = vsel %vm4845_vm13, %v4830_v18, 0.0  ;;  %5623 = vmatprep.subr.mxu0 %v10612_v17  ;;  %v2883_v20 = vand.u32 4294901760, %v2882_v48  ;;  %v10618_v18 = vld [vmem:[#allocation43_spill] sm:$0xff] }
 0x42c   : > { %v2888_v50 = vsub.f32 %v8555_v19, %v10614_v0  ;;  %v4852_v35 = vadd.f32 %v4851_v16, %v4849_v22  ;;  %5624 = vmatpush3.msra.mxu0 %v10615_v59  ;;  %5677 = vmatprep.subr.mxu1 %v10616_v26  ;;  %v10619_v16 = vld [vmem:[#allocation44_spill] sm:$0xff]  ;;  %v10620_v0 = vld [vmem:[#allocation26_spill] sm:$0xff]  ;;  %v10624_v48 = vld [vmem:[#allocation7_spill] sm:$0xff] }
 0x42d   : > { %2869 = vmatprep.mubr.f32.mxu0 %v2868_v56  ;;  %5625 = vmatprep.subr.mxu0 %v10617_v25  ;;  %v10622_v56 = vld [vmem:[#allocation8_spill] sm:$0xff] }
 0x42e   : > { %v4853_v29 = vrot.slane %v4852_v35, 4  ;;  %5678 = vmatpush3.msra.mxu1 %v8180_v42  ;;  %2875 = vmatmul.mubr.f32.gmra.mxu0 %v2874_v61  ;;  %v2889_v31 = vand.u32 4294901760, %v2888_v50  ;;  %v10623_v61 = vld [vmem:[#allocation15_spill] sm:$0xff] }
 0x42f   : > { %5626 = vmatpush3.msra.mxu0 %v10618_v18  ;;  %5679 = vmatprep.subr.mxu1 %v8182_v11 }
 0x430   : > { %v4854_v22 = vadd.f32 %v4853_v29, %v4852_v35  ;;  %5627 = vmatprep.subr.mxu0 %v10619_v16  ;;  %5680 = vmatpush3.msra.mxu1 %v10620_v0  ;;  %v10625_v35 = vld [vmem:[#allocation11_spill] sm:$0xff]  ;;  %v10626_v29 = vld [vmem:[#allocation13_spill] sm:$0xff] }
 0x431   : > { %5628 = vmatpush3.msra.mxu0 %v10621_v14  ;;  %5681 = vmatprep.subr.mxu1 %v10622_v56 }
 0x432   : > { %v4855_v47 = vrot.slane %v4854_v22, 2  ;;  %2884 = vmatprep.mubr.f32.mxu0 %v2883_v20  ;;  %5629 = vmatprep.subr.mxu0 %v10623_v61 }
 0x433   : > { %5682 = vmatpush3.msra.mxu1 %v8191_v6  ;;  %2890 = vmatmul.mubr.f32.gmra.mxu0 %v2889_v31  ;;  %v10627_v31 = vld [vmem:[#allocation9_spill] sm:$0xff] }
 0x434   : > { %5630 = vmatpush3.msra.mxu0 %v10624_v48  ;;  %5683 = vmatprep.subr.mxu1 %v8202_v27  ;;  %v4856_v50 = vadd.f32 %v4855_v47, %v4854_v22  ;;  %v10629_v47 = vld [vmem:[#allocation10_spill] sm:$0xff]  ;;  %v10631_v22 = vld [vmem:[#allocation12_spill] sm:$0xff] }
 0x435   : > { %5631 = vmatprep.subr.mxu0 %v10625_v35  ;;  %3278 = vmatprep.mubr.f32.mxu0 %v8429_v9  ;;  %v10630_v9 = vld [vmem:[#allocation24_spill] sm:$0xff] }
 0x436   : > { %5684 = vmatpush3.msra.mxu1 %v8214_v43  ;;  %5632 = vmatpush3.msra.mxu0 %v10626_v29  ;;  %v4857_v20 = vrot.slane %v4856_v50, 1 }
 0x437   : > { %5685 = vmatprep.subr.mxu1 %v8270_v3  ;;  %5633 = vmatprep.subr.mxu0 %v10627_v31 }
 0x438   : > { %5686 = vmatpush3.msra.mxu1 %v8272_v2  ;;  %5634 = vmatpush3.msra.mxu0 %v10628_v24  ;;  %v4858_v41 = vadd.f32 %v4857_v20, %v4856_v50  ;;  %v10634_v50 = vld [vmem:[#allocation55_spill] sm:$0xff]  ;;  %v10635_v20 = vld [vmem:[#allocation46_spill] sm:$0xff] }
 0x439   : > { %5687 = vmatprep.subr.mxu1 %v8274_v52  ;;  %5635 = vmatprep.subr.mxu0 %v10629_v47 }
 0x43a   : > { %5688 = vmatpush3.msra.mxu1 %v8315_v13  ;;  %5636 = vmatpush3.msra.mxu0 %v10630_v9  ;;  %4859 = vst [vmem:[%s199_s11] sm:$0xff] %v4858_v41  ;;  %v10636_v13 = vld [vmem:[#allocation47_spill] sm:$0xff]  ;;  %v10637_v9 = vand.u32 4294901760, %v8431_v36  ;;  %v10638_v41 = vld [vmem:[#allocation48_spill] sm:$0xff] }
 0x43b   : > { %5689 = vmatprep.subr.mxu1 %v8323_v34  ;;  %5637 = vmatprep.subr.mxu0 %v10631_v22  ;;  %v10639_v22 = vand.u32 4294901760, %v8467_v21 }
 0x43c   : > { %5690 = vmatpush3.msra.mxu1 %v10632_v12  ;;  %5638 = vmatpush3.msra.mxu0 %v10633_v33  ;;  %v10640_v33 = vld [vmem:[#allocation49_spill] sm:$0xff] }
 0x43d   : > { %5691 = vmatprep.subr.mxu1 %v10634_v50  ;;  %5639 = vmatprep.subr.mxu0 %v10635_v20  ;;  %v10641_v20 = vld [vmem:[#allocation50_spill] sm:$0xff] }
 0x43e   : > { %5692 = vmatpush3.msra.mxu1 %v8353_v49  ;;  %5640 = vmatpush3.msra.mxu0 %v10636_v13  ;;  %v10642_v13 = vld [vmem:[#allocation52_spill] sm:$0xff] }
 0x43f   : > { %3416 = vmatmul.mubr.f32.vlgmr.msra.gmra.mxu1 %v10637_v9  ;;  %5749 = vmatprep.subr.mxu1 %v7958_v46  ;;  %v10643_v9 = vand.u32 4294901760, %v8470_v55  ;;  %v10644_v46 = vld [vmem:[#allocation54_spill] sm:$0xff] }
 0x440   : > { %5641 = vmatprep.subr.mxu0 %v10638_v41  ;;  %3423 = vmatprep.mubr.f32.mxu1 %v10639_v22  ;;  %v10645_v22 = vand.u32 4294901760, %v8513_v45 }
 0x441   : > { %5750 = vmatpush3.msra.mxu1 %v7960_v4  ;;  %5642 = vmatpush3.msra.mxu0 %v10640_v33  ;;  %v10646_v4 = vld [vmem:[#allocation56_spill] sm:$0xff] }
 0x442   : > { %5751 = vmatprep.subr.mxu1 %v7962_v57  ;;  %5643 = vmatprep.subr.mxu0 %v10641_v20  ;;  %v10647_v57 = vand.u32 4294901760, %v8518_v62 }
 0x443   : > { %5752 = vmatpush3.msra.mxu1 %v7973_v63  ;;  %5644 = vmatpush3.msra.mxu0 %v10642_v13  ;;  %v10648_v63 = vld [vmem:[#allocation35_spill] sm:$0xff] }
 0x444   : > { %3427 = vmatmul.mubr.f32.gmra.mxu1 %v10643_v9  ;;  %5753 = vmatprep.subr.mxu1 %v7975_v53  ;;  %v10649_v53 = vand.u32 4294901760, %v8543_v54 }
 0x445   : > { %5645 = vmatprep.subr.mxu0 %v10644_v46  ;;  %3434 = vmatprep.mubr.f32.mxu1 %v10645_v22  ;;  %v10655_v22 = vand.u32 4294901760, %v8555_v19 }
 0x446   : > { %5754 = vmatpush3.msra.mxu1 %v7977_v44  ;;  %5646 = vmatpush3.msra.mxu0 %v8351_v58  ;;  %v10650_v44 = vld [vmem:[#allocation34_spill] sm:$0xff] }
 0x447   : > { %5755 = vmatprep.subr.mxu1 %v7994_v7  ;;  %5647 = vmatprep.subr.mxu0 %v8362_v40  ;;  %v10651_v9 = vand.u32 4294901760, %v10650_v44  ;;  %v10652_v7 = vand.u32 4294901760, %v7989_v38  ;;  %v10680_v38 = vand.u32 4294901760, %v10627_v31  ;;  %v10683_v31 = vand.u32 4294901760, %v10628_v24 }
 0x448   : > { %5756 = vmatpush3.msra.mxu1 %v8006_v1  ;;  %5648 = vmatpush3.msra.mxu0 %v10646_v4  ;;  %v10653_v1 = vand.u32 4294901760, %v7992_v15  ;;  %v10658_v15 = vld [vmem:[#allocation57_spill] sm:$0xff] }
 0x449   : > { %3438 = vmatmul.mubr.f32.gmra.mxu1 %v10647_v57  ;;  %5757 = vmatprep.subr.mxu1 %v10648_v63 }
 0x44a   : > { %3281 = vmatmul.mubr.f32.vlgmr.msra.gmra.mxu0 %v8431_v36  ;;  %3445 = vmatprep.mubr.f32.mxu1 %v10649_v53  ;;  %v10654_v36 = vand.u32 4294901760, %v7998_v51  ;;  %v2736_v51 = vld [vmem:[%s9867_s2 + $0x1f0] sm:$0xff] }
 0x44b   : > { %5705 = vmatprep.subr.mxu0 %v10651_v9  ;;  %5758 = vmatpush3.msra.mxu1 %v8076_v8  ;;  %v2737_v8 = vld [vmem:[%s9867_s2 + $0x1f8] sm:$0xff] }
 0x44c   : > { %3287 = vmatprep.mubr.f32.mxu0 %v8467_v21  ;;  %5706 = vmatpush3.msra.mxu0 %v10652_v7  ;;  %v2721_v21 = vld [vmem:[%s9867_s2 + $0x178] sm:$0xff] }
 0x44d   : > { %5759 = vmatprep.subr.mxu1 %v8078_v60  ;;  %5707 = vmatprep.subr.mxu0 %v10653_v1  ;;  %v10656_v60 = vand.u32 4294901760, %v8001_v32  ;;  %v10659_v32 = vand.u32 4294901760, %v10610_v37  ;;  %v8709_v37 = vand.u32 4294901760, %v2736_v51 }
 0x44e   : > { %5760 = vmatpush3.msra.mxu1 %v8083_v10  ;;  %5708 = vmatpush3.msra.mxu0 %v10654_v36  ;;  %v2720_v10 = vld [vmem:[%s9867_s2 + $0x170] sm:$0xff] }
 0x44f   : > { %3449 = vmatmul.mubr.f32.gmra.mxu1 %v10655_v22  ;;  %5761 = vmatprep.subr.mxu1 %v8085_v23  ;;  %v8696_v23 = vand.u32 4294901760, %v2737_v8  ;;  %10663 = vst [vmem:[#allocation45_spill] sm:$0xff] %v8709_v37  ;;  %v8713_v57 = vand.u32 4294901760, %v2720_v10 }
 0x450   : > { %3290 = vmatmul.mubr.f32.gmra.mxu0 %v8470_v55  ;;  %5709 = vmatprep.subr.mxu0 %v10656_v60  ;;  %v10660_v55 = vand.u32 4294901760, %v10612_v17  ;;  %v10665_v17 = vand.u32 4294901760, %v10617_v25  ;;  %v10669_v25 = vand.u32 4294901760, %v10619_v16  ;;  %v10678_v60 = vand.u32 4294901760, %v10626_v29 }
 0x451   : > { %5762 = vmatpush3.msra.mxu1 %v10608_v39  ;;  %5008 = vmatprep.mubr.msk.f32.mxu1 %vm2627_vm0, %v10605_v30  ;;  %v8704_v39 = vand.u32 4294901760, %v2721_v21  ;;  %10664 = vst [vmem:[#allocation38_spill] sm:$0xff] %v8713_v57  ;;  %v8748_v53 = vsub.f32 %v2720_v10, %v8713_v57 }
 0x452   : > { %3296 = vmatprep.mubr.f32.mxu0 %v8513_v45  ;;  %5710 = vmatpush3.msra.mxu0 %v10659_v32  ;;  %v10662_v45 = vand.u32 4294901760, %v10615_v59  ;;  %v2719_v59 = vld [vmem:[%s9867_s2 + $0x168] sm:$0xff] }
 0x453   : > { %5763 = vmatprep.subr.mxu1 %v10609_v5  ;;  %5711 = vmatprep.subr.mxu0 %v10660_v55  ;;  %10661 = vst [vmem:[#allocation31_spill] sm:$0xff] %v8704_v39  ;;  %v2735_v5 = vld [vmem:[%s9867_s2 + $0x1e8] sm:$0xff]  ;;  %10673 = vst [vmem:[#allocation41_spill] sm:$0xff] %v8748_v53  ;;  %v8756_v44 = vand.u32 4294901760, %v2719_v59  ;;  %v10179_v36 = vand.u32 4294901760, %v8748_v53 }
 0x454   : > { %5764 = vmatpush3.msra.mxu1 %v10613_v28  ;;  %5712 = vmatpush3.msra.mxu0 %v10662_v45  ;;  %v8722_v28 = vsub.f32 %v2737_v8, %v8696_v23  ;;  %v8739_v63 = vand.u32 4294901760, %v2735_v5  ;;  %v2732_v8 = vld [vmem:[%s9867_s2 + $0x1d0] sm:$0xff]  ;;  %v2731_v32 = vld [vmem:[%s9867_s2 + $0x1c8] sm:$0xff] }
 0x455   : > { %5765 = vmatprep.subr.mxu1 %v10616_v26  ;;  %3299 = vmatmul.mubr.f32.gmra.mxu0 %v8518_v62  ;;  %v10667_v26 = vand.u32 4294901760, %v10618_v18  ;;  %v8728_v62 = vsub.f32 %v2721_v21, %v8704_v39  ;;  %v10672_v18 = vand.u32 4294901760, %v10621_v14  ;;  %v2733_v14 = vld [vmem:[%s9867_s2 + $0x1d8] sm:$0xff]  ;;  %v2716_v21 = vld [vmem:[%s9867_s2 + $0x150] sm:$0xff]  ;;  %v3936_v24 = vsub.f32 %v8748_v53, %v10179_v36  ;;  %v2723_v53 = vld [vmem:[%s9867_s2 + $0x188] sm:$0xff] }
 0x456   : > { %5713 = vmatprep.subr.mxu0 %v10665_v17  ;;  %5766 = vmatpush3.msra.mxu1 %v8180_v42  ;;  %10666 = vst [vmem:[#allocation32_spill] sm:$0xff] %v8722_v28  ;;  %v8737_v42 = vsub.f32 %v2736_v51, %v8709_v37  ;;  %10671 = vst [vmem:[#allocation5_spill] sm:$0xff] %v8739_v63  ;;  %v10184_v16 = vand.u32 4294901760, %v8722_v28  ;;  %v8775_v1 = vsub.f32 %v2735_v5, %v8739_v63  ;;  %v2730_v17 = vld [vmem:[%s9867_s2 + $0x1c0] sm:$0xff] }
 0x457   : > { %3305 = vmatprep.mubr.f32.mxu0 %v8543_v54  ;;  %5714 = vmatpush3.msra.mxu0 %v10667_v26  ;;  %10668 = vst [vmem:[#allocation18_spill] sm:$0xff] %v8728_v62  ;;  %v2734_v54 = vld [vmem:[%s9867_s2 + $0x1e0] sm:$0xff]  ;;  %v10183_v9 = vand.u32 4294901760, %v8728_v62  ;;  %v8786_v22 = vand.u32 4294901760, %v2733_v14  ;;  %v8830_v5 = vand.u32 4294901760, %v2732_v8 }
 0x458   : > { %5767 = vmatprep.subr.mxu1 %v8182_v11  ;;  %5715 = vmatprep.subr.mxu0 %v10669_v25  ;;  %10670 = vst [vmem:[#allocation19_spill] sm:$0xff] %v8737_v42  ;;  %v2718_v11 = vld [vmem:[%s9867_s2 + $0x160] sm:$0xff]  ;;  %v8765_v7 = vand.u32 4294901760, %v2734_v54  ;;  %10676 = vst [vmem:[#allocation43_spill] sm:$0xff] %v8775_v1  ;;  %v10178_v55 = vand.u32 4294901760, %v8775_v1 }
 0x459   : > { %5768 = vmatpush3.msra.mxu1 %v10620_v0  ;;  %5716 = vmatpush3.msra.mxu0 %v10672_v18  ;;  %v10674_v0 = vand.u32 4294901760, %v10623_v61  ;;  %v8777_v61 = vand.u32 4294901760, %v2718_v11  ;;  %v8842_v26 = vsub.f32 %v2733_v14, %v8786_v22  ;;  %v10688_v25 = vld [vmem:[#allocation51_spill] sm:$0xff]  ;;  %v10691_v14 = vld [vmem:[#allocation12_spill] sm:$0xff] }
 0x45a   : > { %5769 = vmatprep.subr.mxu1 %v10622_v56  ;;  %3308 = vmatmul.mubr.f32.gmra.mxu0 %v8555_v19  ;;  %v10675_v56 = vand.u32 4294901760, %v10624_v48  ;;  %v10181_v19 = vand.u32 4294901760, %v8737_v42  ;;  %v10677_v48 = vand.u32 4294901760, %v10625_v35  ;;  %v8798_v35 = vsub.f32 %v2719_v59, %v8756_v44 }
 0x45b   : > { %5717 = vmatprep.subr.mxu0 %v10674_v0  ;;  %5770 = vmatpush3.msra.mxu1 %v8191_v6  ;;  %v2717_v6 = vld [vmem:[%s9867_s2 + $0x158] sm:$0xff]  ;;  %v8810_v29 = vsub.f32 %v2734_v54, %v8765_v7  ;;  %v8828_v45 = vsub.f32 %v2718_v11, %v8777_v61  ;;  %10686 = vst [vmem:[#allocation15_spill] sm:$0xff] %v8842_v26  ;;  %v8844_v59 = vand.u32 4294901760, %v2716_v21  ;;  %v10689_v54 = vld [vmem:[#allocation24_spill] sm:$0xff]  ;;  %v8850_v0 = vand.u32 4294901760, %v2731_v32 }
 0x45c   : > { %5718 = vmatpush3.msra.mxu0 %v10675_v56  ;;  %5000 = vmatprep.mubr.msk.f32.mxu0 %vm2627_vm0, %v10605_v30  ;;  %10679 = vst [vmem:[#allocation44_spill] sm:$0xff] %v8798_v35  ;;  %v8812_v51 = vand.u32 4294901760, %v2717_v6  ;;  %v4048_v10 = vsub.f32 %v8737_v42, %v10181_v19  ;;  %v10690_v18 = vand.u32 4294901760, %v10689_v54  ;;  %v2714_v56 = vld [vmem:[%s9867_s2 + $0x140] sm:$0xff]  ;;  %v10710_v19 = vld [vmem:[#allocation58_spill] sm:$0xff] }
 0x45d   : > { %5771 = vmatprep.subr.mxu1 %v8202_v27  ;;  %5719 = vmatprep.subr.mxu0 %v10677_v48  ;;  %v4041_v27 = vsub.f32 %v8722_v28, %v10184_v16  ;;  %10681 = vst [vmem:[#allocation26_spill] sm:$0xff] %v8810_v29  ;;  %10684 = vst [vmem:[#allocation8_spill] sm:$0xff] %v8828_v45  ;;  %v10692_v48 = vand.u32 4294901760, %v10691_v14  ;;  %v2713_v14 = vld [vmem:[%s9867_s2 + $0x138] sm:$0xff] }
 0x45e   : > { %5772 = vmatpush3.msra.mxu1 %v8214_v43  ;;  %5720 = vmatpush3.msra.mxu0 %v10678_v60  ;;  %v3929_v43 = vsub.f32 %v8728_v62, %v10183_v9  ;;  %10682 = vst [vmem:[#allocation14_spill] sm:$0xff] %v8812_v51  ;;  %10687 = vst [vmem:[#allocation7_spill] sm:$0xff] %v8844_v59  ;;  %v10715_v9 = vand.u32 4294901760, %v10642_v13 }
 0x45f   : > { %5773 = vmatprep.subr.mxu1 %v8270_v3  ;;  %5721 = vmatprep.subr.mxu0 %v10680_v38  ;;  %v2715_v3 = vld [vmem:[%s9867_s2 + $0x148] sm:$0xff]  ;;  %v4042_v11 = vand.u32 4294901760, %v4041_v27  ;;  %v10182_v38 = vand.u32 4294901760, %v8810_v29  ;;  %v8862_v27 = vsub.f32 %v2717_v6, %v8812_v51  ;;  %v8877_v6 = vsub.f32 %v2732_v8, %v8830_v5  ;;  %v10702_v8 = vld [vmem:[#allocation47_spill] sm:$0xff] }
 0x460   : > { %5774 = vmatpush3.msra.mxu1 %v8272_v2  ;;  %5722 = vmatpush3.msra.mxu0 %v10683_v31  ;;  %v10685_v2 = vand.u32 4294901760, %v10629_v47  ;;  %v8852_v47 = vand.u32 4294901760, %v2715_v3  ;;  %v3930_v60 = vand.u32 4294901760, %v3929_v43  ;;  %v8864_v31 = vand.u32 4294901760, %v2730_v17 }
 0x461   : > { %5775 = vmatprep.subr.mxu1 %v8274_v52  ;;  %v10180_v52 = vand.u32 4294901760, %v8798_v35  ;;  %10693 = vst [vmem:[#allocation11_spill] sm:$0xff] %v8862_v27  ;;  %v4055_v43 = vsub.f32 %v8775_v1, %v10178_v55  ;;  %10697 = vst [vmem:[#allocation9_spill] sm:$0xff] %v8877_v6  ;;  %v8889_v55 = vand.u32 4294901760, %v2714_v56  ;;  %v10703_v36 = vand.u32 4294901760, %v10702_v8  ;;  %v2708_v1 = vld [vmem:[%s9867_s2 + $0x110] sm:$0xff] }
 0x462   : > { %5723 = vmatprep.subr.mxu0 %v10685_v2  ;;  %5776 = vmatpush3.msra.mxu1 %v10688_v25  ;;  %10694 = vst [vmem:[#allocation13_spill] sm:$0xff] %v8864_v31  ;;  %v2729_v2 = vld [vmem:[%s9867_s2 + $0x1b8] sm:$0xff]  ;;  %v8916_v8 = vand.u32 4294901760, %v2713_v14  ;;  %v10718_v13 = vand.u32 4294901760, %v8877_v6  ;;  %v9113_v42 = vand.u32 4294901760, %v2708_v1 }
 0x463   : > { %5724 = vmatpush3.msra.mxu0 %v10690_v18  ;;  %5777 = vmatprep.subr.mxu1 %v8323_v34  ;;  %v10695_v25 = vld [vmem:[#allocation6_spill] sm:$0xff]  ;;  %v4049_v34 = vand.u32 4294901760, %v4048_v10  ;;  %v10186_v18 = vand.u32 4294901760, %v8828_v45  ;;  %v10185_v10 = vand.u32 4294901760, %v8842_v26  ;;  %10701 = vst [vmem:[#allocation10_spill] sm:$0xff] %v8889_v55  ;;  %v8935_v16 = vsub.f32 %v2714_v56, %v8889_v55 }
 0x464   : > { %5725 = vmatprep.subr.mxu0 %v10692_v48  ;;  %5778 = vmatpush3.msra.mxu1 %v10632_v12  ;;  %v10696_v54 = vand.u32 4294901760, %v10695_v25  ;;  %v10698_v12 = vld [vmem:[#allocation46_spill] sm:$0xff]  ;;  %v3937_v25 = vand.u32 4294901760, %v3936_v24  ;;  %v8901_v24 = vsub.f32 %v2715_v3, %v8852_v47  ;;  %v10708_v3 = vand.u32 4294901760, %v10638_v41  ;;  %10739 = vst [vmem:[#allocation35_spill] sm:$0xff] %v9113_v42 }
 0x465   : > { %5779 = vmatprep.subr.mxu1 %v10634_v50  ;;  %v10699_v48 = vand.u32 4294901760, %v10698_v12  ;;  %v3943_v50 = vsub.f32 %v8798_v35, %v10180_v52  ;;  %v8898_v12 = vsub.f32 %v2731_v32, %v8850_v0  ;;  %v8914_v32 = vsub.f32 %v2730_v17, %v8864_v31  ;;  %10712 = vst [vmem:[#allocation49_spill] sm:$0xff] %v8935_v16 }
 0x466   : > { %5726 = vmatpush3.msra.mxu0 %v10696_v54  ;;  %v8887_v54 = vsub.f32 %v2716_v21, %v8844_v59  ;;  %5780 = vmatpush3.msra.mxu1 %v8353_v49  ;;  %10705 = vst [vmem:[#allocation55_spill] sm:$0xff] %v8901_v24  ;;  %v4062_v49 = vsub.f32 %v8810_v29, %v10182_v38  ;;  %v10711_v17 = vand.u32 4294901760, %v10640_v33  ;;  %v10713_v33 = vand.u32 4294901760, %v10641_v20  ;;  %v2710_v29 = vld [vmem:[%s9867_s2 + $0x120] sm:$0xff]  ;;  %v2724_v21 = vld [vmem:[%s9867_s2 + $0x190] sm:$0xff] }
 0x467   : > { %5727 = vmatprep.subr.mxu0 %v10699_v48  ;;  %10704 = vst [vmem:[#allocation53_spill] sm:$0xff] %v8898_v12  ;;  %v8903_v48 = vand.u32 4294901760, %v2729_v2  ;;  %5009 = vmatmul.mubr.msk.f32.vlgmr.msra.gmra.mxu1 %vm2626_vm3, %v10605_v30  ;;  %10707 = vst [vmem:[#allocation48_spill] sm:$0xff] %v8914_v32  ;;  %v3950_v38 = vsub.f32 %v8828_v45, %v10186_v18  ;;  %v4069_v41 = vsub.f32 %v8842_v26, %v10185_v10  ;;  %v10721_v10 = vld [vmem:[#allocation59_spill] sm:$0xff] }
 0x468   : > { %10700 = vst [vmem:[#allocation21_spill] sm:$0xff] %v8887_v54  ;;  %5728 = vmatpush3.msra.mxu0 %v10703_v36  ;;  %5837 = vmatprep.subr.mxu1 %v4042_v11  ;;  %v10187_v36 = vand.u32 4294901760, %v8862_v27  ;;  %v4056_v11 = vand.u32 4294901760, %v4055_v43  ;;  %v2728_v43 = vld [vmem:[%s9867_s2 + $0x1b0] sm:$0xff]  ;;  %v10723_v26 = vand.u32 4294901760, %v8351_v58  ;;  %v10725_v45 = vand.u32 4294901760, %v8901_v24 }
 0x469   : > { %5729 = vmatprep.subr.mxu0 %v10708_v3  ;;  %5010 = vmatprep.mubr.msk.f32.mxu1 %vm2631_vm4, %v10605_v30  ;;  %v8948_v56 = vsub.f32 %v2729_v2, %v8903_v48  ;;  %v2727_v3 = vld [vmem:[%s9867_s2 + $0x1a8] sm:$0xff] }
 0x46a   : > { %5838 = vmatpush3.msra.mxu1 %v3930_v60  ;;  %5730 = vmatpush3.msra.mxu0 %v10711_v17  ;;  %v2712_v60 = vld [vmem:[%s9867_s2 + $0x130] sm:$0xff]  ;;  %v3944_v17 = vand.u32 4294901760, %v3943_v50  ;;  %v3957_v20 = vsub.f32 %v8862_v27, %v10187_v36  ;;  %v10719_v36 = vand.u32 4294901760, %v10644_v46  ;;  %v8986_v27 = vand.u32 4294901760, %v2727_v3 }
 0x46b   : > { %5839 = vmatprep.subr.mxu1 %v4049_v34  ;;  %5731 = vmatprep.subr.mxu0 %v10713_v33  ;;  %10714 = vst [vmem:[#allocation50_spill] sm:$0xff] %v8948_v56  ;;  %v4063_v34 = vand.u32 4294901760, %v4062_v49  ;;  %v8960_v33 = vsub.f32 %v2713_v14, %v8916_v8  ;;  %v8969_v49 = vand.u32 4294901760, %v2728_v43  ;;  %v8971_v18 = vand.u32 4294901760, %v2712_v60  ;;  %v2711_v14 = vld [vmem:[%s9867_s2 + $0x128] sm:$0xff] }
 0x46c   : > { %5840 = vmatpush3.msra.mxu1 %v3937_v25  ;;  %5732 = vmatpush3.msra.mxu0 %v10715_v9  ;;  %v3951_v25 = vand.u32 4294901760, %v3950_v38  ;;  %v4076_v9 = vsub.f32 %v8877_v6, %v10718_v13  ;;  %v4070_v38 = vand.u32 4294901760, %v4069_v41  ;;  %v10724_v46 = vand.u32 4294901760, %v8898_v12  ;;  %v2725_v6 = vld [vmem:[%s9867_s2 + $0x198] sm:$0xff] }
 0x46d   : > { %10716 = vst [vmem:[#allocation52_spill] sm:$0xff] %v8960_v33  ;;  %5011 = vmatmul.mubr.msk.f32.gmra.mxu1 %vm2630_vm5, %v10605_v30  ;;  %5841 = vmatprep.subr.mxu1 %v4056_v11  ;;  %v10722_v11 = vand.u32 4294901760, %v8887_v54  ;;  %v8996_v41 = vsub.f32 %v8901_v24, %v10725_v45  ;;  %v3958_v58 = vand.u32 4294901760, %v3957_v20  ;;  %v9010_v45 = vand.u32 4294901760, %v2711_v14  ;;  %v10729_v20 = vld [vmem:[#allocation37_spill] sm:$0xff] }
 0x46e   : > { %5733 = vmatprep.subr.mxu0 %v10719_v36  ;;  %5012 = vmatprep.mubr.msk.f32.mxu1 %vm2635_vm7, %v10605_v30  ;;  %v4083_v36 = vsub.f32 %v8898_v12, %v10724_v46  ;;  %vm2629_vm14 = vcmp.eq.s32.totalorder %v10729_v20, %v10658_v15  ;;  %v9059_v12 = vand.u32 4294901760, %v2710_v29 }
 0x46f   : > { %v3964_v13 = vsub.f32 %v8887_v54, %v10722_v11  ;;  %5842 = vmatpush3.msra.mxu1 %v3944_v17  ;;  %5734 = vmatpush3.msra.mxu0 %v10723_v26  ;;  %v2726_v11 = vld [vmem:[%s9867_s2 + $0x1a0] sm:$0xff]  ;;  %v10726_v17 = vand.u32 4294901760, %v8362_v40  ;;  %v10727_v26 = vand.u32 4294901760, %v8914_v32  ;;  %v4077_v40 = vand.u32 4294901760, %v4076_v9 }
 0x470   : > { %5843 = vmatprep.subr.mxu1 %v4063_v34  ;;  %v10728_v34 = vand.u32 4294901760, %v10646_v4  ;;  %v10737_v54 = vmov 0.0  }
 0x471   : > { %5735 = vmatprep.subr.mxu0 %v10726_v17  ;;  %v9007_v46 = vsub.f32 %v8914_v32, %v10727_v26  ;;  %5844 = vmatpush3.msra.mxu1 %v3951_v25  ;;  %v9020_v17 = vsub.f32 %v2728_v43, %v8969_v49  ;;  %v9023_v26 = vsub.f32 %v2712_v60, %v8971_v18  ;;  %v3965_v4 = vand.u32 4294901760, %v3964_v13  ;;  %v10735_v13 = vld [vmem:[#allocation60_spill] sm:$0xff] }
 0x472   : > { %5736 = vmatpush3.msra.mxu0 %v10728_v34  ;;  %5013 = vmatmul.mubr.msk.f32.gmra.mxu1 %vm2634_vm8, %v10605_v30  ;;  %v10732_v25 = vand.u32 4294901760, %v8935_v16  ;;  %v9038_v43 = vsub.f32 %v2727_v3, %v8986_v27  ;;  %v9040_v60 = vand.u32 4294901760, %v2726_v11  ;;  %v2709_v34 = vld [vmem:[%s9867_s2 + $0x118] sm:$0xff]  ;;  %v3972_v3 = vand.u32 4294901760, %v8996_v41 }
 0x473   : > { %10730 = vst [vmem:[#allocation54_spill] sm:$0xff] %v9020_v17  ;;  %5845 = vmatprep.subr.mxu1 %v4070_v38  ;;  %5001 = vmatmul.mubr.msk.f32.vlgmr.msra.gmra.mxu0 %vm2626_vm3, %v10605_v30  ;;  %v10738_v41 = vand.u32 4294901760, %v8960_v33 }
 0x474   : > { %v9035_v9 = vsub.f32 %v8935_v16, %v10732_v25  ;;  %10733 = vst [vmem:[#allocation56_spill] sm:$0xff] %v9038_v43  ;;  %5014 = vmatprep.mubr.msk.f32.mxu1 %vm2639_vm10, %v10605_v30  ;;  %v4084_v25 = vand.u32 4294901760, %v4083_v36  ;;  %v10736_v16 = vand.u32 4294901760, %v8948_v56  ;;  %5793 = vmatprep.subr.mxu0 %v8696_v23  ;;  %v4979_v36 = vsel %vm2629_vm14, 1.0, %v10737_v54 }
 0x475   : > { %5846 = vmatpush3.msra.mxu1 %v3958_v58  ;;  %v9072_v35 = vsub.f32 %v8960_v33, %v10738_v41  ;;  %5002 = vmatprep.mubr.msk.f32.mxu0 %vm2631_vm4, %v10605_v30  ;;  %v4091_v58 = vand.u32 4294901760, %v9007_v46  ;;  %v9090_v33 = vand.u32 4294901760, %v2709_v34  ;;  %v9099_v62 = vsub.f32 %v2726_v11, %v9040_v60  ;;  %v2722_v11 = vld [vmem:[%s9867_s2 + $0x180] sm:$0xff] }
 0x476   : > { %v9057_v24 = vsub.f32 %v8948_v56, %v10736_v16  ;;  %v9075_v16 = vsub.f32 %v2711_v14, %v9010_v45  ;;  %v9077_v56 = vand.u32 4294901760, %v2725_v6  ;;  %5794 = vmatpush3.msra.mxu0 %v8704_v39  ;;  %5847 = vmatprep.subr.mxu1 %v4077_v40  ;;  %v3979_v52 = vand.u32 4294901760, %v9035_v9  ;;  %v2707_v14 = vld [vmem:[%s9867_s2 + $0x108] sm:$0xff] }
 0x477   : > { %5795 = vmatprep.subr.mxu0 %v8709_v37  ;;  %v9101_v46 = vand.u32 4294901760, %v2724_v21  ;;  %5848 = vmatpush3.msra.mxu1 %v3965_v4  ;;  %v9107_v41 = vsub.f32 %v4979_v36, %v4979_v36  ;;  %v9111_v9 = vsub.f32 %v2710_v29, %v9059_v12  ;;  %v3986_v4 = vand.u32 4294901760, %v9072_v35 }
 0x478   : > { %5796 = vmatpush3.msra.mxu0 %v8713_v57  ;;  %v4098_v40 = vand.u32 4294901760, %v9057_v24  ;;  %5015 = vmatmul.mubr.msk.f32.gmra.mxu1 %vm2638_vm11, %v10605_v30  ;;  %v9125_v24 = vsub.f32 %v2725_v6, %v9077_v56  ;;  %v9127_v29 = vand.u32 4294901760, %v2723_v53  ;;  %v2706_v57 = vld [vmem:[%s9867_s2 + $0x100] sm:$0xff]  ;;  %v10741_v35 = vand.u32 4294901760, %v9020_v17 }
 0x479   : > { %5849 = vmatprep.subr.mxu1 %v4084_v25  ;;  %5003 = vmatmul.mubr.msk.f32.gmra.mxu0 %vm2630_vm5, %v10605_v30  ;;  %v10742_v6 = vand.u32 4294901760, %v9023_v26  ;;  %v9144_v37 = vsub.f32 %v2709_v34, %v9090_v33  ;;  %v9146_v39 = vand.u32 4294901760, %v2707_v14  ;;  %v10743_v2 = vand.u32 4294901760, %v9038_v43 }
 0x47a   : > { %5797 = vmatprep.subr.mxu0 %v8739_v63  ;;  %v4104_v25 = vsub.f32 %v9020_v17, %v10741_v35  ;;  %5850 = vmatpush3.msra.mxu1 %v3972_v3  ;;  %v9157_v17 = vsub.f32 %v2724_v21, %v9101_v46  ;;  %v9171_v35 = vand.u32 4294901760, %v2706_v57  ;;  %v10744_v21 = vand.u32 4294901760, %v9075_v16 }
 0x47b   : > { %v3992_v36 = vsub.f32 %v9023_v26, %v10742_v6  ;;  %5016 = vmatprep.mubr.msk.f32.mxu1 %vm2629_vm14, %v10605_v30  ;;  %v4111_v63 = vsub.f32 %v9038_v43, %v10743_v2  ;;  %v9159_v6 = vand.u32 4294901760, %v2722_v11  ;;  %5004 = vmatprep.mubr.msk.f32.mxu0 %vm2635_vm7, %v10605_v30  ;;  %v9169_v2 = vsub.f32 %v2708_v1, %v9113_v42 }
 0x47c   : > { %5798 = vmatpush3.msra.mxu0 %v8756_v44  ;;  %5851 = vmatprep.subr.mxu1 %v4091_v58  ;;  %v3999_v20 = vsub.f32 %v9075_v16, %v10744_v21  ;;  %v9179_v43 = vsub.f32 %v2723_v53, %v9127_v29  ;;  %v4105_v3 = vand.u32 4294901760, %v4104_v25  ;;  %v10237_v34 = vand.u32 4294901760, %v9144_v37 }
 0x47d   : > { %5799 = vmatprep.subr.mxu0 %v8765_v7  ;;  %5852 = vmatpush3.msra.mxu1 %v3979_v52  ;;  %v3993_v1 = vand.u32 4294901760, %v3992_v36  ;;  %v9184_v58 = vsub.f32 %v2707_v14, %v9146_v39  ;;  %v4112_v21 = vand.u32 4294901760, %v4111_v63  ;;  %v10745_v53 = vand.u32 4294901760, %v9099_v62 }
 0x47e   : > { %5800 = vmatpush3.msra.mxu0 %v8777_v61  ;;  %5853 = vmatprep.subr.mxu1 %v4098_v40  ;;  %v9195_v36 = vsub.f32 %v2722_v11, %v9159_v6  ;;  %v10746_v14 = vand.u32 4294901760, %v9107_v41  ;;  %v10747_v32 = vand.u32 4294901760, %v9111_v9  ;;  %v4000_v11 = vand.u32 4294901760, %v3999_v20 }
 0x47f   : > { %5005 = vmatmul.mubr.msk.f32.gmra.mxu0 %vm2634_vm8, %v10605_v30  ;;  %v4118_v52 = vsub.f32 %v9099_v62, %v10745_v53  ;;  %5801 = vmatprep.subr.mxu0 %v8786_v22  ;;  %v9206_v53 = vsub.f32 %v2706_v57, %v9171_v35  ;;  %v10240_v50 = vand.u32 4294901760, %v9179_v43  ;;  %v4013_v57 = vsub.f32 %v9144_v37, %v10237_v34 }
 0x480   : > { %5854 = vmatpush3.msra.mxu1 %v3986_v4  ;;  %v3867_v40 = vsub.f32 %v9107_v41, %v10746_v14  ;;  %v4006_v63 = vsub.f32 %v9111_v9, %v10747_v32  ;;  %5006 = vmatprep.mubr.msk.f32.mxu0 %vm2639_vm10, %v10605_v30  ;;  %v10749_v4 = vand.u32 4294901760, %v9125_v24  ;;  %v10750_v20 = vand.u32 4294901760, %v9157_v17 }
 0x481   : > { %10748 = vst [vmem:[#allocation34_spill] sm:$0xff] %v9206_v53  ;;  %5802 = vmatpush3.msra.mxu0 %v8812_v51  ;;  %5855 = vmatprep.subr.mxu1 %v4105_v3  ;;  %v4119_v38 = vand.u32 4294901760, %v4118_v52  ;;  %v10751_v32 = vand.u32 4294901760, %v9169_v2  ;;  %v10238_v52 = vand.u32 4294901760, %v9206_v53  ;;  %v4014_v28 = vand.u32 4294901760, %v4013_v57 }
 0x482   : > { %v4125_v14 = vsub.f32 %v9125_v24, %v10749_v4  ;;  %5803 = vmatprep.subr.mxu0 %v8830_v5  ;;  %5856 = vmatpush3.msra.mxu1 %v3993_v1  ;;  %v4132_v25 = vsub.f32 %v9157_v17, %v10750_v20  ;;  %v10239_v4 = vand.u32 4294901760, %v9195_v36  ;;  %v3868_v3 = vand.u32 4294901760, %v3867_v40 }
 0x483   : > { %5804 = vmatpush3.msra.mxu0 %v8844_v59  ;;  %5857 = vmatprep.subr.mxu1 %v4112_v21  ;;  %v4007_v34 = vand.u32 4294901760, %v4006_v63  ;;  %v4020_v1 = vsub.f32 %v9169_v2, %v10751_v32  ;;  %v4139_v21 = vsub.f32 %v9179_v43, %v10240_v50  ;;  %v10752_v40 = vand.u32 4294901760, %v9184_v58  ;;  %v10762_v50 = vld [vmem:[#allocation5_spill] sm:$0xff] }
 0x484   : > { %5007 = vmatmul.mubr.msk.f32.gmra.mxu0 %vm2638_vm11, %v10605_v30  ;;  %5805 = vmatprep.subr.mxu0 %v8850_v0  ;;  %v4126_v20 = vand.u32 4294901760, %v4125_v14  ;;  %v4133_v32 = vand.u32 4294901760, %v4132_v25  ;;  %v4034_v57 = vsub.f32 %v9206_v53, %v10238_v52  ;;  %v10760_v52 = vld [vmem:[#allocation38_spill] sm:$0xff] }
 0x485   : > { %5858 = vmatpush3.msra.mxu1 %v4000_v11  ;;  %5806 = vmatpush3.msra.mxu0 %v8852_v47  ;;  %v4027_v63 = vsub.f32 %v9184_v58, %v10752_v40  ;;  %v4146_v11 = vsub.f32 %v9195_v36, %v10239_v4  ;;  %v4021_v14 = vand.u32 4294901760, %v4020_v1  ;;  %v10761_v4 = vld [vmem:[#allocation30_spill] sm:$0xff] }
 0x486   : > { %3869 = vmatprep.mubr.f32.mxu0 %v3868_v3  ;;  %5859 = vmatprep.subr.mxu1 %v4119_v38  ;;  %v10753_v3 = vld [vmem:[#allocation33_spill] sm:$0xff]  ;;  %v4140_v38 = vand.u32 4294901760, %v4139_v21  ;;  %vm2641_vm4 = vcmp.eq.s32.totalorder %v10761_v4, %v10735_v13 }
 0x487   : > { %5807 = vmatprep.subr.mxu0 %v8864_v31  ;;  %5860 = vmatpush3.msra.mxu1 %v4007_v34  ;;  %vm2628_vm15 = vcmp.eq.s32.totalorder %v10753_v3, %v10658_v15  ;;  %v4028_v25 = vand.u32 4294901760, %v4027_v63  ;;  %v10754_v34 = vld [vmem:[#allocation42_spill] sm:$0xff]  ;;  %v4147_v1 = vand.u32 4294901760, %v4146_v11  ;;  %v10755_v63 = vld [vmem:[#allocation39_spill] sm:$0xff]  ;;  %v10756_v11 = vld [vmem:[#allocation25_spill] sm:$0xff] }
 0x488   : > { %5808 = vmatpush3.msra.mxu0 %v8889_v55  ;;  %5861 = vmatprep.subr.mxu1 %v4126_v20  ;;  %vm2633_vm1 = vcmp.eq.s32.totalorder %v10754_v34, %v10710_v19  ;;  %v4978_v40 = vsel %vm2628_vm15, 1.0, %v10737_v54  ;;  %v4035_v20 = vand.u32 4294901760, %v4034_v57  ;;  %vm2632_vm2 = vcmp.eq.s32.totalorder %v10755_v63, %v10710_v19  ;;  %v10765_v19 = vld [vmem:[#allocation16_spill] sm:$0xff] }
 0x489   : > { %5809 = vmatprep.subr.mxu0 %v8903_v48  ;;  %5862 = vmatpush3.msra.mxu1 %v4014_v28  ;;  %v4983_v21 = vsel %vm2633_vm1, 1.0, %v10737_v54  ;;  %v9269_v28 = vsub.f32 %v4978_v40, %v4978_v40  ;;  %vm2637_vm0 = vcmp.eq.s32.totalorder %v10756_v11, %v10721_v10  ;;  %v10759_v40 = vld [vmem:[#allocation45_spill] sm:$0xff]  ;;  %vm2640_vm5 = vcmp.eq.s32.totalorder %v10765_v19, %v10735_v13 }
 0x48a   : > { %5810 = vmatpush3.msra.mxu0 %v8916_v8  ;;  %5863 = vmatprep.subr.mxu1 %v4133_v32  ;;  %v9275_v32 = vsub.f32 %v4983_v21, %v4983_v21 }
 0x48b   : > { %5811 = vmatprep.subr.mxu0 %v8969_v49  ;;  %5864 = vmatpush3.msra.mxu1 %v4021_v14  ;;  %v4982_v14 = vsel %vm2632_vm2, 1.0, %v10737_v54  ;;  %v10763_v21 = vand.u32 4294901760, %v9269_v28 }
 0x48c   : > { %5812 = vmatpush3.msra.mxu0 %v8971_v18  ;;  %5865 = vmatprep.subr.mxu1 %v4140_v38  ;;  %v10757_v38 = vld [vmem:[#allocation31_spill] sm:$0xff]  ;;  %v10764_v63 = vand.u32 4294901760, %v9275_v32 }
 0x48d   : > { %5813 = vmatprep.subr.mxu0 %v8986_v27  ;;  %5866 = vmatpush3.msra.mxu1 %v4028_v25  ;;  %v4987_v25 = vsel %vm2637_vm0, 1.0, %v10737_v54  ;;  %v3873_v34 = vsub.f32 %v9269_v28, %v10763_v21 }
 0x48e   : > { %5814 = vmatpush3.msra.mxu0 %v9010_v45  ;;  %5867 = vmatprep.subr.mxu1 %v4147_v1  ;;  %v10758_v1 = vld [vmem:[#allocation28_spill] sm:$0xff]  ;;  %v9316_v57 = vsub.f32 %v4987_v25, %v4987_v25  ;;  %v4991_v25 = vsel %vm2641_vm4, 1.0, %v10737_v54  ;;  %v3882_v21 = vsub.f32 %v9275_v32, %v10764_v63 }
 0x48f   : > { %5815 = vmatprep.subr.mxu0 %v9040_v60  ;;  %5868 = vmatpush3.msra.mxu1 %v4035_v20  ;;  %vm2636_vm3 = vcmp.eq.s32.totalorder %v10758_v1, %v10721_v10  ;;  %v9304_v20 = vsub.f32 %v4982_v14, %v4982_v14  ;;  %v3874_v15 = vand.u32 4294901760, %v3873_v34  ;;  %v9354_v63 = vsub.f32 %v4991_v25, %v4991_v25  ;;  %v10766_v1 = vld [vmem:[#allocation32_spill] sm:$0xff]  ;;  %v10767_v10 = vld [vmem:[#allocation18_spill] sm:$0xff] }
 0x490   : > { %5816 = vmatpush3.msra.mxu0 %v9059_v12  ;;  %5017 = vmatmul.mubr.msk.f32.vlgmr.msra.gmra.mxu1 %vm2628_vm15, %v10605_v30  ;;  %v4986_v14 = vsel %vm2636_vm3, 1.0, %v10737_v54  ;;  %v3883_v34 = vand.u32 4294901760, %v3882_v21  ;;  %v10769_v21 = vld [vmem:[#allocation19_spill] sm:$0xff] }
 0x491   : > { %5925 = vmatprep.subr.mxu1 %v8696_v23  ;;  %5817 = vmatprep.subr.mxu0 %v9077_v56  ;;  %v10252_v3 = vand.u32 4294901760, %v9304_v20  ;;  %v9344_v11 = vsub.f32 %v4986_v14, %v4986_v14  ;;  %v4990_v14 = vsel %vm2640_vm5, 1.0, %v10737_v54  ;;  %v10768_v54 = vand.u32 4294901760, %v9316_v57 }
 0x492   : > { %5018 = vmatprep.mubr.msk.f32.mxu1 %vm2633_vm1, %v10605_v30  ;;  %5926 = vmatpush3.msra.mxu1 %v10757_v38  ;;  %v10774_v19 = vand.u32 4294901760, %v9354_v63 }
 0x493   : > { %5818 = vmatpush3.msra.mxu0 %v9090_v33  ;;  %5927 = vmatprep.subr.mxu1 %v10759_v40  ;;  %v3888_v53 = vsub.f32 %v9304_v20, %v10252_v3  ;;  %v3897_v4 = vsub.f32 %v9316_v57, %v10768_v54  ;;  %v10772_v54 = vld [vmem:[#allocation43_spill] sm:$0xff] }
 0x494   : > { %5819 = vmatprep.subr.mxu0 %v9101_v46  ;;  %5928 = vmatpush3.msra.mxu1 %v10760_v52  ;;  %v3912_v13 = vsub.f32 %v9354_v63, %v10774_v19 }
 0x495   : > { %5820 = vmatpush3.msra.mxu0 %v9113_v42  ;;  %5019 = vmatmul.mubr.msk.f32.gmra.mxu1 %vm2632_vm2, %v10605_v30  ;;  %v3889_v25 = vand.u32 4294901760, %v3888_v53  ;;  %v3898_v3 = vand.u32 4294901760, %v3897_v4  ;;  %v10773_v53 = vand.u32 4294901760, %v9107_v41  ;;  %v10777_v4 = vld [vmem:[#allocation8_spill] sm:$0xff] }
 0x496   : > { %5929 = vmatprep.subr.mxu1 %v10762_v50  ;;  %5821 = vmatprep.subr.mxu0 %v9127_v29  ;;  %v3913_v19 = vand.u32 4294901760, %v3912_v13  ;;  %v10782_v13 = vld [vmem:[#allocation53_spill] sm:$0xff] }
 0x497   : > { %5020 = vmatprep.mubr.msk.f32.mxu1 %vm2637_vm0, %v10605_v30  ;;  %5930 = vmatpush3.msra.mxu1 %v8756_v44 }
 0x498   : > { %5822 = vmatpush3.msra.mxu0 %v9146_v39  ;;  %5931 = vmatprep.subr.mxu1 %v8765_v7 }
 0x499   : > { %5823 = vmatprep.subr.mxu0 %v9159_v6  ;;  %5932 = vmatpush3.msra.mxu1 %v8777_v61 }
 0x49a   : > { %5824 = vmatpush3.msra.mxu0 %v9171_v35  ;;  %5021 = vmatmul.mubr.msk.f32.gmra.mxu1 %vm2636_vm3, %v10605_v30 }
 0x49b   : > { %5933 = vmatprep.subr.mxu1 %v8786_v22  ;;  %3875 = vmatmul.mubr.f32.vlgmr.msra.gmra.mxu0 %v3874_v15  ;;  %v9371_v15 = vsub.f32 %v4990_v14, %v4990_v14  ;;  %v10771_v14 = vand.u32 4294901760, %v9344_v11 }
 0x49c   : > { %5022 = vmatprep.mubr.msk.f32.mxu1 %vm2641_vm4, %v10605_v30  ;;  %5881 = vmatprep.subr.mxu0 %v10766_v1 }
 0x49d   : > { %5934 = vmatpush3.msra.mxu1 %v8812_v51  ;;  %3884 = vmatprep.mubr.f32.mxu0 %v3883_v34  ;;  %v10770_v51 = vld [vmem:[#allocation41_spill] sm:$0xff]  ;;  %v3903_v34 = vsub.f32 %v9344_v11, %v10771_v14 }
 0x49e   : > { %5882 = vmatpush3.msra.mxu0 %v10767_v10  ;;  %5935 = vmatprep.subr.mxu1 %v8830_v5 }
 0x49f   : > { %5883 = vmatprep.subr.mxu0 %v10769_v21  ;;  %5936 = vmatpush3.msra.mxu1 %v8844_v59  ;;  %v10260_v59 = vand.u32 4294901760, %v9371_v15  ;;  %v3904_v14 = vand.u32 4294901760, %v3903_v34  ;;  %v10780_v34 = vld [vmem:[#allocation9_spill] sm:$0xff] }
 0x4a0   : > { %5884 = vmatpush3.msra.mxu0 %v10770_v51  ;;  %5023 = vmatmul.mubr.msk.f32.gmra.mxu1 %vm2640_vm5, %v10605_v30  ;;  %v10775_v30 = vld [vmem:[#allocation44_spill] sm:$0xff] }
 0x4a1   : > { %5937 = vmatprep.subr.mxu1 %v8850_v0  ;;  %3890 = vmatmul.mubr.f32.gmra.mxu0 %v3889_v25  ;;  %v10776_v25 = vld [vmem:[#allocation26_spill] sm:$0xff] }
 0x4a2   : > { %5885 = vmatprep.subr.mxu0 %v10772_v54  ;;  %5938 = vmatpush3.msra.mxu1 %v8852_v47 }
 0x4a3   : > { %4442 = vmatprep.mubr.f32.mxu1 %v10773_v53  ;;  %3899 = vmatprep.mubr.f32.mxu0 %v3898_v3  ;;  %v3918_v53 = vsub.f32 %v9371_v15, %v10260_v59  ;;  %v10778_v3 = vld [vmem:[#allocation15_spill] sm:$0xff]  ;;  %v10786_v59 = vld [vmem:[#allocation50_spill] sm:$0xff] }
 0x4a4   : > { %5886 = vmatpush3.msra.mxu0 %v10775_v30  ;;  %5939 = vmatprep.subr.mxu1 %v8864_v31  ;;  %v10779_v31 = vld [vmem:[#allocation11_spill] sm:$0xff] }
 0x4a5   : > { %5887 = vmatprep.subr.mxu0 %v10776_v25  ;;  %5940 = vmatpush3.msra.mxu1 %v8889_v55  ;;  %v10781_v55 = vld [vmem:[#allocation21_spill] sm:$0xff] }
 0x4a6   : > { %5888 = vmatpush3.msra.mxu0 %v10777_v4  ;;  %5941 = vmatprep.subr.mxu1 %v8903_v48  ;;  %v3919_v4 = vand.u32 4294901760, %v3918_v53  ;;  %v10785_v53 = vld [vmem:[#allocation49_spill] sm:$0xff] }
 0x4a7   : > { %3905 = vmatmul.mubr.f32.gmra.mxu0 %v3904_v14  ;;  %5889 = vmatprep.subr.mxu0 %v10778_v3  ;;  %v10783_v14 = vld [vmem:[#allocation55_spill] sm:$0xff] }
 0x4a8   : > { %5942 = vmatpush3.msra.mxu1 %v8916_v8  ;;  %3914 = vmatprep.mubr.f32.mxu0 %v3913_v19  ;;  %v10784_v19 = vld [vmem:[#allocation48_spill] sm:$0xff] }
 0x4a9   : > { %5890 = vmatpush3.msra.mxu0 %v10779_v31  ;;  %5943 = vmatprep.subr.mxu1 %v8969_v49 }
 0x4aa   : > { %5891 = vmatprep.subr.mxu0 %v10780_v34  ;;  %5944 = vmatpush3.msra.mxu1 %v8971_v18 }
 0x4ab   : > { %5892 = vmatpush3.msra.mxu0 %v10781_v55  ;;  %5945 = vmatprep.subr.mxu1 %v8986_v27 }
 0x4ac   : > { %3920 = vmatmul.mubr.f32.gmra.mxu0 %v3919_v4  ;;  %5893 = vmatprep.subr.mxu0 %v10782_v13  ;;  %v10787_v4 = vld [vmem:[#allocation52_spill] sm:$0xff] }
 0x4ad   : > { %5946 = vmatpush3.msra.mxu1 %v9010_v45  ;;  %5894 = vmatpush3.msra.mxu0 %v10783_v14  ;;  %v10788_v14 = vld [vmem:[#allocation54_spill] sm:$0xff] }
 0x4ae   : > { %4308 = vmatprep.mubr.f32.mxu0 %v9107_v41  ;;  %5947 = vmatprep.subr.mxu1 %v9040_v60  ;;  %v10789_v41 = vld [vmem:[#allocation56_spill] sm:$0xff] }
 0x4af   : > { %5895 = vmatprep.subr.mxu0 %v10784_v19  ;;  %5948 = vmatpush3.msra.mxu1 %v9059_v12 }
 0x4b0   : > { %5896 = vmatpush3.msra.mxu0 %v10785_v53  ;;  %5949 = vmatprep.subr.mxu1 %v9077_v56 }
 0x4b1   : > { %5897 = vmatprep.subr.mxu0 %v10786_v59  ;;  %5950 = vmatpush3.msra.mxu1 %v9090_v33 }
 0x4b2   : > { %5898 = vmatpush3.msra.mxu0 %v10787_v4  ;;  %5951 = vmatprep.subr.mxu1 %v9101_v46 }
 0x4b3   : > { %5899 = vmatprep.subr.mxu0 %v10788_v14  ;;  %5952 = vmatpush3.msra.mxu1 %v9113_v42  ;;  %v10790_v42 = vand.u32 4294901760, %v9269_v28 }
 0x4b4   : > { %5900 = vmatpush3.msra.mxu0 %v9023_v26  ;;  %5953 = vmatprep.subr.mxu1 %v9127_v29 }
 0x4b5   : > { %5901 = vmatprep.subr.mxu0 %v10789_v41  ;;  %5954 = vmatpush3.msra.mxu1 %v9146_v39  ;;  %v10791_v41 = vand.u32 4294901760, %v9275_v32 }
 0x4b6   : > { %5902 = vmatpush3.msra.mxu0 %v9075_v16  ;;  %5955 = vmatprep.subr.mxu1 %v9159_v6 }
 0x4b7   : > { %5903 = vmatprep.subr.mxu0 %v9099_v62  ;;  %5956 = vmatpush3.msra.mxu1 %v9171_v35 }
 0x4b8   : > { %5904 = vmatpush3.msra.mxu0 %v9111_v9  ;;  %4446 = vmatmul.mubr.f32.vlgmr.msra.gmra.mxu1 %v10790_v42  ;;  %v10792_v42 = vand.u32 4294901760, %v9304_v20 }
 0x4b9   : > { %6013 = vmatprep.subr.mxu1 %v8696_v23  ;;  %5905 = vmatprep.subr.mxu0 %v9125_v24  ;;  %v10793_v23 = vand.u32 4294901760, %v9316_v57 }
 0x4ba   : > { %4453 = vmatprep.mubr.f32.mxu1 %v10791_v41  ;;  %6014 = vmatpush3.msra.mxu1 %v10757_v38  ;;  %v10795_v38 = vand.u32 4294901760, %v9344_v11  ;;  %v10809_v41 = vld [vmem:[#allocation13_spill] sm:$0xff] }
 0x4bb   : > { %5906 = vmatpush3.msra.mxu0 %v9144_v37  ;;  %6015 = vmatprep.subr.mxu1 %v10759_v40  ;;  %v10800_v40 = vand.u32 4294901760, %v10769_v21 }
 0x4bc   : > { %5907 = vmatprep.subr.mxu0 %v9157_v17  ;;  %6016 = vmatpush3.msra.mxu1 %v10760_v52  ;;  %v10794_v52 = vld [vmem:[#allocation34_spill] sm:$0xff] }
 0x4bd   : > { %5908 = vmatpush3.msra.mxu0 %v9169_v2  ;;  %4457 = vmatmul.mubr.f32.gmra.mxu1 %v10792_v42 }
 0x4be   : > { %6017 = vmatprep.subr.mxu1 %v10762_v50  ;;  %5909 = vmatprep.subr.mxu0 %v9179_v43  ;;  %v10796_v50 = vand.u32 4294901760, %v9354_v63 }
 0x4bf   : > { %4464 = vmatprep.mubr.f32.mxu1 %v10793_v23  ;;  %6018 = vmatpush3.msra.mxu1 %v8756_v44  ;;  %v10797_v44 = vand.u32 4294901760, %v10766_v1  ;;  %v10803_v1 = vand.u32 4294901760, %v9371_v15 }
 0x4c0   : > { %5910 = vmatpush3.msra.mxu0 %v9184_v58  ;;  %6019 = vmatprep.subr.mxu1 %v8765_v7  ;;  %v10798_v7 = vld [vmem:[#allocation14_spill] sm:$0xff] }
 0x4c1   : > { %5911 = vmatprep.subr.mxu0 %v9195_v36  ;;  %6020 = vmatpush3.msra.mxu1 %v8777_v61  ;;  %v10799_v61 = vand.u32 4294901760, %v10767_v10  ;;  %v10804_v10 = vand.u32 4294901760, %v10772_v54  ;;  %v10812_v54 = vld [vmem:[#allocation8_spill] sm:$0xff] }
 0x4c2   : > { %5912 = vmatpush3.msra.mxu0 %v10794_v52  ;;  %4468 = vmatmul.mubr.f32.gmra.mxu1 %v10795_v38  ;;  %v10813_v42 = vand.u32 4294901760, %v10812_v54 }
 0x4c3   : > { %6021 = vmatprep.subr.mxu1 %v8786_v22  ;;  %4311 = vmatmul.mubr.f32.vlgmr.msra.gmra.mxu0 %v9269_v28  ;;  %v10801_v22 = vld [vmem:[#allocation7_spill] sm:$0xff]  ;;  %v10802_v28 = vand.u32 4294901760, %v10770_v51  ;;  %v10808_v51 = vand.u32 4294901760, %v10775_v30  ;;  %v10815_v30 = vand.u32 4294901760, %v10779_v31 }
 0x4c4   : > { %4475 = vmatprep.mubr.f32.mxu1 %v10796_v50  ;;  %5969 = vmatprep.subr.mxu0 %v10797_v44  ;;  %v10819_v31 = vld [vmem:[#allocation55_spill] sm:$0xff] }
 0x4c5   : > { %6022 = vmatpush3.msra.mxu1 %v10798_v7  ;;  %4317 = vmatprep.mubr.f32.mxu0 %v9275_v32 }
 0x4c6   : > { %5970 = vmatpush3.msra.mxu0 %v10799_v61  ;;  %6023 = vmatprep.subr.mxu1 %v8830_v5  ;;  %v10805_v5 = vmov 1.0  }
 0x4c7   : > { %5971 = vmatprep.subr.mxu0 %v10800_v40  ;;  %6024 = vmatpush3.msra.mxu1 %v10801_v22 }
 0x4c8   : > { %5972 = vmatpush3.msra.mxu0 %v10802_v28  ;;  %4479 = vmatmul.mubr.f32.gmra.mxu1 %v10803_v1 }
 0x4c9   : > { %6025 = vmatprep.subr.mxu1 %v8850_v0  ;;  %4320 = vmatmul.mubr.f32.gmra.mxu0 %v9304_v20  ;;  %v10810_v0 = vand.u32 4294901760, %v10776_v25  ;;  %v10811_v20 = vld [vmem:[#allocation10_spill] sm:$0xff] }
 0x4ca   : > { %5973 = vmatprep.subr.mxu0 %v10804_v10  ;;  %6026 = vmatpush3.msra.mxu1 %v8852_v47  ;;  %v10814_v47 = vand.u32 4294901760, %v10778_v3 }
 0x4cb   : > { %5032 = vmatprep.mubr.msk.f32.mxu1 %vm2629_vm14, %v10805_v5  ;;  %4326 = vmatprep.mubr.f32.mxu0 %v9316_v57  ;;  %v10816_v57 = vand.u32 4294901760, %v10780_v34 }
 0x4cc   : > { %5974 = vmatpush3.msra.mxu0 %v10808_v51  ;;  %6027 = vmatprep.subr.mxu1 %v10809_v41 }
 0x4cd   : > { %5975 = vmatprep.subr.mxu0 %v10810_v0  ;;  %6028 = vmatpush3.msra.mxu1 %v10811_v20 }
 0x4ce   : > { %5976 = vmatpush3.msra.mxu0 %v10813_v42  ;;  %6029 = vmatprep.subr.mxu1 %v8903_v48  ;;  %v10817_v48 = vand.u32 4294901760, %v10781_v55  ;;  %v10821_v55 = vand.u32 4294901760, %v10784_v19 }
 0x4cf   : > { %4329 = vmatmul.mubr.f32.gmra.mxu0 %v9344_v11  ;;  %5977 = vmatprep.subr.mxu0 %v10814_v47  ;;  %v10820_v11 = vand.u32 4294901760, %v10819_v31 }
 0x4d0   : > { %6030 = vmatpush3.msra.mxu1 %v8916_v8  ;;  %4335 = vmatprep.mubr.f32.mxu0 %v9354_v63  ;;  %v10818_v8 = vand.u32 4294901760, %v10782_v13 }
 0x4d1   : > { %5978 = vmatpush3.msra.mxu0 %v10815_v30  ;;  %6031 = vmatprep.subr.mxu1 %v8969_v49  ;;  %v10824_v49 = vand.u32 4294901760, %v10787_v4 }
 0x4d2   : > { %5979 = vmatprep.subr.mxu0 %v10816_v57  ;;  %6032 = vmatpush3.msra.mxu1 %v8971_v18  ;;  %v10823_v18 = vand.u32 4294901760, %v10786_v59 }
 0x4d3   : > { %5980 = vmatpush3.msra.mxu0 %v10817_v48  ;;  %6033 = vmatprep.subr.mxu1 %v8986_v27  ;;  %v10822_v27 = vand.u32 4294901760, %v10785_v53 }
 0x4d4   : > { %4338 = vmatmul.mubr.f32.gmra.mxu0 %v9371_v15  ;;  %5981 = vmatprep.subr.mxu0 %v10818_v8 }
 0x4d5   : > { %6034 = vmatpush3.msra.mxu1 %v9010_v45  ;;  %5982 = vmatpush3.msra.mxu0 %v10820_v11  ;;  %v10825_v45 = vand.u32 4294901760, %v10788_v14 }
 0x4d6   : > { %5024 = vmatprep.mubr.msk.f32.mxu0 %vm2629_vm14, %v10805_v5  ;;  %6035 = vmatprep.subr.mxu1 %v9040_v60  ;;  %v10826_v60 = vld [vmem:[#allocation35_spill] sm:$0xff] }
 0x4d7   : > { %5983 = vmatprep.subr.mxu0 %v10821_v55  ;;  %6036 = vmatpush3.msra.mxu1 %v9059_v12  ;;  %v10827_v12 = vand.u32 4294901760, %v9023_v26  ;;  %v10832_v26 = vand.u32 4294901760, %v9111_v9  ;;  %v10839_v9 = vand.u32 4294901760, %v9169_v2  ;;  %v10846_v2 = vand.u32 4294901760, %v10794_v52 }
 0x4d8   : > { %5984 = vmatpush3.msra.mxu0 %v10822_v27  ;;  %6037 = vmatprep.subr.mxu1 %v9077_v56  ;;  %v10828_v56 = vld [vmem:[#allocation56_spill] sm:$0xff]  ;;  %v9627_v34 = vpop.f32.mrf.mxu1 }
 0x4d9   : > { %5985 = vmatprep.subr.mxu0 %v10823_v18  ;;  %6038 = vmatpush3.msra.mxu1 %v9090_v33  ;;  %v10829_v59 = vand.u32 4294901760, %v10828_v56  ;;  %v10830_v33 = vand.u32 4294901760, %v9075_v16 }
 0x4da   : > { %5986 = vmatpush3.msra.mxu0 %v10824_v49  ;;  %6039 = vmatprep.subr.mxu1 %v9101_v46  ;;  %v10831_v46 = vand.u32 4294901760, %v9099_v62  ;;  %v10837_v62 = vand.u32 4294901760, %v9144_v37  ;;  %v10844_v37 = vand.u32 4294901760, %v9184_v58  ;;  %v9629_v13 = vpop.f32.mrf.mxu1 }
 0x4db   : > { %5987 = vmatprep.subr.mxu0 %v10825_v45  ;;  %6040 = vmatpush3.msra.mxu1 %v10826_v60 }
 0x4dc   : > { %5988 = vmatpush3.msra.mxu0 %v10827_v12  ;;  %6041 = vmatprep.subr.mxu1 %v9127_v29  ;;  %v9631_v14 = vpop.f32.mrf.mxu1 }
 0x4dd   : > { %5989 = vmatprep.subr.mxu0 %v10829_v59  ;;  %6042 = vmatpush3.msra.mxu1 %v9146_v39  ;;  %v10834_v39 = vand.u32 4294901760, %v9125_v24  ;;  %v10841_v24 = vand.u32 4294901760, %v9179_v43 }
 0x4de   : > { %5990 = vmatpush3.msra.mxu0 %v10830_v33  ;;  %6043 = vmatprep.subr.mxu1 %v9159_v6  ;;  %v9635_v53 = vpop.f32.mrf.mxu1 }
 0x4df   : > { %5991 = vmatprep.subr.mxu0 %v10831_v46  ;;  %6044 = vmatpush3.msra.mxu1 %v9171_v35  ;;  %v10838_v35 = vand.u32 4294901760, %v9157_v17  ;;  %v10845_v17 = vand.u32 4294901760, %v9195_v36 }
 0x4e0   : > { %5992 = vmatpush3.msra.mxu0 %v10832_v26  ;;  %5033 = vmatmul.mubr.msk.f32.vlgmr.msra.gmra.mxu1 %vm2628_vm15, %v10805_v5 }
 0x4e1   : > { %5993 = vmatprep.subr.mxu0 %v10834_v39  ;;  %5034 = vmatprep.mubr.msk.f32.mxu1 %vm2633_vm1, %v10805_v5 }
 0x4e2   : > { %5994 = vmatpush3.msra.mxu0 %v10837_v62  ;;  %v9633_v19 = vpop.f32.mrf.mxu0  ;;  %v9639_v23 = vpop.f32.mrf.mxu1 }
 0x4e3   : > { %5995 = vmatprep.subr.mxu0 %v10838_v35 }
 0x4e4   : > { %5996 = vmatpush3.msra.mxu0 %v10839_v9  ;;  %5035 = vmatmul.mubr.msk.f32.gmra.mxu1 %vm2632_vm2, %v10805_v5  ;;  %v9637_v4 = vpop.f32.mrf.mxu0  ;;  %v9643_v38 = vpop.f32.mrf.mxu1 }
 0x4e5   : > { %5997 = vmatprep.subr.mxu0 %v10841_v24  ;;  %5036 = vmatprep.mubr.msk.f32.mxu1 %vm2637_vm0, %v10805_v5 }
 0x4e6   : > { %5998 = vmatpush3.msra.mxu0 %v10844_v37 }
 0x4e7   : > { %5999 = vmatprep.subr.mxu0 %v10845_v17  ;;  %v9647_v44 = vpop.f32.mrf.mxu1 }
 0x4e8   : > { %6000 = vmatpush3.msra.mxu0 %v10846_v2  ;;  %5037 = vmatmul.mubr.msk.f32.gmra.mxu1 %vm2636_vm3, %v10805_v5 }
 0x4e9   : > { %5025 = vmatmul.mubr.msk.f32.vlgmr.msra.gmra.mxu0 %vm2628_vm15, %v10805_v5  ;;  %5038 = vmatprep.mubr.msk.f32.mxu1 %vm2641_vm4, %v10805_v5  ;;  %v9641_v52 = vpop.f32.mrf.mxu0  ;;  %v9651_v61 = vpop.f32.mrf.mxu1 }
 0x4ea   : > { %5026 = vmatprep.mubr.msk.f32.mxu0 %vm2633_vm1, %v10805_v5 }
 0x4eb   : > { %v9645_v50 = vpop.f32.mrf.mxu0 }
 0x4ec   : > { %5039 = vmatmul.mubr.msk.f32.gmra.mxu1 %vm2640_vm5, %v10805_v5 }
 0x4ed   : > { %5027 = vmatmul.mubr.msk.f32.gmra.mxu0 %vm2632_vm2, %v10805_v5 }
 0x4ee   : > { %5028 = vmatprep.mubr.msk.f32.mxu0 %vm2637_vm0, %v10805_v5  ;;  %v9649_v7 = vpop.f32.mrf.mxu0 }
 0x4f0   : > { %v9653_v40 = vpop.f32.mrf.mxu0 }
 0x4f1   : > { %5029 = vmatmul.mubr.msk.f32.gmra.mxu0 %vm2636_vm3, %v10805_v5 }
 0x4f2   : > { %5030 = vmatprep.mubr.msk.f32.mxu0 %vm2641_vm4, %v10805_v5 }
 0x4f3   : > { %v9657_v28 = vpop.f32.mrf.mxu0 }
 0x4f5   : > { %5031 = vmatmul.mubr.msk.f32.gmra.mxu0 %vm2640_vm5, %v10805_v5  ;;  %v9661_v10 = vpop.f32.mrf.mxu0 }
 0x4ff   : > { %v9655_v22 = vpop.f32.mrf.mxu1 }
 0x501   : > { %v9659_v1 = vpop.f32.mrf.mxu1 }
 0x504   : > { %v9663_v5 = vpop.f32.mrf.mxu1 }
 0x506   : > { %v9667_v21 = vpop.f32.mrf.mxu1 }
 0x509   : > { %v9671_v41 = vpop.f32.mrf.mxu1 }
 0x50a   : > { %v9665_v32 = vpop.f32.mrf.mxu0 }
 0x50b   : > { %v9675_v20 = vpop.f32.mrf.mxu1 }
 0x50c   : > { %v9669_v51 = vpop.f32.mrf.mxu0 }
 0x510   : > { %v9673_v0 = vpop.f32.mrf.mxu0 }
 0x512   : > { %v9677_v54 = vpop.f32.mrf.mxu0 }
 0x513   : > { %6115 = shalt.err (!%p6112_p3)
}
 0x514   : > { %s6116_s19 = scalar_lea.hbm %s4881_s30, 128  ;;  %s6120_s11 = scalar_lea.hbm %s9869_s4, 256 }
 0x515   : > { %p6117_p4 = scmp.ne.s32.totalorder %s4881_s30, %s6116_s19  ;;  %p6121_p9 = scmp.lt.s32.totalorder %s4881_s30, %s9869_s4 }
 0x516   : > { %p6122_p10 = scmp.lt.s32.totalorder %s6120_s11, %s6116_s19 }
 0x517   : > { %p6118_p7 = pnand %p6117_p4, %p6230_p5 }
 0x518   : > { %p6123_p11 = por %p6122_p10, %p6121_p9 }
 0x519   : > { %p6119_p8 = pneg %p6118_p7 }
 0x51b   : > { %p6124_p12 = pnand %p6123_p11, %p6119_p8 }
 0x51d   : > { %6127 = shalt.err (!%p6124_p12)
}
 0x51e   : > { %6057 = dma.vmem_to_hbm [thread:$0]  (%p6230_p5), %s4884_s23, 128, %s4881_s30, %s4866_s5   ;;  %v9699_v42 = vpop.f32.mrf.mxu1  ;;  %v5655_v47 = vpop.f32.mrf.mxu0  ;;  %vm4798_vm6 = vcmask 261120  }
 0x51f   : > { %s9834_s23 = scalar_lea.vmem %s9868_s3, %s4973_s28 }
 0x520   : > { %v9701_v30 = vpop.f32.mrf.mxu1  ;;  %v5656_v57 = vpop.f32.mrf.mxu0 }
 0x522   : > { %v9705_v8 = vpop.f32.mrf.mxu0 }
 0x524   : > { %v9709_v11 = vpop.f32.mrf.mxu0 }
 0x527   : > { %v9703_v48 = vpop.f32.mrf.mxu1 }
 0x529   : > { %v9707_v31 = vpop.f32.mrf.mxu1 }
 0x52d   : > { %v9711_v55 = vpop.f32.mrf.mxu1 }
 0x52f   : > { %v9713_v18 = vpop.f32.mrf.mxu1 }
 0x532   : > { %v9715_v45 = vpop.f32.mrf.mxu1 }
 0x533   : > { %v5737_v27 = vpop.f32.mrf.mxu0 }
 0x534   : > { %v9717_v12 = vpop.f32.mrf.mxu1 }
 0x535   : > { %v5738_v49 = vpop.f32.mrf.mxu0 }
 0x538   : > { %v9719_v59 = vpop.f32.mrf.mxu1 }
 0x539   : > { %v5740_v60 = vpop.f32.mrf.mxu0  ;;  %10851 = vst [vmem:[#allocation20_spill] sm:$0xff] %v9719_v59 }
 0x53a   : > { %v9723_v46 = vpop.f32.mrf.mxu1 }
 0x53b   : > { %v5741_v56 = vpop.f32.mrf.mxu0  ;;  %10852 = vst [vmem:[#allocation51_spill] sm:$0xff] %v9723_v46 }
 0x53f   : > { %v9721_v33 = vpop.f32.mrf.mxu0 }
 0x541   : > { %v9725_v26 = vpop.f32.mrf.mxu0 }
 0x544   : > { %v9729_v39 = vpop.f32.mrf.mxu0 }
 0x546   : > { %v9733_v63 = vpop.f32.mrf.mxu0 }
 0x550   : > { %v9727_v29 = vpop.f32.mrf.mxu1 }
 0x552   : > { %v9731_v16 = vpop.f32.mrf.mxu1 }
 0x555   : > { %v9735_v62 = vpop.f32.mrf.mxu1 }
 0x556   : > { %10853 = vst [vmem:[#allocation24_spill] sm:$0xff] %v9735_v62  ;;  %v5563_v62 = vadd.f32 %v9637_v4, %v9633_v19 }
 0x557   : > { %v9737_v9 = vpop.f32.mrf.mxu1 }
 0x558   : > { %10854 = vst [vmem:[#allocation12_spill] sm:$0xff] %v9737_v9 }
 0x55a   : > { %v9739_v24 = vpop.f32.mrf.mxu1 }
 0x55b   : > { %v5825_v35 = vpop.f32.mrf.mxu0  ;;  %10855 = vst [vmem:[#allocation6_spill] sm:$0xff] %v9739_v24 }
 0x55c   : > { %v9741_v25 = vpop.f32.mrf.mxu1 }
 0x55d   : > { %v5826_v6 = vpop.f32.mrf.mxu0  ;;  %10856 = vst [vmem:[#allocation46_spill] sm:$0xff] %v9741_v25 }
 0x560   : > { %v9743_v17 = vpop.f32.mrf.mxu1 }
 0x561   : > { %v5828_v15 = vpop.f32.mrf.mxu0  ;;  %10857 = vst [vmem:[#allocation47_spill] sm:$0xff] %v9743_v17 }
 0x562   : > { %v9747_v3 = vpop.f32.mrf.mxu1 }
 0x563   : > { %v5829_v37 = vpop.f32.mrf.mxu0  ;;  %10859 = vst [vmem:[#allocation36_spill] sm:$0xff] %v9747_v3  ;;  %v5607_v3 = vadd.f32 %v9629_v13, %v9627_v34  ;;  %v5569_v13 = vadd.f32 %v9653_v40, %v9649_v7 }
 0x567   : > { %v9745_v2 = vpop.f32.mrf.mxu0 }
 0x568   : > { %10858 = vst [vmem:[#allocation23_spill] sm:$0xff] %v9745_v2 }
 0x569   : > { %v9749_v43 = vpop.f32.mrf.mxu0 }
 0x56a   : > { %10860 = vst [vmem:[#allocation40_spill] sm:$0xff] %v9749_v43  ;;  %v5654_v43 = vadd.f32 %v9677_v54, %v9673_v0  ;;  %v5572_v0 = vadd.f32 %v9661_v10, %v9657_v28  ;;  %v5698_v54 = vadd.f32 %v9667_v21, %v9663_v5  ;;  %v5783_v28 = vadd.f32 %v9707_v31, %v9703_v48 }
 0x56b   : > { %v5827_v10 = vadd.f32 %v5826_v6, %v5825_v35  ;;  %v5748_v35 = vadd.f32 %v9733_v63, %v9729_v39  ;;  %v10869_v39 = vld [vmem:[#allocation24_spill] sm:$0xff] }
 0x56c   : > { %v9753_v36 = vpop.f32.mrf.mxu0  ;;  %v10870_v63 = vld [vmem:[#allocation12_spill] sm:$0xff] }
 0x56d   : > { %10862 = vst [vmem:[#allocation27_spill] sm:$0xff] %v9753_v36 }
 0x56e   : > { %v9757_v59 = vpop.f32.mrf.mxu0 }
 0x56f   : > { %10864 = vst [vmem:[#allocation17_spill] sm:$0xff] %v9757_v59 }
 0x578   : > { %v9751_v58 = vpop.f32.mrf.mxu1 }
 0x579   : > { %10861 = vst [vmem:[#allocation22_spill] sm:$0xff] %v9751_v58  ;;  %v5651_v58 = vadd.f32 %v9669_v51, %v9665_v32  ;;  %v5613_v51 = vadd.f32 %v9643_v38, %v9639_v23  ;;  %v5660_v23 = vadd.f32 %v9709_v11, %v9705_v8  ;;  %v5786_v8 = vadd.f32 %v9713_v18, %v9711_v55 }
 0x57a   : > { %v9755_v46 = vpop.f32.mrf.mxu1  ;;  %v5830_v11 = vadd.f32 %v5829_v37, %v5828_v15  ;;  %v5789_v15 = vadd.f32 %v9717_v12, %v9715_v45  ;;  %v10867_v37 = vld [vmem:[#allocation23_spill] sm:$0xff]  ;;  %v10874_v12 = vld [vmem:[#allocation17_spill] sm:$0xff] }
 0x57b   : > { %10863 = vst [vmem:[#allocation29_spill] sm:$0xff] %v9755_v46  ;;  %v5566_v46 = vadd.f32 %v9645_v50, %v9641_v52  ;;  %v5695_v52 = vadd.f32 %v9659_v1, %v9655_v22  ;;  %v5739_v50 = vadd.f32 %v5738_v49, %v5737_v27  ;;  %v3138_v40 = vadd.f32 %v5613_v51, %v5569_v13  ;;  %v10873_v45 = vld [vmem:[#allocation27_spill] sm:$0xff] }
 0x57c   : > { %v5616_v22 = vadd.f32 %v9651_v61, %v9647_v44  ;;  %v5701_v27 = vadd.f32 %v9675_v20, %v9671_v41  ;;  %v5745_v44 = vadd.f32 %v9725_v26, %v9721_v33  ;;  %v5871_v33 = vadd.f32 %v9731_v16, %v9727_v29  ;;  %v10871_v16 = vld [vmem:[#allocation20_spill] sm:$0xff] }
 0x57d   : > { %v9759_v24 = vpop.f32.mrf.mxu1 }
 0x57e   : > { %10865 = vst [vmem:[#allocation31_spill] sm:$0xff] %v9759_v24  ;;  %v3124_v24 = vadd.f32 %v5607_v3, %v5563_v62 }
 0x57f   : > { %v9761_v9 = vpop.f32.mrf.mxu1 }
 0x580   : > { %10866 = vst [vmem:[#allocation45_spill] sm:$0xff] %v9761_v9  ;;  %v5610_v9 = vadd.f32 %v9635_v53, %v9631_v14  ;;  %v3283_v19 = vadd.f32 %v5651_v58, %v3124_v24  ;;  %v5657_v14 = vadd.f32 %v5656_v57, %v5655_v47  ;;  %v3145_v47 = vadd.f32 %v5616_v22, %v5572_v0  ;;  %v10875_v0 = vld [vmem:[#allocation22_spill] sm:$0xff] }
 0x581   : > { %v10877_v22 = vld [vmem:[#allocation6_spill] sm:$0xff] }
 0x582   : > { %v9771_v36 = vpop.f32.mrf.mxu1  ;;  %v3131_v4 = vadd.f32 %v5610_v9, %v5566_v46  ;;  %v3418_v53 = vadd.f32 %v5695_v52, %v3283_v19  ;;  %v5742_v46 = vadd.f32 %v5741_v56, %v5740_v60  ;;  %v3301_v1 = vadd.f32 %v5657_v14, %v3138_v40 }
 0x583   : > { %v5913_v25 = vpop.f32.mrf.mxu0  ;;  %v3310_v49 = vadd.f32 %v5660_v23, %v3145_v47  ;;  %v5704_v56 = vadd.f32 %v9701_v30, %v9699_v42  ;;  %v5874_v19 = vadd.f32 %v10870_v63, %v10869_v39  ;;  %v10878_v23 = vld [vmem:[#allocation46_spill] sm:$0xff] }
 0x584   : > { %v9777_v2 = vpop.f32.mrf.mxu1  ;;  %v3292_v32 = vadd.f32 %v5654_v43, %v3131_v4  ;;  %v3619_v9 = vadd.f32 %v5739_v50, %v3418_v53  ;;  %v3440_v48 = vadd.f32 %v5701_v27, %v3301_v1  ;;  %v10868_v43 = vld [vmem:[#allocation40_spill] sm:$0xff]  ;;  %v5836_v53 = vadd.f32 %v10874_v12, %v10873_v45 }
 0x585   : > { %v5914_v17 = vpop.f32.mrf.mxu0  ;;  %v3451_v3 = vadd.f32 %v5704_v56, %v3310_v49  ;;  %v5833_v42 = vadd.f32 %v10868_v43, %v10867_v37  ;;  %v10879_v47 = vld [vmem:[#allocation31_spill] sm:$0xff] }
 0x586   : > { %v3429_v38 = vadd.f32 %v5698_v54, %v3292_v32  ;;  %v3744_v61 = vadd.f32 %v5783_v28, %v3619_v9  ;;  %v3633_v24 = vadd.f32 %v5745_v44, %v3440_v48  ;;  %v5915_v26 = vadd.f32 %v5914_v17, %v5913_v25  ;;  %v10872_v25 = vld [vmem:[#allocation51_spill] sm:$0xff]  ;;  %v10876_v54 = vld [vmem:[#allocation29_spill] sm:$0xff] }
 0x587   : > { %v3640_v58 = vadd.f32 %v5748_v35, %v3451_v3  ;;  %v5792_v17 = vadd.f32 %v10872_v25, %v10871_v16  ;;  %v10881_v48 = vld [vmem:[#allocation47_spill] sm:$0xff] }
 0x588   : > { %v9789_v62 = vpop.f32.mrf.mxu1  ;;  %v3626_v5 = vadd.f32 %v5742_v46, %v3429_v38  ;;  %v3877_v31 = vadd.f32 %v5827_v10, %v3744_v61  ;;  %v3758_v50 = vadd.f32 %v5789_v15, %v3633_v24  ;;  %v5959_v46 = vadd.f32 %v10876_v54, %v10875_v0 }
 0x589   : > { %v5916_v59 = vpop.f32.mrf.mxu0  ;;  %v3765_v40 = vadd.f32 %v5792_v17, %v3640_v58  ;;  %v5877_v38 = vadd.f32 %v10878_v23, %v10877_v22 }
 0x58a   : > { %v9797_v21 = vpop.f32.mrf.mxu1  ;;  %v3751_v6 = vadd.f32 %v5786_v8, %v3626_v5  ;;  %v4154_v30 = vadd.f32 %v5871_v33, %v3877_v31  ;;  %v3907_v14 = vadd.f32 %v5833_v42, %v3758_v50  ;;  %v10880_v5 = vld [vmem:[#allocation45_spill] sm:$0xff]  ;;  %v10882_v31 = vld [vmem:[#allocation36_spill] sm:$0xff] }
 0x58b   : > { %v5917_v34 = vpop.f32.mrf.mxu0  ;;  %v5962_v27 = vadd.f32 %v10880_v5, %v10879_v47  ;;  %v3922_v61 = vadd.f32 %v5836_v53, %v3765_v40  ;;  %v5880_v56 = vadd.f32 %v10882_v31, %v10881_v48  ;;  %v5968_v63 = vadd.f32 %v9797_v21, %v9789_v62 }
 0x58c   : > { %v3892_v55 = vadd.f32 %v5830_v11, %v3751_v6  ;;  %v5918_v4 = vadd.f32 %v5917_v34, %v5916_v59  ;;  %v4313_v29 = vadd.f32 %v5915_v26, %v4154_v30  ;;  %v4168_v49 = vadd.f32 %v5877_v38, %v3907_v14 }
 0x58d   : > { %v4175_v3 = vadd.f32 %v5880_v56, %v3922_v61 }
 0x58e   : > { %v4161_v32 = vadd.f32 %v5874_v19, %v3892_v55  ;;  %v4448_v28 = vadd.f32 %v5959_v46, %v4313_v29 }
 0x58f   : > { %v5919_v7 = vpop.f32.mrf.mxu0 }
 0x590   : > { %v4322_v9 = vadd.f32 %v5918_v4, %v4161_v32 }
 0x591   : > { %v5920_v57 = vpop.f32.mrf.mxu0 }
 0x592   : > { %v5921_v1 = vadd.f32 %v5920_v57, %v5919_v7  ;;  %v4459_v7 = vadd.f32 %v5962_v27, %v4322_v9 }
 0x594   : > { %v5922_v41 = vpop.f32.mrf.mxu0  ;;  %v4331_v6 = vadd.f32 %v5921_v1, %v4168_v49 }
 0x596   : > { %v5923_v13 = vpop.f32.mrf.mxu0 }
 0x597   : > { %v5924_v24 = vadd.f32 %v5923_v13, %v5922_v41 }
 0x599   : > { %v4340_v42 = vadd.f32 %v5924_v24, %v4175_v3 }
 0x59b   : > { %v4481_v13 = vadd.f32 %v5968_v63, %v4340_v42 }
 0x5a0   : > { %v6045_v60 = vpop.f32.mrf.mxu1 }
 0x5a2   : > { %v6046_v20 = vpop.f32.mrf.mxu1 }
 0x5a3   : > { %v6047_v8 = vadd.f32 %v6046_v20, %v6045_v60  ;;  %v5965_v20 = vadd.f32 %v9777_v2, %v9771_v36 }
 0x5a4   : > { %v6048_v18 = vpop.f32.mrf.mxu1 }
 0x5a5   : > { %v4470_v58 = vadd.f32 %v5965_v20, %v4331_v6 }
 0x5a6   : > { %v6049_v52 = vpop.f32.mrf.mxu1 }
 0x5a7   : > { %v6050_v55 = vadd.f32 %v6049_v52, %v6048_v18 }
 0x5a8   : > { %v6051_v59 = vpop.f32.mrf.mxu1 }
 0x5a9   : > { %v6001_v51 = vpop.f32.mrf.mxu0 }
 0x5aa   : > { %v6052_v35 = vpop.f32.mrf.mxu1 }
 0x5ab   : > { %v6002_v34 = vpop.f32.mrf.mxu0  ;;  %v6053_v19 = vadd.f32 %v6052_v35, %v6051_v59 }
 0x5ac   : > { %v6003_v10 = vadd.f32 %v6002_v34, %v6001_v51  ;;  %v6054_v37 = vpop.f32.mrf.mxu1 }
 0x5ad   : > { %v6004_v44 = vpop.f32.mrf.mxu0 }
 0x5ae   : > { %v4649_v11 = vadd.f32 %v6003_v10, %v4448_v28  ;;  %v6055_v36 = vpop.f32.mrf.mxu1 }
 0x5af   : > { %v6005_v57 = vpop.f32.mrf.mxu0  ;;  %v6056_v50 = vadd.f32 %v6055_v36, %v6054_v37 }
 0x5b0   : > { %v4774_v33 = vadd.f32 %v6047_v8, %v4649_v11  ;;  %v6006_v26 = vadd.f32 %v6005_v57, %v6004_v44 }
 0x5b1   : > { %v6007_v60 = vpop.f32.mrf.mxu0 }
 0x5b2   : > { %4799 = vst.msk [vmem:[%s9834_s23] sm:$0xff] %vm4798_vm6, %v4774_v33  ;;  %v4656_v15 = vadd.f32 %v6006_v26, %v4459_v7 }
 0x5b3   : > { %v6008_v43 = vpop.f32.mrf.mxu0 }
 0x5b4   : > { %v4781_v30 = vadd.f32 %v6050_v55, %v4656_v15  ;;  %v6009_v41 = vadd.f32 %v6008_v43, %v6007_v60 }
 0x5b5   : > { %v6010_v39 = vpop.f32.mrf.mxu0 }
 0x5b6   : > { %4800 = vst.msk [vmem:[%s9834_s23 + $0x8] sm:$0xff] %vm4798_vm6, %v4781_v30  ;;  %v4663_v2 = vadd.f32 %v6009_v41, %v4470_v58 }
 0x5b7   : > { %v6011_v18 = vpop.f32.mrf.mxu0 }
 0x5b8   : > { %v4788_v4 = vadd.f32 %v6053_v19, %v4663_v2  ;;  %v6012_v52 = vadd.f32 %v6011_v18, %v6010_v39 }
 0x5ba   : > { %4801 = vst.msk [vmem:[%s9834_s23 + $0x10] sm:$0xff] %vm4798_vm6, %v4788_v4  ;;  %v4670_v29 = vadd.f32 %v6012_v52, %v4481_v13 }
 0x5bc   : > { %v4795_v16 = vadd.f32 %v6056_v50, %v4670_v29 }
 0x5be   : > { %4802 = vst.msk [vmem:[%s9834_s23 + $0x18] sm:$0xff] %vm4798_vm6, %v4795_v16 }
 0x5bf PF: > { %p6063_p5 = scmp.ge.s32.totalorder %s6162_s18, 2  ;;  %s4903_s9 = sand.u32 1, %s6150_s15  }
 0x5c0   : > { %s4904_s28 = scalar_lea.sflag [#allocation3], %s4903_s9 }
 0x5c1   : > { %p6060_p13 = pnand %p6063_p5, %p6234_p6 }
 0x5c3   : > { %p6061_p0 = pneg %p6060_p13 }
 0x5c5   : > { %6145 = dma.done.wait (%p6061_p0), %s4904_s28, 128  }
 0x5c6   : > { %6147 = vsyncadd (%p6061_p0), %s4904_s28, 4294967168  ;;  %p15_p1 = scmp.ge.s32.totalorder %s6217_s21, 4   ;;  %s10883_s15 = smov %s6154_s16 }
 0x5c7   : > { %s10884_s16 = smov %s6158_s17  ;;  %s10885_s17 = smov %s6228_s24 }
 0x5c8   : > { %s10886_s18 = smov %s6217_s21  ;;  %17 = sbr.rel (!%p15_p1) target bundleno = 3 (0x3), region = 79 }
 0x5cd   :  { %4909 = vsyncpa [#allocation3], 1 }
 0x5ce   :  { %4911 = vsyncpa [#allocation3 + $0x1], 1 }

</bundles_post_ra>
